<compile_context>
chip_gen: v5e
topology: v5e:2x2
jax: 0.10.0
libtpu: 0.0.40
codegen_flags: <defaults>
</compile_context>

<pallas_src>
import math

import numpy as np
import jax
import jax.numpy as jnp
from jax.experimental import pallas as pl
from jax.experimental.pallas import tpu as pltpu


# ----------------------------- init-time glue ------------------------------

def _infer_padding(height: int, width: int, multiple: int = 8):
    """Padding [left, right, top, bottom] so the image is a multiple of `multiple`."""
    new_h = multiple * math.ceil(height / multiple)
    new_w = multiple * math.ceil(width / multiple)
    padding = [new_h - height, new_w - width]
    padding = [p for pad in reversed(padding) for p in [pad // 2, pad - pad // 2]]
    return padding


def _pad_nchw(images, padding):
    left, right, top, bottom = padding
    return jnp.pad(images, ((0, 0), (0, 0), (top, bottom), (left, right)))


def _to_patches(images, patch_size):
    # einops: 'b c (h p1) (w p2) -> b (h w) (c p1 p2)'  ->  (B, N_total, D)
    B, C, H, W = images.shape
    P = patch_size
    h, w = H // P, W // P
    x = images.reshape(B, C, h, P, w, P)
    x = jnp.transpose(x, (0, 2, 4, 1, 3, 5))       # (B, h, w, C, P, P)
    return x.reshape(B, h * w, C * P * P)


def _round_up(x: int, m: int) -> int:
    return ((x + m - 1) // m) * m


# ------------------------------ Pallas kernel -------------------------------

def _gather_tile(idx_ref, src_ref, buf_ref, sem_ref, tn):
    """DMA-gather `tn` patch rows (idx_ref[t*tn : (t+1)*tn]) from the HBM-resident
    (B, N_total, D) patch tensor into the (B, tn, D) VMEM scratch.  All tn DMAs are
    issued before any wait so they run concurrently."""
    base = pl.program_id(0) * tn
    copies = []
    for r in range(tn):                                   # static unroll, tn <= 32
        row = idx_ref[base + r]                           # scalar read from SMEM
        cp = pltpu.make_async_copy(
            src_ref.at[:, pl.ds(row, 1), :],              # (B, 1, D) from HBM
            buf_ref.at[:, pl.ds(r, 1), :],                # static destination row
            sem_ref.at[r])
        cp.start()
        copies.append(cp)
    for cp in copies:
        cp.wait()


def _make_kernel(tn, apply_mask):
    if apply_mask:
        def kernel(idx_ref, src_ref, m_ref, o_ref, buf_ref, sem_ref):
            _gather_tile(idx_ref, src_ref, buf_ref, sem_ref, tn)
            o_ref[...] = buf_ref[...] * m_ref[...][None]      # (B,tn,D) * (1,tn,D)
    else:
        def kernel(idx_ref, src_ref, o_ref, buf_ref, sem_ref):
            _gather_tile(idx_ref, src_ref, buf_ref, sem_ref, tn)
            o_ref[...] = buf_ref[...]
    return kernel


def gather_and_mask(patches_bnd, idx_padded, mask_padded, num_patches, tn):
    """patches_bnd: (B, N_total, D), stays in HBM; idx_padded: (nt*tn,) int32;
    mask_padded: (nt*tn, D) in patches dtype or None.  Returns (B, num_patches, D)."""
    B, _, D = patches_bnd.shape
    nt = idx_padded.shape[0] // tn
    apply_mask = mask_padded is not None

    in_specs = [pl.BlockSpec(memory_space=pl.ANY)]        # raw HBM ref, manual DMA
    args = [idx_padded, patches_bnd]
    if apply_mask:
        in_specs.append(pl.BlockSpec((tn, D), lambda t, idx: (t, 0)))
        args.append(mask_padded)

    return pl.pallas_call(
        _make_kernel(tn, apply_mask),
        out_shape=jax.ShapeDtypeStruct((B, num_patches, D), patches_bnd.dtype),
        grid_spec=pltpu.PrefetchScalarGridSpec(
            num_scalar_prefetch=1,                        # patch indices -> SMEM
            grid=(nt,),
            in_specs=in_specs,
            # output written directly in (B, num_patches, D) layout; dense blocks
            out_specs=pl.BlockSpec((B, tn, D), lambda t, idx: (0, t, 0)),
            scratch_shapes=[
                pltpu.VMEM((B, tn, D), patches_bnd.dtype),
                pltpu.SemaphoreType.DMA((tn,)),
            ]),
        compiler_params=pltpu.CompilerParams(
            dimension_semantics=("parallel",)),           # patch tiles are independent
    )(*args)


# ------------------------------ module (JAX) --------------------------------

class MaskedPatchifyJAX:
    """JAX/Pallas port of MaskedPatchify (forward path, 'raster' ordering)."""

    def __init__(self, mask_np: np.ndarray, patch_size: int = 8,
                 num_channels: int = 1, ordering: str = "raster"):
        assert mask_np.ndim == 2
        assert ordering == "raster"  # TODO(synk): radial/reverse_radial/random only change the init-time permutation
        mask_np = np.asarray(mask_np) > 0
        H, W = mask_np.shape
        self.patch_size = patch_size
        self.num_channels = num_channels
        self.height, self.width = H, W
        self.dim = num_channels * patch_size ** 2
        self.padding = _infer_padding(H, W, multiple=patch_size)

        # patch mask of the mask itself (same path as forward_raw on the mask)
        mask_img = jnp.broadcast_to(
            jnp.asarray(mask_np, jnp.float32)[None, None], (1, num_channels, H, W))
        patch_mask_all = np.asarray(
            _to_patches(_pad_nchw(mask_img, self.padding), patch_size))[0] > 0.5
        self.num_total_patches = patch_mask_all.shape[0]

        patch_indices = np.where(np.any(patch_mask_all, axis=1))[0].astype(np.int32)
        self.num_patches = len(patch_indices)
        assert self.num_patches > 0
        order = np.arange(self.num_patches)                  # raster ordering
        patch_indices = patch_indices[order]

        self._patch_indices_np = patch_indices
        self._patch_mask_np = patch_mask_all[patch_indices].astype(np.float32)

        # public buffers mirroring the torch module
        self.mask = jnp.asarray(mask_np)
        self.patch_indices = jnp.asarray(patch_indices, jnp.int32)
        self.patch_mask = jnp.asarray(patch_mask_all[patch_indices])   # (N, D) bool
        self.order = jnp.asarray(order, jnp.int32)
        self.ranking = jnp.asarray(np.argsort(order), jnp.int32)

        self._idx_cache = {}      # tn -> padded int32 indices
        self._mask_cache = {}     # (tn, dtype) -> padded float mask

    # TODO(synk): inverse()/inverse_vector() (scatter back to image) not ported.

    # --------------------------- tile-size / caches --------------------------

    def _choose_tile(self, batch: int, dtype) -> int:
        item = np.dtype(dtype).itemsize
        sub = max(8, 32 // item)              # 8 for f32, 16 for bf16, 32 for int8
        # VMEM use per step: 2 pipelined output bufs + 1 gather scratch of
        # (B, tn, D) plus 2 pipelined mask bufs of (tn, D). Budget 6 MiB so it
        # fits the v7x scoped-VMEM default (32 MiB of 64 MiB physical) with
        # plenty of headroom — do not size against v5e/v6e's 128 MiB.
        budget = 6 * 1024 * 1024
        denom = (3 * batch + 2) * self.dim * item
        tn = max(sub, (budget // denom) // sub * sub)
        tn = min(tn, 32, _round_up(self.num_patches, sub))   # 32 caps unrolled DMA count
        return int(tn)

    def _padded_indices(self, tn: int):
        idx = self._idx_cache.get(tn)
        if idx is None:
            npad = _round_up(self.num_patches, tn)
            pad = np.zeros(npad - self.num_patches, dtype=np.int32)   # safe in-bounds pad
            idx = jnp.asarray(np.concatenate([self._patch_indices_np, pad]), jnp.int32)
            self._idx_cache[tn] = idx
        return idx

    def _padded_mask(self, tn: int, dtype):
        key = (tn, np.dtype(dtype).name)
        m = self._mask_cache.get(key)
        if m is None:
            npad = _round_up(self.num_patches, tn)
            mp = np.zeros((npad, self.dim), dtype=np.float32)
            mp[: self.num_patches] = self._patch_mask_np
            m = jnp.asarray(mp, dtype)
            self._mask_cache[key] = m
        return m

    # -------------------------------- forward --------------------------------

    def forward_raw(self, images):
        if self.num_channels == 1 and images.ndim == 3:
            images = images[:, None]
        assert images.ndim == 4
        return _to_patches(_pad_nchw(images, self.padding), self.patch_size)

    def forward(self, images, apply_mask: bool = True):
        """images (B, C, H, W) -> patches (B, num_patches, D)."""
        patches = self.forward_raw(images)                  # (B, N_total, D)
        B = patches.shape[0]
        tn = self._choose_tile(B, patches.dtype)
        idx = self._padded_indices(tn)
        mask = self._padded_mask(tn, patches.dtype) if apply_mask else None
        return gather_and_mask(patches, idx, mask, self.num_patches, tn)


# ---------------------------------- main ------------------------------------

if __name__ == "__main__":
    B, C, H, W, P = 2, 4, 64, 64, 8   # D = C*P*P = 256, 8x8 = 64 total patches

    # deterministic circular mask (radius 28) -> 52 of 64 patches selected
    yy, xx = np.meshgrid(np.arange(H), np.arange(W), indexing="ij")
    mask_np = ((yy - H / 2 + 0.5) ** 2 + (xx - W / 2 + 0.5) ** 2) <= 28.0 ** 2

    module = MaskedPatchifyJAX(mask_np, patch_size=P, num_channels=C, ordering="raster")

    key = jax.random.PRNGKey(0)
    images = jax.random.normal(key, (B, C, H, W), dtype=jnp.float32)

    out = jax.block_until_ready(module.forward(images))                        # gather + mask
    out_raw = jax.block_until_ready(module.forward(images, apply_mask=False))  # gather only

    # pure-JAX / numpy reference for the same forward semantics
    ref_all = np.asarray(module.forward_raw(images))
    idx_np = np.asarray(module.patch_indices)
    ref_gather = ref_all[:, idx_np, :]
    ref_masked = ref_gather * np.asarray(module.patch_mask).astype(np.float32)[None]

    np.testing.assert_allclose(np.asarray(out), ref_masked, rtol=1e-6, atol=1e-6)
    np.testing.assert_allclose(np.asarray(out_raw), ref_gather, rtol=1e-6, atol=1e-6)
    assert out.shape == (B, module.num_patches, module.dim)

    print("KERNEL_OK")
</pallas_src>

<mosaic_0001>
module attributes {stable_mosaic.version = 11 : i64} {
  func.func @kernel(%arg0: i32, %arg1: memref<64xi32, #tpu.memory_space<smem>>, %arg2: memref<2x64x256xf32, #tpu.memory_space<any>>, %arg3: memref<32x256xf32, #tpu.memory_space<vmem>>, %arg4: memref<2x32x256xf32, #tpu.memory_space<vmem>>, %arg5: memref<2x32x256xf32, #tpu.memory_space<vmem>>, %arg6: memref<32x!tpu.dma_semaphore, #tpu.memory_space<semaphore_mem>>) attributes {dimension_semantics = [#tpu.dimension_semantics<parallel>], iteration_bounds = array<i64: 2>, scalar_prefetch = 1 : i64, scratch_operands = 2 : i64, tpu.core_type = #tpu.core_type<tc>, window_params = [{}, {transform_indices = @transform_1, window_bounds = array<i64: 32, 256>}, {transform_indices = @transform_2, window_bounds = array<i64: 2, 32, 256>}]} {
    %c32_i32 = arith.constant 32 : i32
    %0 = arith.muli %arg0, %c32_i32 : i32
    %c0_i32 = arith.constant 0 : i32
    %1 = arith.addi %0, %c0_i32 : i32
    %2 = arith.index_cast %1 : i32 to index
    %3 = memref.load %arg1[%2] : memref<64xi32, #tpu.memory_space<smem>>
    %c0_i32_0 = arith.constant 0 : i32
    %c0_i32_1 = arith.constant 0 : i32
    %c0_i32_2 = arith.constant 0 : i32
    %4 = tpu.memref_slice %arg2[%c0_i32_1, %3, %c0_i32_2] : memref<2x64x256xf32, #tpu.memory_space<any>> -> memref<2x1x256xf32, #tpu.memory_space<any>>
    %c0_i32_3 = arith.constant 0 : i32
    %c0_i32_4 = arith.constant 0 : i32
    %c0_i32_5 = arith.constant 0 : i32
    %5 = tpu.memref_slice %arg5[%c0_i32_3, %c0_i32_4, %c0_i32_5] : memref<2x32x256xf32, #tpu.memory_space<vmem>> -> memref<2x1x256xf32, #tpu.memory_space<vmem>>
    %6 = tpu.memref_slice %arg6[%c0_i32_0] : memref<32x!tpu.dma_semaphore, #tpu.memory_space<semaphore_mem>> -> memref<1x!tpu.dma_semaphore, #tpu.memory_space<semaphore_mem>>
    %7 = tpu.memref_squeeze %6 : memref<1x!tpu.dma_semaphore, #tpu.memory_space<semaphore_mem>> -> memref<!tpu.dma_semaphore, #tpu.memory_space<semaphore_mem>>
    tpu.enqueue_dma source(%4 : memref<2x1x256xf32, #tpu.memory_space<any>>) target(%5 : memref<2x1x256xf32, #tpu.memory_space<vmem>>) target_semaphore(%7 : memref<!tpu.dma_semaphore, #tpu.memory_space<semaphore_mem>>)
    %c1_i32 = arith.constant 1 : i32
    %8 = arith.addi %0, %c1_i32 : i32
    %9 = arith.index_cast %8 : i32 to index
    %10 = memref.load %arg1[%9] : memref<64xi32, #tpu.memory_space<smem>>
    %c1_i32_6 = arith.constant 1 : i32
    %c0_i32_7 = arith.constant 0 : i32
    %c0_i32_8 = arith.constant 0 : i32
    %11 = tpu.memref_slice %arg2[%c0_i32_7, %10, %c0_i32_8] : memref<2x64x256xf32, #tpu.memory_space<any>> -> memref<2x1x256xf32, #tpu.memory_space<any>>
    %c0_i32_9 = arith.constant 0 : i32
    %c1_i32_10 = arith.constant 1 : i32
    %c0_i32_11 = arith.constant 0 : i32
    %12 = tpu.memref_slice %arg5[%c0_i32_9, %c1_i32_10, %c0_i32_11] : memref<2x32x256xf32, #tpu.memory_space<vmem>> -> memref<2x1x256xf32, #tpu.memory_space<vmem>>
    %13 = tpu.memref_slice %arg6[%c1_i32_6] : memref<32x!tpu.dma_semaphore, #tpu.memory_space<semaphore_mem>> -> memref<1x!tpu.dma_semaphore, #tpu.memory_space<semaphore_mem>>
    %14 = tpu.memref_squeeze %13 : memref<1x!tpu.dma_semaphore, #tpu.memory_space<semaphore_mem>> -> memref<!tpu.dma_semaphore, #tpu.memory_space<semaphore_mem>>
    tpu.enqueue_dma source(%11 : memref<2x1x256xf32, #tpu.memory_space<any>>) target(%12 : memref<2x1x256xf32, #tpu.memory_space<vmem>>) target_semaphore(%14 : memref<!tpu.dma_semaphore, #tpu.memory_space<semaphore_mem>>)
    %c2_i32 = arith.constant 2 : i32
    %15 = arith.addi %0, %c2_i32 : i32
    %16 = arith.index_cast %15 : i32 to index
    %17 = memref.load %arg1[%16] : memref<64xi32, #tpu.memory_space<smem>>
    %c2_i32_12 = arith.constant 2 : i32
    %c0_i32_13 = arith.constant 0 : i32
    %c0_i32_14 = arith.constant 0 : i32
    %18 = tpu.memref_slice %arg2[%c0_i32_13, %17, %c0_i32_14] : memref<2x64x256xf32, #tpu.memory_space<any>> -> memref<2x1x256xf32, #tpu.memory_space<any>>
    %c0_i32_15 = arith.constant 0 : i32
    %c2_i32_16 = arith.constant 2 : i32
    %c0_i32_17 = arith.constant 0 : i32
    %19 = tpu.memref_slice %arg5[%c0_i32_15, %c2_i32_16, %c0_i32_17] : memref<2x32x256xf32, #tpu.memory_space<vmem>> -> memref<2x1x256xf32, #tpu.memory_space<vmem>>
    %20 = tpu.memref_slice %arg6[%c2_i32_12] : memref<32x!tpu.dma_semaphore, #tpu.memory_space<semaphore_mem>> -> memref<1x!tpu.dma_semaphore, #tpu.memory_space<semaphore_mem>>
    %21 = tpu.memref_squeeze %20 : memref<1x!tpu.dma_semaphore, #tpu.memory_space<semaphore_mem>> -> memref<!tpu.dma_semaphore, #tpu.memory_space<semaphore_mem>>
    tpu.enqueue_dma source(%18 : memref<2x1x256xf32, #tpu.memory_space<any>>) target(%19 : memref<2x1x256xf32, #tpu.memory_space<vmem>>) target_semaphore(%21 : memref<!tpu.dma_semaphore, #tpu.memory_space<semaphore_mem>>)
    %c3_i32 = arith.constant 3 : i32
    %22 = arith.addi %0, %c3_i32 : i32
    %23 = arith.index_cast %22 : i32 to index
    %24 = memref.load %arg1[%23] : memref<64xi32, #tpu.memory_space<smem>>
    %c3_i32_18 = arith.constant 3 : i32
    %c0_i32_19 = arith.constant 0 : i32
    %c0_i32_20 = arith.constant 0 : i32
    %25 = tpu.memref_slice %arg2[%c0_i32_19, %24, %c0_i32_20] : memref<2x64x256xf32, #tpu.memory_space<any>> -> memref<2x1x256xf32, #tpu.memory_space<any>>
    %c0_i32_21 = arith.constant 0 : i32
    %c3_i32_22 = arith.constant 3 : i32
    %c0_i32_23 = arith.constant 0 : i32
    %26 = tpu.memref_slice %arg5[%c0_i32_21, %c3_i32_22, %c0_i32_23] : memref<2x32x256xf32, #tpu.memory_space<vmem>> -> memref<2x1x256xf32, #tpu.memory_space<vmem>>
    %27 = tpu.memref_slice %arg6[%c3_i32_18] : memref<32x!tpu.dma_semaphore, #tpu.memory_space<semaphore_mem>> -> memref<1x!tpu.dma_semaphore, #tpu.memory_space<semaphore_mem>>
    %28 = tpu.memref_squeeze %27 : memref<1x!tpu.dma_semaphore, #tpu.memory_space<semaphore_mem>> -> memref<!tpu.dma_semaphore, #tpu.memory_space<semaphore_mem>>
    tpu.enqueue_dma source(%25 : memref<2x1x256xf32, #tpu.memory_space<any>>) target(%26 : memref<2x1x256xf32, #tpu.memory_space<vmem>>) target_semaphore(%28 : memref<!tpu.dma_semaphore, #tpu.memory_space<semaphore_mem>>)
    %c4_i32 = arith.constant 4 : i32
    %29 = arith.addi %0, %c4_i32 : i32
    %30 = arith.index_cast %29 : i32 to index
    %31 = memref.load %arg1[%30] : memref<64xi32, #tpu.memory_space<smem>>
    %c4_i32_24 = arith.constant 4 : i32
    %c0_i32_25 = arith.constant 0 : i32
    %c0_i32_26 = arith.constant 0 : i32
    %32 = tpu.memref_slice %arg2[%c0_i32_25, %31, %c0_i32_26] : memref<2x64x256xf32, #tpu.memory_space<any>> -> memref<2x1x256xf32, #tpu.memory_space<any>>
    %c0_i32_27 = arith.constant 0 : i32
    %c4_i32_28 = arith.constant 4 : i32
    %c0_i32_29 = arith.constant 0 : i32
    %33 = tpu.memref_slice %arg5[%c0_i32_27, %c4_i32_28, %c0_i32_29] : memref<2x32x256xf32, #tpu.memory_space<vmem>> -> memref<2x1x256xf32, #tpu.memory_space<vmem>>
    %34 = tpu.memref_slice %arg6[%c4_i32_24] : memref<32x!tpu.dma_semaphore, #tpu.memory_space<semaphore_mem>> -> memref<1x!tpu.dma_semaphore, #tpu.memory_space<semaphore_mem>>
    %35 = tpu.memref_squeeze %34 : memref<1x!tpu.dma_semaphore, #tpu.memory_space<semaphore_mem>> -> memref<!tpu.dma_semaphore, #tpu.memory_space<semaphore_mem>>
    tpu.enqueue_dma source(%32 : memref<2x1x256xf32, #tpu.memory_space<any>>) target(%33 : memref<2x1x256xf32, #tpu.memory_space<vmem>>) target_semaphore(%35 : memref<!tpu.dma_semaphore, #tpu.memory_space<semaphore_mem>>)
    %c5_i32 = arith.constant 5 : i32
    %36 = arith.addi %0, %c5_i32 : i32
    %37 = arith.index_cast %36 : i32 to index
    %38 = memref.load %arg1[%37] : memref<64xi32, #tpu.memory_space<smem>>
    %c5_i32_30 = arith.constant 5 : i32
    %c0_i32_31 = arith.constant 0 : i32
    %c0_i32_32 = arith.constant 0 : i32
    %39 = tpu.memref_slice %arg2[%c0_i32_31, %38, %c0_i32_32] : memref<2x64x256xf32, #tpu.memory_space<any>> -> memref<2x1x256xf32, #tpu.memory_space<any>>
    %c0_i32_33 = arith.constant 0 : i32
    %c5_i32_34 = arith.constant 5 : i32
    %c0_i32_35 = arith.constant 0 : i32
    %40 = tpu.memref_slice %arg5[%c0_i32_33, %c5_i32_34, %c0_i32_35] : memref<2x32x256xf32, #tpu.memory_space<vmem>> -> memref<2x1x256xf32, #tpu.memory_space<vmem>>
    %41 = tpu.memref_slice %arg6[%c5_i32_30] : memref<32x!tpu.dma_semaphore, #tpu.memory_space<semaphore_mem>> -> memref<1x!tpu.dma_semaphore, #tpu.memory_space<semaphore_mem>>
    %42 = tpu.memref_squeeze %41 : memref<1x!tpu.dma_semaphore, #tpu.memory_space<semaphore_mem>> -> memref<!tpu.dma_semaphore, #tpu.memory_space<semaphore_mem>>
    tpu.enqueue_dma source(%39 : memref<2x1x256xf32, #tpu.memory_space<any>>) target(%40 : memref<2x1x256xf32, #tpu.memory_space<vmem>>) target_semaphore(%42 : memref<!tpu.dma_semaphore, #tpu.memory_space<semaphore_mem>>)
    %c6_i32 = arith.constant 6 : i32
    %43 = arith.addi %0, %c6_i32 : i32
    %44 = arith.index_cast %43 : i32 to index
    %45 = memref.load %arg1[%44] : memref<64xi32, #tpu.memory_space<smem>>
    %c6_i32_36 = arith.constant 6 : i32
    %c0_i32_37 = arith.constant 0 : i32
    %c0_i32_38 = arith.constant 0 : i32
    %46 = tpu.memref_slice %arg2[%c0_i32_37, %45, %c0_i32_38] : memref<2x64x256xf32, #tpu.memory_space<any>> -> memref<2x1x256xf32, #tpu.memory_space<any>>
    %c0_i32_39 = arith.constant 0 : i32
    %c6_i32_40 = arith.constant 6 : i32
    %c0_i32_41 = arith.constant 0 : i32
    %47 = tpu.memref_slice %arg5[%c0_i32_39, %c6_i32_40, %c0_i32_41] : memref<2x32x256xf32, #tpu.memory_space<vmem>> -> memref<2x1x256xf32, #tpu.memory_space<vmem>>
    %48 = tpu.memref_slice %arg6[%c6_i32_36] : memref<32x!tpu.dma_semaphore, #tpu.memory_space<semaphore_mem>> -> memref<1x!tpu.dma_semaphore, #tpu.memory_space<semaphore_mem>>
    %49 = tpu.memref_squeeze %48 : memref<1x!tpu.dma_semaphore, #tpu.memory_space<semaphore_mem>> -> memref<!tpu.dma_semaphore, #tpu.memory_space<semaphore_mem>>
    tpu.enqueue_dma source(%46 : memref<2x1x256xf32, #tpu.memory_space<any>>) target(%47 : memref<2x1x256xf32, #tpu.memory_space<vmem>>) target_semaphore(%49 : memref<!tpu.dma_semaphore, #tpu.memory_space<semaphore_mem>>)
    %c7_i32 = arith.constant 7 : i32
    %50 = arith.addi %0, %c7_i32 : i32
    %51 = arith.index_cast %50 : i32 to index
    %52 = memref.load %arg1[%51] : memref<64xi32, #tpu.memory_space<smem>>
    %c7_i32_42 = arith.constant 7 : i32
    %c0_i32_43 = arith.constant 0 : i32
    %c0_i32_44 = arith.constant 0 : i32
    %53 = tpu.memref_slice %arg2[%c0_i32_43, %52, %c0_i32_44] : memref<2x64x256xf32, #tpu.memory_space<any>> -> memref<2x1x256xf32, #tpu.memory_space<any>>
    %c0_i32_45 = arith.constant 0 : i32
    %c7_i32_46 = arith.constant 7 : i32
    %c0_i32_47 = arith.constant 0 : i32
    %54 = tpu.memref_slice %arg5[%c0_i32_45, %c7_i32_46, %c0_i32_47] : memref<2x32x256xf32, #tpu.memory_space<vmem>> -> memref<2x1x256xf32, #tpu.memory_space<vmem>>
    %55 = tpu.memref_slice %arg6[%c7_i32_42] : memref<32x!tpu.dma_semaphore, #tpu.memory_space<semaphore_mem>> -> memref<1x!tpu.dma_semaphore, #tpu.memory_space<semaphore_mem>>
    %56 = tpu.memref_squeeze %55 : memref<1x!tpu.dma_semaphore, #tpu.memory_space<semaphore_mem>> -> memref<!tpu.dma_semaphore, #tpu.memory_space<semaphore_mem>>
    tpu.enqueue_dma source(%53 : memref<2x1x256xf32, #tpu.memory_space<any>>) target(%54 : memref<2x1x256xf32, #tpu.memory_space<vmem>>) target_semaphore(%56 : memref<!tpu.dma_semaphore, #tpu.memory_space<semaphore_mem>>)
    %c8_i32 = arith.constant 8 : i32
    %57 = arith.addi %0, %c8_i32 : i32
    %58 = arith.index_cast %57 : i32 to index
    %59 = memref.load %arg1[%58] : memref<64xi32, #tpu.memory_space<smem>>
    %c8_i32_48 = arith.constant 8 : i32
    %c0_i32_49 = arith.constant 0 : i32
    %c0_i32_50 = arith.constant 0 : i32
    %60 = tpu.memref_slice %arg2[%c0_i32_49, %59, %c0_i32_50] : memref<2x64x256xf32, #tpu.memory_space<any>> -> memref<2x1x256xf32, #tpu.memory_space<any>>
    %c0_i32_51 = arith.constant 0 : i32
    %c8_i32_52 = arith.constant 8 : i32
    %c0_i32_53 = arith.constant 0 : i32
    %61 = tpu.memref_slice %arg5[%c0_i32_51, %c8_i32_52, %c0_i32_53] : memref<2x32x256xf32, #tpu.memory_space<vmem>> -> memref<2x1x256xf32, #tpu.memory_space<vmem>>
    %62 = tpu.memref_slice %arg6[%c8_i32_48] : memref<32x!tpu.dma_semaphore, #tpu.memory_space<semaphore_mem>> -> memref<1x!tpu.dma_semaphore, #tpu.memory_space<semaphore_mem>>
    %63 = tpu.memref_squeeze %62 : memref<1x!tpu.dma_semaphore, #tpu.memory_space<semaphore_mem>> -> memref<!tpu.dma_semaphore, #tpu.memory_space<semaphore_mem>>
    tpu.enqueue_dma source(%60 : memref<2x1x256xf32, #tpu.memory_space<any>>) target(%61 : memref<2x1x256xf32, #tpu.memory_space<vmem>>) target_semaphore(%63 : memref<!tpu.dma_semaphore, #tpu.memory_space<semaphore_mem>>)
    %c9_i32 = arith.constant 9 : i32
    %64 = arith.addi %0, %c9_i32 : i32
    %65 = arith.index_cast %64 : i32 to index
    %66 = memref.load %arg1[%65] : memref<64xi32, #tpu.memory_space<smem>>
    %c9_i32_54 = arith.constant 9 : i32
    %c0_i32_55 = arith.constant 0 : i32
    %c0_i32_56 = arith.constant 0 : i32
    %67 = tpu.memref_slice %arg2[%c0_i32_55, %66, %c0_i32_56] : memref<2x64x256xf32, #tpu.memory_space<any>> -> memref<2x1x256xf32, #tpu.memory_space<any>>
    %c0_i32_57 = arith.constant 0 : i32
    %c9_i32_58 = arith.constant 9 : i32
    %c0_i32_59 = arith.constant 0 : i32
    %68 = tpu.memref_slice %arg5[%c0_i32_57, %c9_i32_58, %c0_i32_59] : memref<2x32x256xf32, #tpu.memory_space<vmem>> -> memref<2x1x256xf32, #tpu.memory_space<vmem>>
    %69 = tpu.memref_slice %arg6[%c9_i32_54] : memref<32x!tpu.dma_semaphore, #tpu.memory_space<semaphore_mem>> -> memref<1x!tpu.dma_semaphore, #tpu.memory_space<semaphore_mem>>
    %70 = tpu.memref_squeeze %69 : memref<1x!tpu.dma_semaphore, #tpu.memory_space<semaphore_mem>> -> memref<!tpu.dma_semaphore, #tpu.memory_space<semaphore_mem>>
    tpu.enqueue_dma source(%67 : memref<2x1x256xf32, #tpu.memory_space<any>>) target(%68 : memref<2x1x256xf32, #tpu.memory_space<vmem>>) target_semaphore(%70 : memref<!tpu.dma_semaphore, #tpu.memory_space<semaphore_mem>>)
    %c10_i32 = arith.constant 10 : i32
    %71 = arith.addi %0, %c10_i32 : i32
    %72 = arith.index_cast %71 : i32 to index
    %73 = memref.load %arg1[%72] : memref<64xi32, #tpu.memory_space<smem>>
    %c10_i32_60 = arith.constant 10 : i32
    %c0_i32_61 = arith.constant 0 : i32
    %c0_i32_62 = arith.constant 0 : i32
    %74 = tpu.memref_slice %arg2[%c0_i32_61, %73, %c0_i32_62] : memref<2x64x256xf32, #tpu.memory_space<any>> -> memref<2x1x256xf32, #tpu.memory_space<any>>
    %c0_i32_63 = arith.constant 0 : i32
    %c10_i32_64 = arith.constant 10 : i32
    %c0_i32_65 = arith.constant 0 : i32
    %75 = tpu.memref_slice %arg5[%c0_i32_63, %c10_i32_64, %c0_i32_65] : memref<2x32x256xf32, #tpu.memory_space<vmem>> -> memref<2x1x256xf32, #tpu.memory_space<vmem>>
    %76 = tpu.memref_slice %arg6[%c10_i32_60] : memref<32x!tpu.dma_semaphore, #tpu.memory_space<semaphore_mem>> -> memref<1x!tpu.dma_semaphore, #tpu.memory_space<semaphore_mem>>
    %77 = tpu.memref_squeeze %76 : memref<1x!tpu.dma_semaphore, #tpu.memory_space<semaphore_mem>> -> memref<!tpu.dma_semaphore, #tpu.memory_space<semaphore_mem>>
    tpu.enqueue_dma source(%74 : memref<2x1x256xf32, #tpu.memory_space<any>>) target(%75 : memref<2x1x256xf32, #tpu.memory_space<vmem>>) target_semaphore(%77 : memref<!tpu.dma_semaphore, #tpu.memory_space<semaphore_mem>>)
    %c11_i32 = arith.constant 11 : i32
    %78 = arith.addi %0, %c11_i32 : i32
    %79 = arith.index_cast %78 : i32 to index
    %80 = memref.load %arg1[%79] : memref<64xi32, #tpu.memory_space<smem>>
    %c11_i32_66 = arith.constant 11 : i32
    %c0_i32_67 = arith.constant 0 : i32
    %c0_i32_68 = arith.constant 0 : i32
    %81 = tpu.memref_slice %arg2[%c0_i32_67, %80, %c0_i32_68] : memref<2x64x256xf32, #tpu.memory_space<any>> -> memref<2x1x256xf32, #tpu.memory_space<any>>
    %c0_i32_69 = arith.constant 0 : i32
    %c11_i32_70 = arith.constant 11 : i32
    %c0_i32_71 = arith.constant 0 : i32
    %82 = tpu.memref_slice %arg5[%c0_i32_69, %c11_i32_70, %c0_i32_71] : memref<2x32x256xf32, #tpu.memory_space<vmem>> -> memref<2x1x256xf32, #tpu.memory_space<vmem>>
    %83 = tpu.memref_slice %arg6[%c11_i32_66] : memref<32x!tpu.dma_semaphore, #tpu.memory_space<semaphore_mem>> -> memref<1x!tpu.dma_semaphore, #tpu.memory_space<semaphore_mem>>
    %84 = tpu.memref_squeeze %83 : memref<1x!tpu.dma_semaphore, #tpu.memory_space<semaphore_mem>> -> memref<!tpu.dma_semaphore, #tpu.memory_space<semaphore_mem>>
    tpu.enqueue_dma source(%81 : memref<2x1x256xf32, #tpu.memory_space<any>>) target(%82 : memref<2x1x256xf32, #tpu.memory_space<vmem>>) target_semaphore(%84 : memref<!tpu.dma_semaphore, #tpu.memory_space<semaphore_mem>>)
    %c12_i32 = arith.constant 12 : i32
    %85 = arith.addi %0, %c12_i32 : i32
    %86 = arith.index_cast %85 : i32 to index
    %87 = memref.load %arg1[%86] : memref<64xi32, #tpu.memory_space<smem>>
    %c12_i32_72 = arith.constant 12 : i32
    %c0_i32_73 = arith.constant 0 : i32
    %c0_i32_74 = arith.constant 0 : i32
    %88 = tpu.memref_slice %arg2[%c0_i32_73, %87, %c0_i32_74] : memref<2x64x256xf32, #tpu.memory_space<any>> -> memref<2x1x256xf32, #tpu.memory_space<any>>
    %c0_i32_75 = arith.constant 0 : i32
    %c12_i32_76 = arith.constant 12 : i32
    %c0_i32_77 = arith.constant 0 : i32
    %89 = tpu.memref_slice %arg5[%c0_i32_75, %c12_i32_76, %c0_i32_77] : memref<2x32x256xf32, #tpu.memory_space<vmem>> -> memref<2x1x256xf32, #tpu.memory_space<vmem>>
    %90 = tpu.memref_slice %arg6[%c12_i32_72] : memref<32x!tpu.dma_semaphore, #tpu.memory_space<semaphore_mem>> -> memref<1x!tpu.dma_semaphore, #tpu.memory_space<semaphore_mem>>
    %91 = tpu.memref_squeeze %90 : memref<1x!tpu.dma_semaphore, #tpu.memory_space<semaphore_mem>> -> memref<!tpu.dma_semaphore, #tpu.memory_space<semaphore_mem>>
    tpu.enqueue_dma source(%88 : memref<2x1x256xf32, #tpu.memory_space<any>>) target(%89 : memref<2x1x256xf32, #tpu.memory_space<vmem>>) target_semaphore(%91 : memref<!tpu.dma_semaphore, #tpu.memory_space<semaphore_mem>>)
    %c13_i32 = arith.constant 13 : i32
    %92 = arith.addi %0, %c13_i32 : i32
    %93 = arith.index_cast %92 : i32 to index
    %94 = memref.load %arg1[%93] : memref<64xi32, #tpu.memory_space<smem>>
    %c13_i32_78 = arith.constant 13 : i32
    %c0_i32_79 = arith.constant 0 : i32
    %c0_i32_80 = arith.constant 0 : i32
    %95 = tpu.memref_slice %arg2[%c0_i32_79, %94, %c0_i32_80] : memref<2x64x256xf32, #tpu.memory_space<any>> -> memref<2x1x256xf32, #tpu.memory_space<any>>
    %c0_i32_81 = arith.constant 0 : i32
    %c13_i32_82 = arith.constant 13 : i32
    %c0_i32_83 = arith.constant 0 : i32
    %96 = tpu.memref_slice %arg5[%c0_i32_81, %c13_i32_82, %c0_i32_83] : memref<2x32x256xf32, #tpu.memory_space<vmem>> -> memref<2x1x256xf32, #tpu.memory_space<vmem>>
    %97 = tpu.memref_slice %arg6[%c13_i32_78] : memref<32x!tpu.dma_semaphore, #tpu.memory_space<semaphore_mem>> -> memref<1x!tpu.dma_semaphore, #tpu.memory_space<semaphore_mem>>
    %98 = tpu.memref_squeeze %97 : memref<1x!tpu.dma_semaphore, #tpu.memory_space<semaphore_mem>> -> memref<!tpu.dma_semaphore, #tpu.memory_space<semaphore_mem>>
    tpu.enqueue_dma source(%95 : memref<2x1x256xf32, #tpu.memory_space<any>>) target(%96 : memref<2x1x256xf32, #tpu.memory_space<vmem>>) target_semaphore(%98 : memref<!tpu.dma_semaphore, #tpu.memory_space<semaphore_mem>>)
    %c14_i32 = arith.constant 14 : i32
    %99 = arith.addi %0, %c14_i32 : i32
    %100 = arith.index_cast %99 : i32 to index
    %101 = memref.load %arg1[%100] : memref<64xi32, #tpu.memory_space<smem>>
    %c14_i32_84 = arith.constant 14 : i32
    %c0_i32_85 = arith.constant 0 : i32
    %c0_i32_86 = arith.constant 0 : i32
    %102 = tpu.memref_slice %arg2[%c0_i32_85, %101, %c0_i32_86] : memref<2x64x256xf32, #tpu.memory_space<any>> -> memref<2x1x256xf32, #tpu.memory_space<any>>
    %c0_i32_87 = arith.constant 0 : i32
    %c14_i32_88 = arith.constant 14 : i32
    %c0_i32_89 = arith.constant 0 : i32
    %103 = tpu.memref_slice %arg5[%c0_i32_87, %c14_i32_88, %c0_i32_89] : memref<2x32x256xf32, #tpu.memory_space<vmem>> -> memref<2x1x256xf32, #tpu.memory_space<vmem>>
    %104 = tpu.memref_slice %arg6[%c14_i32_84] : memref<32x!tpu.dma_semaphore, #tpu.memory_space<semaphore_mem>> -> memref<1x!tpu.dma_semaphore, #tpu.memory_space<semaphore_mem>>
    %105 = tpu.memref_squeeze %104 : memref<1x!tpu.dma_semaphore, #tpu.memory_space<semaphore_mem>> -> memref<!tpu.dma_semaphore, #tpu.memory_space<semaphore_mem>>
    tpu.enqueue_dma source(%102 : memref<2x1x256xf32, #tpu.memory_space<any>>) target(%103 : memref<2x1x256xf32, #tpu.memory_space<vmem>>) target_semaphore(%105 : memref<!tpu.dma_semaphore, #tpu.memory_space<semaphore_mem>>)
    %c15_i32 = arith.constant 15 : i32
    %106 = arith.addi %0, %c15_i32 : i32
    %107 = arith.index_cast %106 : i32 to index
    %108 = memref.load %arg1[%107] : memref<64xi32, #tpu.memory_space<smem>>
    %c15_i32_90 = arith.constant 15 : i32
    %c0_i32_91 = arith.constant 0 : i32
    %c0_i32_92 = arith.constant 0 : i32
    %109 = tpu.memref_slice %arg2[%c0_i32_91, %108, %c0_i32_92] : memref<2x64x256xf32, #tpu.memory_space<any>> -> memref<2x1x256xf32, #tpu.memory_space<any>>
    %c0_i32_93 = arith.constant 0 : i32
    %c15_i32_94 = arith.constant 15 : i32
    %c0_i32_95 = arith.constant 0 : i32
    %110 = tpu.memref_slice %arg5[%c0_i32_93, %c15_i32_94, %c0_i32_95] : memref<2x32x256xf32, #tpu.memory_space<vmem>> -> memref<2x1x256xf32, #tpu.memory_space<vmem>>
    %111 = tpu.memref_slice %arg6[%c15_i32_90] : memref<32x!tpu.dma_semaphore, #tpu.memory_space<semaphore_mem>> -> memref<1x!tpu.dma_semaphore, #tpu.memory_space<semaphore_mem>>
    %112 = tpu.memref_squeeze %111 : memref<1x!tpu.dma_semaphore, #tpu.memory_space<semaphore_mem>> -> memref<!tpu.dma_semaphore, #tpu.memory_space<semaphore_mem>>
    tpu.enqueue_dma source(%109 : memref<2x1x256xf32, #tpu.memory_space<any>>) target(%110 : memref<2x1x256xf32, #tpu.memory_space<vmem>>) target_semaphore(%112 : memref<!tpu.dma_semaphore, #tpu.memory_space<semaphore_mem>>)
    %c16_i32 = arith.constant 16 : i32
    %113 = arith.addi %0, %c16_i32 : i32
    %114 = arith.index_cast %113 : i32 to index
    %115 = memref.load %arg1[%114] : memref<64xi32, #tpu.memory_space<smem>>
    %c16_i32_96 = arith.constant 16 : i32
    %c0_i32_97 = arith.constant 0 : i32
    %c0_i32_98 = arith.constant 0 : i32
    %116 = tpu.memref_slice %arg2[%c0_i32_97, %115, %c0_i32_98] : memref<2x64x256xf32, #tpu.memory_space<any>> -> memref<2x1x256xf32, #tpu.memory_space<any>>
    %c0_i32_99 = arith.constant 0 : i32
    %c16_i32_100 = arith.constant 16 : i32
    %c0_i32_101 = arith.constant 0 : i32
    %117 = tpu.memref_slice %arg5[%c0_i32_99, %c16_i32_100, %c0_i32_101] : memref<2x32x256xf32, #tpu.memory_space<vmem>> -> memref<2x1x256xf32, #tpu.memory_space<vmem>>
    %118 = tpu.memref_slice %arg6[%c16_i32_96] : memref<32x!tpu.dma_semaphore, #tpu.memory_space<semaphore_mem>> -> memref<1x!tpu.dma_semaphore, #tpu.memory_space<semaphore_mem>>
    %119 = tpu.memref_squeeze %118 : memref<1x!tpu.dma_semaphore, #tpu.memory_space<semaphore_mem>> -> memref<!tpu.dma_semaphore, #tpu.memory_space<semaphore_mem>>
    tpu.enqueue_dma source(%116 : memref<2x1x256xf32, #tpu.memory_space<any>>) target(%117 : memref<2x1x256xf32, #tpu.memory_space<vmem>>) target_semaphore(%119 : memref<!tpu.dma_semaphore, #tpu.memory_space<semaphore_mem>>)
    %c17_i32 = arith.constant 17 : i32
    %120 = arith.addi %0, %c17_i32 : i32
    %121 = arith.index_cast %120 : i32 to index
    %122 = memref.load %arg1[%121] : memref<64xi32, #tpu.memory_space<smem>>
    %c17_i32_102 = arith.constant 17 : i32
    %c0_i32_103 = arith.constant 0 : i32
    %c0_i32_104 = arith.constant 0 : i32
    %123 = tpu.memref_slice %arg2[%c0_i32_103, %122, %c0_i32_104] : memref<2x64x256xf32, #tpu.memory_space<any>> -> memref<2x1x256xf32, #tpu.memory_space<any>>
    %c0_i32_105 = arith.constant 0 : i32
    %c17_i32_106 = arith.constant 17 : i32
    %c0_i32_107 = arith.constant 0 : i32
    %124 = tpu.memref_slice %arg5[%c0_i32_105, %c17_i32_106, %c0_i32_107] : memref<2x32x256xf32, #tpu.memory_space<vmem>> -> memref<2x1x256xf32, #tpu.memory_space<vmem>>
    %125 = tpu.memref_slice %arg6[%c17_i32_102] : memref<32x!tpu.dma_semaphore, #tpu.memory_space<semaphore_mem>> -> memref<1x!tpu.dma_semaphore, #tpu.memory_space<semaphore_mem>>
    %126 = tpu.memref_squeeze %125 : memref<1x!tpu.dma_semaphore, #tpu.memory_space<semaphore_mem>> -> memref<!tpu.dma_semaphore, #tpu.memory_space<semaphore_mem>>
    tpu.enqueue_dma source(%123 : memref<2x1x256xf32, #tpu.memory_space<any>>) target(%124 : memref<2x1x256xf32, #tpu.memory_space<vmem>>) target_semaphore(%126 : memref<!tpu.dma_semaphore, #tpu.memory_space<semaphore_mem>>)
    %c18_i32 = arith.constant 18 : i32
    %127 = arith.addi %0, %c18_i32 : i32
    %128 = arith.index_cast %127 : i32 to index
    %129 = memref.load %arg1[%128] : memref<64xi32, #tpu.memory_space<smem>>
    %c18_i32_108 = arith.constant 18 : i32
    %c0_i32_109 = arith.constant 0 : i32
    %c0_i32_110 = arith.constant 0 : i32
    %130 = tpu.memref_slice %arg2[%c0_i32_109, %129, %c0_i32_110] : memref<2x64x256xf32, #tpu.memory_space<any>> -> memref<2x1x256xf32, #tpu.memory_space<any>>
    %c0_i32_111 = arith.constant 0 : i32
    %c18_i32_112 = arith.constant 18 : i32
    %c0_i32_113 = arith.constant 0 : i32
    %131 = tpu.memref_slice %arg5[%c0_i32_111, %c18_i32_112, %c0_i32_113] : memref<2x32x256xf32, #tpu.memory_space<vmem>> -> memref<2x1x256xf32, #tpu.memory_space<vmem>>
    %132 = tpu.memref_slice %arg6[%c18_i32_108] : memref<32x!tpu.dma_semaphore, #tpu.memory_space<semaphore_mem>> -> memref<1x!tpu.dma_semaphore, #tpu.memory_space<semaphore_mem>>
    %133 = tpu.memref_squeeze %132 : memref<1x!tpu.dma_semaphore, #tpu.memory_space<semaphore_mem>> -> memref<!tpu.dma_semaphore, #tpu.memory_space<semaphore_mem>>
    tpu.enqueue_dma source(%130 : memref<2x1x256xf32, #tpu.memory_space<any>>) target(%131 : memref<2x1x256xf32, #tpu.memory_space<vmem>>) target_semaphore(%133 : memref<!tpu.dma_semaphore, #tpu.memory_space<semaphore_mem>>)
    %c19_i32 = arith.constant 19 : i32
    %134 = arith.addi %0, %c19_i32 : i32
    %135 = arith.index_cast %134 : i32 to index
    %136 = memref.load %arg1[%135] : memref<64xi32, #tpu.memory_space<smem>>
    %c19_i32_114 = arith.constant 19 : i32
    %c0_i32_115 = arith.constant 0 : i32
    %c0_i32_116 = arith.constant 0 : i32
    %137 = tpu.memref_slice %arg2[%c0_i32_115, %136, %c0_i32_116] : memref<2x64x256xf32, #tpu.memory_space<any>> -> memref<2x1x256xf32, #tpu.memory_space<any>>
    %c0_i32_117 = arith.constant 0 : i32
    %c19_i32_118 = arith.constant 19 : i32
    %c0_i32_119 = arith.constant 0 : i32
    %138 = tpu.memref_slice %arg5[%c0_i32_117, %c19_i32_118, %c0_i32_119] : memref<2x32x256xf32, #tpu.memory_space<vmem>> -> memref<2x1x256xf32, #tpu.memory_space<vmem>>
    %139 = tpu.memref_slice %arg6[%c19_i32_114] : memref<32x!tpu.dma_semaphore, #tpu.memory_space<semaphore_mem>> -> memref<1x!tpu.dma_semaphore, #tpu.memory_space<semaphore_mem>>
    %140 = tpu.memref_squeeze %139 : memref<1x!tpu.dma_semaphore, #tpu.memory_space<semaphore_mem>> -> memref<!tpu.dma_semaphore, #tpu.memory_space<semaphore_mem>>
    tpu.enqueue_dma source(%137 : memref<2x1x256xf32, #tpu.memory_space<any>>) target(%138 : memref<2x1x256xf32, #tpu.memory_space<vmem>>) target_semaphore(%140 : memref<!tpu.dma_semaphore, #tpu.memory_space<semaphore_mem>>)
    %c20_i32 = arith.constant 20 : i32
    %141 = arith.addi %0, %c20_i32 : i32
    %142 = arith.index_cast %141 : i32 to index
    %143 = memref.load %arg1[%142] : memref<64xi32, #tpu.memory_space<smem>>
    %c20_i32_120 = arith.constant 20 : i32
    %c0_i32_121 = arith.constant 0 : i32
    %c0_i32_122 = arith.constant 0 : i32
    %144 = tpu.memref_slice %arg2[%c0_i32_121, %143, %c0_i32_122] : memref<2x64x256xf32, #tpu.memory_space<any>> -> memref<2x1x256xf32, #tpu.memory_space<any>>
    %c0_i32_123 = arith.constant 0 : i32
    %c20_i32_124 = arith.constant 20 : i32
    %c0_i32_125 = arith.constant 0 : i32
    %145 = tpu.memref_slice %arg5[%c0_i32_123, %c20_i32_124, %c0_i32_125] : memref<2x32x256xf32, #tpu.memory_space<vmem>> -> memref<2x1x256xf32, #tpu.memory_space<vmem>>
    %146 = tpu.memref_slice %arg6[%c20_i32_120] : memref<32x!tpu.dma_semaphore, #tpu.memory_space<semaphore_mem>> -> memref<1x!tpu.dma_semaphore, #tpu.memory_space<semaphore_mem>>
    %147 = tpu.memref_squeeze %146 : memref<1x!tpu.dma_semaphore, #tpu.memory_space<semaphore_mem>> -> memref<!tpu.dma_semaphore, #tpu.memory_space<semaphore_mem>>
    tpu.enqueue_dma source(%144 : memref<2x1x256xf32, #tpu.memory_space<any>>) target(%145 : memref<2x1x256xf32, #tpu.memory_space<vmem>>) target_semaphore(%147 : memref<!tpu.dma_semaphore, #tpu.memory_space<semaphore_mem>>)
    %c21_i32 = arith.constant 21 : i32
    %148 = arith.addi %0, %c21_i32 : i32
    %149 = arith.index_cast %148 : i32 to index
    %150 = memref.load %arg1[%149] : memref<64xi32, #tpu.memory_space<smem>>
    %c21_i32_126 = arith.constant 21 : i32
    %c0_i32_127 = arith.constant 0 : i32
    %c0_i32_128 = arith.constant 0 : i32
    %151 = tpu.memref_slice %arg2[%c0_i32_127, %150, %c0_i32_128] : memref<2x64x256xf32, #tpu.memory_space<any>> -> memref<2x1x256xf32, #tpu.memory_space<any>>
    %c0_i32_129 = arith.constant 0 : i32
    %c21_i32_130 = arith.constant 21 : i32
    %c0_i32_131 = arith.constant 0 : i32
    %152 = tpu.memref_slice %arg5[%c0_i32_129, %c21_i32_130, %c0_i32_131] : memref<2x32x256xf32, #tpu.memory_space<vmem>> -> memref<2x1x256xf32, #tpu.memory_space<vmem>>
    %153 = tpu.memref_slice %arg6[%c21_i32_126] : memref<32x!tpu.dma_semaphore, #tpu.memory_space<semaphore_mem>> -> memref<1x!tpu.dma_semaphore, #tpu.memory_space<semaphore_mem>>
    %154 = tpu.memref_squeeze %153 : memref<1x!tpu.dma_semaphore, #tpu.memory_space<semaphore_mem>> -> memref<!tpu.dma_semaphore, #tpu.memory_space<semaphore_mem>>
    tpu.enqueue_dma source(%151 : memref<2x1x256xf32, #tpu.memory_space<any>>) target(%152 : memref<2x1x256xf32, #tpu.memory_space<vmem>>) target_semaphore(%154 : memref<!tpu.dma_semaphore, #tpu.memory_space<semaphore_mem>>)
    %c22_i32 = arith.constant 22 : i32
    %155 = arith.addi %0, %c22_i32 : i32
    %156 = arith.index_cast %155 : i32 to index
    %157 = memref.load %arg1[%156] : memref<64xi32, #tpu.memory_space<smem>>
    %c22_i32_132 = arith.constant 22 : i32
    %c0_i32_133 = arith.constant 0 : i32
    %c0_i32_134 = arith.constant 0 : i32
    %158 = tpu.memref_slice %arg2[%c0_i32_133, %157, %c0_i32_134] : memref<2x64x256xf32, #tpu.memory_space<any>> -> memref<2x1x256xf32, #tpu.memory_space<any>>
    %c0_i32_135 = arith.constant 0 : i32
    %c22_i32_136 = arith.constant 22 : i32
    %c0_i32_137 = arith.constant 0 : i32
    %159 = tpu.memref_slice %arg5[%c0_i32_135, %c22_i32_136, %c0_i32_137] : memref<2x32x256xf32, #tpu.memory_space<vmem>> -> memref<2x1x256xf32, #tpu.memory_space<vmem>>
    %160 = tpu.memref_slice %arg6[%c22_i32_132] : memref<32x!tpu.dma_semaphore, #tpu.memory_space<semaphore_mem>> -> memref<1x!tpu.dma_semaphore, #tpu.memory_space<semaphore_mem>>
    %161 = tpu.memref_squeeze %160 : memref<1x!tpu.dma_semaphore, #tpu.memory_space<semaphore_mem>> -> memref<!tpu.dma_semaphore, #tpu.memory_space<semaphore_mem>>
    tpu.enqueue_dma source(%158 : memref<2x1x256xf32, #tpu.memory_space<any>>) target(%159 : memref<2x1x256xf32, #tpu.memory_space<vmem>>) target_semaphore(%161 : memref<!tpu.dma_semaphore, #tpu.memory_space<semaphore_mem>>)
    %c23_i32 = arith.constant 23 : i32
    %162 = arith.addi %0, %c23_i32 : i32
    %163 = arith.index_cast %162 : i32 to index
    %164 = memref.load %arg1[%163] : memref<64xi32, #tpu.memory_space<smem>>
    %c23_i32_138 = arith.constant 23 : i32
    %c0_i32_139 = arith.constant 0 : i32
    %c0_i32_140 = arith.constant 0 : i32
    %165 = tpu.memref_slice %arg2[%c0_i32_139, %164, %c0_i32_140] : memref<2x64x256xf32, #tpu.memory_space<any>> -> memref<2x1x256xf32, #tpu.memory_space<any>>
    %c0_i32_141 = arith.constant 0 : i32
    %c23_i32_142 = arith.constant 23 : i32
    %c0_i32_143 = arith.constant 0 : i32
    %166 = tpu.memref_slice %arg5[%c0_i32_141, %c23_i32_142, %c0_i32_143] : memref<2x32x256xf32, #tpu.memory_space<vmem>> -> memref<2x1x256xf32, #tpu.memory_space<vmem>>
    %167 = tpu.memref_slice %arg6[%c23_i32_138] : memref<32x!tpu.dma_semaphore, #tpu.memory_space<semaphore_mem>> -> memref<1x!tpu.dma_semaphore, #tpu.memory_space<semaphore_mem>>
    %168 = tpu.memref_squeeze %167 : memref<1x!tpu.dma_semaphore, #tpu.memory_space<semaphore_mem>> -> memref<!tpu.dma_semaphore, #tpu.memory_space<semaphore_mem>>
    tpu.enqueue_dma source(%165 : memref<2x1x256xf32, #tpu.memory_space<any>>) target(%166 : memref<2x1x256xf32, #tpu.memory_space<vmem>>) target_semaphore(%168 : memref<!tpu.dma_semaphore, #tpu.memory_space<semaphore_mem>>)
    %c24_i32 = arith.constant 24 : i32
    %169 = arith.addi %0, %c24_i32 : i32
    %170 = arith.index_cast %169 : i32 to index
    %171 = memref.load %arg1[%170] : memref<64xi32, #tpu.memory_space<smem>>
    %c24_i32_144 = arith.constant 24 : i32
    %c0_i32_145 = arith.constant 0 : i32
    %c0_i32_146 = arith.constant 0 : i32
    %172 = tpu.memref_slice %arg2[%c0_i32_145, %171, %c0_i32_146] : memref<2x64x256xf32, #tpu.memory_space<any>> -> memref<2x1x256xf32, #tpu.memory_space<any>>
    %c0_i32_147 = arith.constant 0 : i32
    %c24_i32_148 = arith.constant 24 : i32
    %c0_i32_149 = arith.constant 0 : i32
    %173 = tpu.memref_slice %arg5[%c0_i32_147, %c24_i32_148, %c0_i32_149] : memref<2x32x256xf32, #tpu.memory_space<vmem>> -> memref<2x1x256xf32, #tpu.memory_space<vmem>>
    %174 = tpu.memref_slice %arg6[%c24_i32_144] : memref<32x!tpu.dma_semaphore, #tpu.memory_space<semaphore_mem>> -> memref<1x!tpu.dma_semaphore, #tpu.memory_space<semaphore_mem>>
    %175 = tpu.memref_squeeze %174 : memref<1x!tpu.dma_semaphore, #tpu.memory_space<semaphore_mem>> -> memref<!tpu.dma_semaphore, #tpu.memory_space<semaphore_mem>>
    tpu.enqueue_dma source(%172 : memref<2x1x256xf32, #tpu.memory_space<any>>) target(%173 : memref<2x1x256xf32, #tpu.memory_space<vmem>>) target_semaphore(%175 : memref<!tpu.dma_semaphore, #tpu.memory_space<semaphore_mem>>)
    %c25_i32 = arith.constant 25 : i32
    %176 = arith.addi %0, %c25_i32 : i32
    %177 = arith.index_cast %176 : i32 to index
    %178 = memref.load %arg1[%177] : memref<64xi32, #tpu.memory_space<smem>>
    %c25_i32_150 = arith.constant 25 : i32
    %c0_i32_151 = arith.constant 0 : i32
    %c0_i32_152 = arith.constant 0 : i32
    %179 = tpu.memref_slice %arg2[%c0_i32_151, %178, %c0_i32_152] : memref<2x64x256xf32, #tpu.memory_space<any>> -> memref<2x1x256xf32, #tpu.memory_space<any>>
    %c0_i32_153 = arith.constant 0 : i32
    %c25_i32_154 = arith.constant 25 : i32
    %c0_i32_155 = arith.constant 0 : i32
    %180 = tpu.memref_slice %arg5[%c0_i32_153, %c25_i32_154, %c0_i32_155] : memref<2x32x256xf32, #tpu.memory_space<vmem>> -> memref<2x1x256xf32, #tpu.memory_space<vmem>>
    %181 = tpu.memref_slice %arg6[%c25_i32_150] : memref<32x!tpu.dma_semaphore, #tpu.memory_space<semaphore_mem>> -> memref<1x!tpu.dma_semaphore, #tpu.memory_space<semaphore_mem>>
    %182 = tpu.memref_squeeze %181 : memref<1x!tpu.dma_semaphore, #tpu.memory_space<semaphore_mem>> -> memref<!tpu.dma_semaphore, #tpu.memory_space<semaphore_mem>>
    tpu.enqueue_dma source(%179 : memref<2x1x256xf32, #tpu.memory_space<any>>) target(%180 : memref<2x1x256xf32, #tpu.memory_space<vmem>>) target_semaphore(%182 : memref<!tpu.dma_semaphore, #tpu.memory_space<semaphore_mem>>)
    %c26_i32 = arith.constant 26 : i32
    %183 = arith.addi %0, %c26_i32 : i32
    %184 = arith.index_cast %183 : i32 to index
    %185 = memref.load %arg1[%184] : memref<64xi32, #tpu.memory_space<smem>>
    %c26_i32_156 = arith.constant 26 : i32
    %c0_i32_157 = arith.constant 0 : i32
    %c0_i32_158 = arith.constant 0 : i32
    %186 = tpu.memref_slice %arg2[%c0_i32_157, %185, %c0_i32_158] : memref<2x64x256xf32, #tpu.memory_space<any>> -> memref<2x1x256xf32, #tpu.memory_space<any>>
    %c0_i32_159 = arith.constant 0 : i32
    %c26_i32_160 = arith.constant 26 : i32
    %c0_i32_161 = arith.constant 0 : i32
    %187 = tpu.memref_slice %arg5[%c0_i32_159, %c26_i32_160, %c0_i32_161] : memref<2x32x256xf32, #tpu.memory_space<vmem>> -> memref<2x1x256xf32, #tpu.memory_space<vmem>>
    %188 = tpu.memref_slice %arg6[%c26_i32_156] : memref<32x!tpu.dma_semaphore, #tpu.memory_space<semaphore_mem>> -> memref<1x!tpu.dma_semaphore, #tpu.memory_space<semaphore_mem>>
    %189 = tpu.memref_squeeze %188 : memref<1x!tpu.dma_semaphore, #tpu.memory_space<semaphore_mem>> -> memref<!tpu.dma_semaphore, #tpu.memory_space<semaphore_mem>>
    tpu.enqueue_dma source(%186 : memref<2x1x256xf32, #tpu.memory_space<any>>) target(%187 : memref<2x1x256xf32, #tpu.memory_space<vmem>>) target_semaphore(%189 : memref<!tpu.dma_semaphore, #tpu.memory_space<semaphore_mem>>)
    %c27_i32 = arith.constant 27 : i32
    %190 = arith.addi %0, %c27_i32 : i32
    %191 = arith.index_cast %190 : i32 to index
    %192 = memref.load %arg1[%191] : memref<64xi32, #tpu.memory_space<smem>>
    %c27_i32_162 = arith.constant 27 : i32
    %c0_i32_163 = arith.constant 0 : i32
    %c0_i32_164 = arith.constant 0 : i32
    %193 = tpu.memref_slice %arg2[%c0_i32_163, %192, %c0_i32_164] : memref<2x64x256xf32, #tpu.memory_space<any>> -> memref<2x1x256xf32, #tpu.memory_space<any>>
    %c0_i32_165 = arith.constant 0 : i32
    %c27_i32_166 = arith.constant 27 : i32
    %c0_i32_167 = arith.constant 0 : i32
    %194 = tpu.memref_slice %arg5[%c0_i32_165, %c27_i32_166, %c0_i32_167] : memref<2x32x256xf32, #tpu.memory_space<vmem>> -> memref<2x1x256xf32, #tpu.memory_space<vmem>>
    %195 = tpu.memref_slice %arg6[%c27_i32_162] : memref<32x!tpu.dma_semaphore, #tpu.memory_space<semaphore_mem>> -> memref<1x!tpu.dma_semaphore, #tpu.memory_space<semaphore_mem>>
    %196 = tpu.memref_squeeze %195 : memref<1x!tpu.dma_semaphore, #tpu.memory_space<semaphore_mem>> -> memref<!tpu.dma_semaphore, #tpu.memory_space<semaphore_mem>>
    tpu.enqueue_dma source(%193 : memref<2x1x256xf32, #tpu.memory_space<any>>) target(%194 : memref<2x1x256xf32, #tpu.memory_space<vmem>>) target_semaphore(%196 : memref<!tpu.dma_semaphore, #tpu.memory_space<semaphore_mem>>)
    %c28_i32 = arith.constant 28 : i32
    %197 = arith.addi %0, %c28_i32 : i32
    %198 = arith.index_cast %197 : i32 to index
    %199 = memref.load %arg1[%198] : memref<64xi32, #tpu.memory_space<smem>>
    %c28_i32_168 = arith.constant 28 : i32
    %c0_i32_169 = arith.constant 0 : i32
    %c0_i32_170 = arith.constant 0 : i32
    %200 = tpu.memref_slice %arg2[%c0_i32_169, %199, %c0_i32_170] : memref<2x64x256xf32, #tpu.memory_space<any>> -> memref<2x1x256xf32, #tpu.memory_space<any>>
    %c0_i32_171 = arith.constant 0 : i32
    %c28_i32_172 = arith.constant 28 : i32
    %c0_i32_173 = arith.constant 0 : i32
    %201 = tpu.memref_slice %arg5[%c0_i32_171, %c28_i32_172, %c0_i32_173] : memref<2x32x256xf32, #tpu.memory_space<vmem>> -> memref<2x1x256xf32, #tpu.memory_space<vmem>>
    %202 = tpu.memref_slice %arg6[%c28_i32_168] : memref<32x!tpu.dma_semaphore, #tpu.memory_space<semaphore_mem>> -> memref<1x!tpu.dma_semaphore, #tpu.memory_space<semaphore_mem>>
    %203 = tpu.memref_squeeze %202 : memref<1x!tpu.dma_semaphore, #tpu.memory_space<semaphore_mem>> -> memref<!tpu.dma_semaphore, #tpu.memory_space<semaphore_mem>>
    tpu.enqueue_dma source(%200 : memref<2x1x256xf32, #tpu.memory_space<any>>) target(%201 : memref<2x1x256xf32, #tpu.memory_space<vmem>>) target_semaphore(%203 : memref<!tpu.dma_semaphore, #tpu.memory_space<semaphore_mem>>)
    %c29_i32 = arith.constant 29 : i32
    %204 = arith.addi %0, %c29_i32 : i32
    %205 = arith.index_cast %204 : i32 to index
    %206 = memref.load %arg1[%205] : memref<64xi32, #tpu.memory_space<smem>>
    %c29_i32_174 = arith.constant 29 : i32
    %c0_i32_175 = arith.constant 0 : i32
    %c0_i32_176 = arith.constant 0 : i32
    %207 = tpu.memref_slice %arg2[%c0_i32_175, %206, %c0_i32_176] : memref<2x64x256xf32, #tpu.memory_space<any>> -> memref<2x1x256xf32, #tpu.memory_space<any>>
    %c0_i32_177 = arith.constant 0 : i32
    %c29_i32_178 = arith.constant 29 : i32
    %c0_i32_179 = arith.constant 0 : i32
    %208 = tpu.memref_slice %arg5[%c0_i32_177, %c29_i32_178, %c0_i32_179] : memref<2x32x256xf32, #tpu.memory_space<vmem>> -> memref<2x1x256xf32, #tpu.memory_space<vmem>>
    %209 = tpu.memref_slice %arg6[%c29_i32_174] : memref<32x!tpu.dma_semaphore, #tpu.memory_space<semaphore_mem>> -> memref<1x!tpu.dma_semaphore, #tpu.memory_space<semaphore_mem>>
    %210 = tpu.memref_squeeze %209 : memref<1x!tpu.dma_semaphore, #tpu.memory_space<semaphore_mem>> -> memref<!tpu.dma_semaphore, #tpu.memory_space<semaphore_mem>>
    tpu.enqueue_dma source(%207 : memref<2x1x256xf32, #tpu.memory_space<any>>) target(%208 : memref<2x1x256xf32, #tpu.memory_space<vmem>>) target_semaphore(%210 : memref<!tpu.dma_semaphore, #tpu.memory_space<semaphore_mem>>)
    %c30_i32 = arith.constant 30 : i32
    %211 = arith.addi %0, %c30_i32 : i32
    %212 = arith.index_cast %211 : i32 to index
    %213 = memref.load %arg1[%212] : memref<64xi32, #tpu.memory_space<smem>>
    %c30_i32_180 = arith.constant 30 : i32
    %c0_i32_181 = arith.constant 0 : i32
    %c0_i32_182 = arith.constant 0 : i32
    %214 = tpu.memref_slice %arg2[%c0_i32_181, %213, %c0_i32_182] : memref<2x64x256xf32, #tpu.memory_space<any>> -> memref<2x1x256xf32, #tpu.memory_space<any>>
    %c0_i32_183 = arith.constant 0 : i32
    %c30_i32_184 = arith.constant 30 : i32
    %c0_i32_185 = arith.constant 0 : i32
    %215 = tpu.memref_slice %arg5[%c0_i32_183, %c30_i32_184, %c0_i32_185] : memref<2x32x256xf32, #tpu.memory_space<vmem>> -> memref<2x1x256xf32, #tpu.memory_space<vmem>>
    %216 = tpu.memref_slice %arg6[%c30_i32_180] : memref<32x!tpu.dma_semaphore, #tpu.memory_space<semaphore_mem>> -> memref<1x!tpu.dma_semaphore, #tpu.memory_space<semaphore_mem>>
    %217 = tpu.memref_squeeze %216 : memref<1x!tpu.dma_semaphore, #tpu.memory_space<semaphore_mem>> -> memref<!tpu.dma_semaphore, #tpu.memory_space<semaphore_mem>>
    tpu.enqueue_dma source(%214 : memref<2x1x256xf32, #tpu.memory_space<any>>) target(%215 : memref<2x1x256xf32, #tpu.memory_space<vmem>>) target_semaphore(%217 : memref<!tpu.dma_semaphore, #tpu.memory_space<semaphore_mem>>)
    %c31_i32 = arith.constant 31 : i32
    %218 = arith.addi %0, %c31_i32 : i32
    %219 = arith.index_cast %218 : i32 to index
    %220 = memref.load %arg1[%219] : memref<64xi32, #tpu.memory_space<smem>>
    %c31_i32_186 = arith.constant 31 : i32
    %c0_i32_187 = arith.constant 0 : i32
    %c0_i32_188 = arith.constant 0 : i32
    %221 = tpu.memref_slice %arg2[%c0_i32_187, %220, %c0_i32_188] : memref<2x64x256xf32, #tpu.memory_space<any>> -> memref<2x1x256xf32, #tpu.memory_space<any>>
    %c0_i32_189 = arith.constant 0 : i32
    %c31_i32_190 = arith.constant 31 : i32
    %c0_i32_191 = arith.constant 0 : i32
    %222 = tpu.memref_slice %arg5[%c0_i32_189, %c31_i32_190, %c0_i32_191] : memref<2x32x256xf32, #tpu.memory_space<vmem>> -> memref<2x1x256xf32, #tpu.memory_space<vmem>>
    %223 = tpu.memref_slice %arg6[%c31_i32_186] : memref<32x!tpu.dma_semaphore, #tpu.memory_space<semaphore_mem>> -> memref<1x!tpu.dma_semaphore, #tpu.memory_space<semaphore_mem>>
    %224 = tpu.memref_squeeze %223 : memref<1x!tpu.dma_semaphore, #tpu.memory_space<semaphore_mem>> -> memref<!tpu.dma_semaphore, #tpu.memory_space<semaphore_mem>>
    tpu.enqueue_dma source(%221 : memref<2x1x256xf32, #tpu.memory_space<any>>) target(%222 : memref<2x1x256xf32, #tpu.memory_space<vmem>>) target_semaphore(%224 : memref<!tpu.dma_semaphore, #tpu.memory_space<semaphore_mem>>)
    %c0_i32_192 = arith.constant 0 : i32
    %c0_i32_193 = arith.constant 0 : i32
    %c0_i32_194 = arith.constant 0 : i32
    %225 = tpu.memref_slice %arg2[%c0_i32_193, %3, %c0_i32_194] : memref<2x64x256xf32, #tpu.memory_space<any>> -> memref<2x1x256xf32, #tpu.memory_space<any>>
    %c0_i32_195 = arith.constant 0 : i32
    %c0_i32_196 = arith.constant 0 : i32
    %c0_i32_197 = arith.constant 0 : i32
    %226 = tpu.memref_slice %arg5[%c0_i32_195, %c0_i32_196, %c0_i32_197] : memref<2x32x256xf32, #tpu.memory_space<vmem>> -> memref<2x1x256xf32, #tpu.memory_space<vmem>>
    %227 = tpu.memref_slice %arg6[%c0_i32_192] : memref<32x!tpu.dma_semaphore, #tpu.memory_space<semaphore_mem>> -> memref<1x!tpu.dma_semaphore, #tpu.memory_space<semaphore_mem>>
    %228 = tpu.memref_squeeze %227 : memref<1x!tpu.dma_semaphore, #tpu.memory_space<semaphore_mem>> -> memref<!tpu.dma_semaphore, #tpu.memory_space<semaphore_mem>>
    tpu.wait_dma2 semaphore(%228 : memref<!tpu.dma_semaphore, #tpu.memory_space<semaphore_mem>>) src(%225 : memref<2x1x256xf32, #tpu.memory_space<any>>) dst(%226 : memref<2x1x256xf32, #tpu.memory_space<vmem>>)
    %c1_i32_198 = arith.constant 1 : i32
    %c0_i32_199 = arith.constant 0 : i32
    %c0_i32_200 = arith.constant 0 : i32
    %229 = tpu.memref_slice %arg2[%c0_i32_199, %10, %c0_i32_200] : memref<2x64x256xf32, #tpu.memory_space<any>> -> memref<2x1x256xf32, #tpu.memory_space<any>>
    %c0_i32_201 = arith.constant 0 : i32
    %c1_i32_202 = arith.constant 1 : i32
    %c0_i32_203 = arith.constant 0 : i32
    %230 = tpu.memref_slice %arg5[%c0_i32_201, %c1_i32_202, %c0_i32_203] : memref<2x32x256xf32, #tpu.memory_space<vmem>> -> memref<2x1x256xf32, #tpu.memory_space<vmem>>
    %231 = tpu.memref_slice %arg6[%c1_i32_198] : memref<32x!tpu.dma_semaphore, #tpu.memory_space<semaphore_mem>> -> memref<1x!tpu.dma_semaphore, #tpu.memory_space<semaphore_mem>>
    %232 = tpu.memref_squeeze %231 : memref<1x!tpu.dma_semaphore, #tpu.memory_space<semaphore_mem>> -> memref<!tpu.dma_semaphore, #tpu.memory_space<semaphore_mem>>
    tpu.wait_dma2 semaphore(%232 : memref<!tpu.dma_semaphore, #tpu.memory_space<semaphore_mem>>) src(%229 : memref<2x1x256xf32, #tpu.memory_space<any>>) dst(%230 : memref<2x1x256xf32, #tpu.memory_space<vmem>>)
    %c2_i32_204 = arith.constant 2 : i32
    %c0_i32_205 = arith.constant 0 : i32
    %c0_i32_206 = arith.constant 0 : i32
    %233 = tpu.memref_slice %arg2[%c0_i32_205, %17, %c0_i32_206] : memref<2x64x256xf32, #tpu.memory_space<any>> -> memref<2x1x256xf32, #tpu.memory_space<any>>
    %c0_i32_207 = arith.constant 0 : i32
    %c2_i32_208 = arith.constant 2 : i32
    %c0_i32_209 = arith.constant 0 : i32
    %234 = tpu.memref_slice %arg5[%c0_i32_207, %c2_i32_208, %c0_i32_209] : memref<2x32x256xf32, #tpu.memory_space<vmem>> -> memref<2x1x256xf32, #tpu.memory_space<vmem>>
    %235 = tpu.memref_slice %arg6[%c2_i32_204] : memref<32x!tpu.dma_semaphore, #tpu.memory_space<semaphore_mem>> -> memref<1x!tpu.dma_semaphore, #tpu.memory_space<semaphore_mem>>
    %236 = tpu.memref_squeeze %235 : memref<1x!tpu.dma_semaphore, #tpu.memory_space<semaphore_mem>> -> memref<!tpu.dma_semaphore, #tpu.memory_space<semaphore_mem>>
    tpu.wait_dma2 semaphore(%236 : memref<!tpu.dma_semaphore, #tpu.memory_space<semaphore_mem>>) src(%233 : memref<2x1x256xf32, #tpu.memory_space<any>>) dst(%234 : memref<2x1x256xf32, #tpu.memory_space<vmem>>)
    %c3_i32_210 = arith.constant 3 : i32
    %c0_i32_211 = arith.constant 0 : i32
    %c0_i32_212 = arith.constant 0 : i32
    %237 = tpu.memref_slice %arg2[%c0_i32_211, %24, %c0_i32_212] : memref<2x64x256xf32, #tpu.memory_space<any>> -> memref<2x1x256xf32, #tpu.memory_space<any>>
    %c0_i32_213 = arith.constant 0 : i32
    %c3_i32_214 = arith.constant 3 : i32
    %c0_i32_215 = arith.constant 0 : i32
    %238 = tpu.memref_slice %arg5[%c0_i32_213, %c3_i32_214, %c0_i32_215] : memref<2x32x256xf32, #tpu.memory_space<vmem>> -> memref<2x1x256xf32, #tpu.memory_space<vmem>>
    %239 = tpu.memref_slice %arg6[%c3_i32_210] : memref<32x!tpu.dma_semaphore, #tpu.memory_space<semaphore_mem>> -> memref<1x!tpu.dma_semaphore, #tpu.memory_space<semaphore_mem>>
    %240 = tpu.memref_squeeze %239 : memref<1x!tpu.dma_semaphore, #tpu.memory_space<semaphore_mem>> -> memref<!tpu.dma_semaphore, #tpu.memory_space<semaphore_mem>>
    tpu.wait_dma2 semaphore(%240 : memref<!tpu.dma_semaphore, #tpu.memory_space<semaphore_mem>>) src(%237 : memref<2x1x256xf32, #tpu.memory_space<any>>) dst(%238 : memref<2x1x256xf32, #tpu.memory_space<vmem>>)
    %c4_i32_216 = arith.constant 4 : i32
    %c0_i32_217 = arith.constant 0 : i32
    %c0_i32_218 = arith.constant 0 : i32
    %241 = tpu.memref_slice %arg2[%c0_i32_217, %31, %c0_i32_218] : memref<2x64x256xf32, #tpu.memory_space<any>> -> memref<2x1x256xf32, #tpu.memory_space<any>>
    %c0_i32_219 = arith.constant 0 : i32
    %c4_i32_220 = arith.constant 4 : i32
    %c0_i32_221 = arith.constant 0 : i32
    %242 = tpu.memref_slice %arg5[%c0_i32_219, %c4_i32_220, %c0_i32_221] : memref<2x32x256xf32, #tpu.memory_space<vmem>> -> memref<2x1x256xf32, #tpu.memory_space<vmem>>
    %243 = tpu.memref_slice %arg6[%c4_i32_216] : memref<32x!tpu.dma_semaphore, #tpu.memory_space<semaphore_mem>> -> memref<1x!tpu.dma_semaphore, #tpu.memory_space<semaphore_mem>>
    %244 = tpu.memref_squeeze %243 : memref<1x!tpu.dma_semaphore, #tpu.memory_space<semaphore_mem>> -> memref<!tpu.dma_semaphore, #tpu.memory_space<semaphore_mem>>
    tpu.wait_dma2 semaphore(%244 : memref<!tpu.dma_semaphore, #tpu.memory_space<semaphore_mem>>) src(%241 : memref<2x1x256xf32, #tpu.memory_space<any>>) dst(%242 : memref<2x1x256xf32, #tpu.memory_space<vmem>>)
    %c5_i32_222 = arith.constant 5 : i32
    %c0_i32_223 = arith.constant 0 : i32
    %c0_i32_224 = arith.constant 0 : i32
    %245 = tpu.memref_slice %arg2[%c0_i32_223, %38, %c0_i32_224] : memref<2x64x256xf32, #tpu.memory_space<any>> -> memref<2x1x256xf32, #tpu.memory_space<any>>
    %c0_i32_225 = arith.constant 0 : i32
    %c5_i32_226 = arith.constant 5 : i32
    %c0_i32_227 = arith.constant 0 : i32
    %246 = tpu.memref_slice %arg5[%c0_i32_225, %c5_i32_226, %c0_i32_227] : memref<2x32x256xf32, #tpu.memory_space<vmem>> -> memref<2x1x256xf32, #tpu.memory_space<vmem>>
    %247 = tpu.memref_slice %arg6[%c5_i32_222] : memref<32x!tpu.dma_semaphore, #tpu.memory_space<semaphore_mem>> -> memref<1x!tpu.dma_semaphore, #tpu.memory_space<semaphore_mem>>
    %248 = tpu.memref_squeeze %247 : memref<1x!tpu.dma_semaphore, #tpu.memory_space<semaphore_mem>> -> memref<!tpu.dma_semaphore, #tpu.memory_space<semaphore_mem>>
    tpu.wait_dma2 semaphore(%248 : memref<!tpu.dma_semaphore, #tpu.memory_space<semaphore_mem>>) src(%245 : memref<2x1x256xf32, #tpu.memory_space<any>>) dst(%246 : memref<2x1x256xf32, #tpu.memory_space<vmem>>)
    %c6_i32_228 = arith.constant 6 : i32
    %c0_i32_229 = arith.constant 0 : i32
    %c0_i32_230 = arith.constant 0 : i32
    %249 = tpu.memref_slice %arg2[%c0_i32_229, %45, %c0_i32_230] : memref<2x64x256xf32, #tpu.memory_space<any>> -> memref<2x1x256xf32, #tpu.memory_space<any>>
    %c0_i32_231 = arith.constant 0 : i32
    %c6_i32_232 = arith.constant 6 : i32
    %c0_i32_233 = arith.constant 0 : i32
    %250 = tpu.memref_slice %arg5[%c0_i32_231, %c6_i32_232, %c0_i32_233] : memref<2x32x256xf32, #tpu.memory_space<vmem>> -> memref<2x1x256xf32, #tpu.memory_space<vmem>>
    %251 = tpu.memref_slice %arg6[%c6_i32_228] : memref<32x!tpu.dma_semaphore, #tpu.memory_space<semaphore_mem>> -> memref<1x!tpu.dma_semaphore, #tpu.memory_space<semaphore_mem>>
    %252 = tpu.memref_squeeze %251 : memref<1x!tpu.dma_semaphore, #tpu.memory_space<semaphore_mem>> -> memref<!tpu.dma_semaphore, #tpu.memory_space<semaphore_mem>>
    tpu.wait_dma2 semaphore(%252 : memref<!tpu.dma_semaphore, #tpu.memory_space<semaphore_mem>>) src(%249 : memref<2x1x256xf32, #tpu.memory_space<any>>) dst(%250 : memref<2x1x256xf32, #tpu.memory_space<vmem>>)
    %c7_i32_234 = arith.constant 7 : i32
    %c0_i32_235 = arith.constant 0 : i32
    %c0_i32_236 = arith.constant 0 : i32
    %253 = tpu.memref_slice %arg2[%c0_i32_235, %52, %c0_i32_236] : memref<2x64x256xf32, #tpu.memory_space<any>> -> memref<2x1x256xf32, #tpu.memory_space<any>>
    %c0_i32_237 = arith.constant 0 : i32
    %c7_i32_238 = arith.constant 7 : i32
    %c0_i32_239 = arith.constant 0 : i32
    %254 = tpu.memref_slice %arg5[%c0_i32_237, %c7_i32_238, %c0_i32_239] : memref<2x32x256xf32, #tpu.memory_space<vmem>> -> memref<2x1x256xf32, #tpu.memory_space<vmem>>
    %255 = tpu.memref_slice %arg6[%c7_i32_234] : memref<32x!tpu.dma_semaphore, #tpu.memory_space<semaphore_mem>> -> memref<1x!tpu.dma_semaphore, #tpu.memory_space<semaphore_mem>>
    %256 = tpu.memref_squeeze %255 : memref<1x!tpu.dma_semaphore, #tpu.memory_space<semaphore_mem>> -> memref<!tpu.dma_semaphore, #tpu.memory_space<semaphore_mem>>
    tpu.wait_dma2 semaphore(%256 : memref<!tpu.dma_semaphore, #tpu.memory_space<semaphore_mem>>) src(%253 : memref<2x1x256xf32, #tpu.memory_space<any>>) dst(%254 : memref<2x1x256xf32, #tpu.memory_space<vmem>>)
    %c8_i32_240 = arith.constant 8 : i32
    %c0_i32_241 = arith.constant 0 : i32
    %c0_i32_242 = arith.constant 0 : i32
    %257 = tpu.memref_slice %arg2[%c0_i32_241, %59, %c0_i32_242] : memref<2x64x256xf32, #tpu.memory_space<any>> -> memref<2x1x256xf32, #tpu.memory_space<any>>
    %c0_i32_243 = arith.constant 0 : i32
    %c8_i32_244 = arith.constant 8 : i32
    %c0_i32_245 = arith.constant 0 : i32
    %258 = tpu.memref_slice %arg5[%c0_i32_243, %c8_i32_244, %c0_i32_245] : memref<2x32x256xf32, #tpu.memory_space<vmem>> -> memref<2x1x256xf32, #tpu.memory_space<vmem>>
    %259 = tpu.memref_slice %arg6[%c8_i32_240] : memref<32x!tpu.dma_semaphore, #tpu.memory_space<semaphore_mem>> -> memref<1x!tpu.dma_semaphore, #tpu.memory_space<semaphore_mem>>
    %260 = tpu.memref_squeeze %259 : memref<1x!tpu.dma_semaphore, #tpu.memory_space<semaphore_mem>> -> memref<!tpu.dma_semaphore, #tpu.memory_space<semaphore_mem>>
    tpu.wait_dma2 semaphore(%260 : memref<!tpu.dma_semaphore, #tpu.memory_space<semaphore_mem>>) src(%257 : memref<2x1x256xf32, #tpu.memory_space<any>>) dst(%258 : memref<2x1x256xf32, #tpu.memory_space<vmem>>)
    %c9_i32_246 = arith.constant 9 : i32
    %c0_i32_247 = arith.constant 0 : i32
    %c0_i32_248 = arith.constant 0 : i32
    %261 = tpu.memref_slice %arg2[%c0_i32_247, %66, %c0_i32_248] : memref<2x64x256xf32, #tpu.memory_space<any>> -> memref<2x1x256xf32, #tpu.memory_space<any>>
    %c0_i32_249 = arith.constant 0 : i32
    %c9_i32_250 = arith.constant 9 : i32
    %c0_i32_251 = arith.constant 0 : i32
    %262 = tpu.memref_slice %arg5[%c0_i32_249, %c9_i32_250, %c0_i32_251] : memref<2x32x256xf32, #tpu.memory_space<vmem>> -> memref<2x1x256xf32, #tpu.memory_space<vmem>>
    %263 = tpu.memref_slice %arg6[%c9_i32_246] : memref<32x!tpu.dma_semaphore, #tpu.memory_space<semaphore_mem>> -> memref<1x!tpu.dma_semaphore, #tpu.memory_space<semaphore_mem>>
    %264 = tpu.memref_squeeze %263 : memref<1x!tpu.dma_semaphore, #tpu.memory_space<semaphore_mem>> -> memref<!tpu.dma_semaphore, #tpu.memory_space<semaphore_mem>>
    tpu.wait_dma2 semaphore(%264 : memref<!tpu.dma_semaphore, #tpu.memory_space<semaphore_mem>>) src(%261 : memref<2x1x256xf32, #tpu.memory_space<any>>) dst(%262 : memref<2x1x256xf32, #tpu.memory_space<vmem>>)
    %c10_i32_252 = arith.constant 10 : i32
    %c0_i32_253 = arith.constant 0 : i32
    %c0_i32_254 = arith.constant 0 : i32
    %265 = tpu.memref_slice %arg2[%c0_i32_253, %73, %c0_i32_254] : memref<2x64x256xf32, #tpu.memory_space<any>> -> memref<2x1x256xf32, #tpu.memory_space<any>>
    %c0_i32_255 = arith.constant 0 : i32
    %c10_i32_256 = arith.constant 10 : i32
    %c0_i32_257 = arith.constant 0 : i32
    %266 = tpu.memref_slice %arg5[%c0_i32_255, %c10_i32_256, %c0_i32_257] : memref<2x32x256xf32, #tpu.memory_space<vmem>> -> memref<2x1x256xf32, #tpu.memory_space<vmem>>
    %267 = tpu.memref_slice %arg6[%c10_i32_252] : memref<32x!tpu.dma_semaphore, #tpu.memory_space<semaphore_mem>> -> memref<1x!tpu.dma_semaphore, #tpu.memory_space<semaphore_mem>>
    %268 = tpu.memref_squeeze %267 : memref<1x!tpu.dma_semaphore, #tpu.memory_space<semaphore_mem>> -> memref<!tpu.dma_semaphore, #tpu.memory_space<semaphore_mem>>
    tpu.wait_dma2 semaphore(%268 : memref<!tpu.dma_semaphore, #tpu.memory_space<semaphore_mem>>) src(%265 : memref<2x1x256xf32, #tpu.memory_space<any>>) dst(%266 : memref<2x1x256xf32, #tpu.memory_space<vmem>>)
    %c11_i32_258 = arith.constant 11 : i32
    %c0_i32_259 = arith.constant 0 : i32
    %c0_i32_260 = arith.constant 0 : i32
    %269 = tpu.memref_slice %arg2[%c0_i32_259, %80, %c0_i32_260] : memref<2x64x256xf32, #tpu.memory_space<any>> -> memref<2x1x256xf32, #tpu.memory_space<any>>
    %c0_i32_261 = arith.constant 0 : i32
    %c11_i32_262 = arith.constant 11 : i32
    %c0_i32_263 = arith.constant 0 : i32
    %270 = tpu.memref_slice %arg5[%c0_i32_261, %c11_i32_262, %c0_i32_263] : memref<2x32x256xf32, #tpu.memory_space<vmem>> -> memref<2x1x256xf32, #tpu.memory_space<vmem>>
    %271 = tpu.memref_slice %arg6[%c11_i32_258] : memref<32x!tpu.dma_semaphore, #tpu.memory_space<semaphore_mem>> -> memref<1x!tpu.dma_semaphore, #tpu.memory_space<semaphore_mem>>
    %272 = tpu.memref_squeeze %271 : memref<1x!tpu.dma_semaphore, #tpu.memory_space<semaphore_mem>> -> memref<!tpu.dma_semaphore, #tpu.memory_space<semaphore_mem>>
    tpu.wait_dma2 semaphore(%272 : memref<!tpu.dma_semaphore, #tpu.memory_space<semaphore_mem>>) src(%269 : memref<2x1x256xf32, #tpu.memory_space<any>>) dst(%270 : memref<2x1x256xf32, #tpu.memory_space<vmem>>)
    %c12_i32_264 = arith.constant 12 : i32
    %c0_i32_265 = arith.constant 0 : i32
    %c0_i32_266 = arith.constant 0 : i32
    %273 = tpu.memref_slice %arg2[%c0_i32_265, %87, %c0_i32_266] : memref<2x64x256xf32, #tpu.memory_space<any>> -> memref<2x1x256xf32, #tpu.memory_space<any>>
    %c0_i32_267 = arith.constant 0 : i32
    %c12_i32_268 = arith.constant 12 : i32
    %c0_i32_269 = arith.constant 0 : i32
    %274 = tpu.memref_slice %arg5[%c0_i32_267, %c12_i32_268, %c0_i32_269] : memref<2x32x256xf32, #tpu.memory_space<vmem>> -> memref<2x1x256xf32, #tpu.memory_space<vmem>>
    %275 = tpu.memref_slice %arg6[%c12_i32_264] : memref<32x!tpu.dma_semaphore, #tpu.memory_space<semaphore_mem>> -> memref<1x!tpu.dma_semaphore, #tpu.memory_space<semaphore_mem>>
    %276 = tpu.memref_squeeze %275 : memref<1x!tpu.dma_semaphore, #tpu.memory_space<semaphore_mem>> -> memref<!tpu.dma_semaphore, #tpu.memory_space<semaphore_mem>>
    tpu.wait_dma2 semaphore(%276 : memref<!tpu.dma_semaphore, #tpu.memory_space<semaphore_mem>>) src(%273 : memref<2x1x256xf32, #tpu.memory_space<any>>) dst(%274 : memref<2x1x256xf32, #tpu.memory_space<vmem>>)
    %c13_i32_270 = arith.constant 13 : i32
    %c0_i32_271 = arith.constant 0 : i32
    %c0_i32_272 = arith.constant 0 : i32
    %277 = tpu.memref_slice %arg2[%c0_i32_271, %94, %c0_i32_272] : memref<2x64x256xf32, #tpu.memory_space<any>> -> memref<2x1x256xf32, #tpu.memory_space<any>>
    %c0_i32_273 = arith.constant 0 : i32
    %c13_i32_274 = arith.constant 13 : i32
    %c0_i32_275 = arith.constant 0 : i32
    %278 = tpu.memref_slice %arg5[%c0_i32_273, %c13_i32_274, %c0_i32_275] : memref<2x32x256xf32, #tpu.memory_space<vmem>> -> memref<2x1x256xf32, #tpu.memory_space<vmem>>
    %279 = tpu.memref_slice %arg6[%c13_i32_270] : memref<32x!tpu.dma_semaphore, #tpu.memory_space<semaphore_mem>> -> memref<1x!tpu.dma_semaphore, #tpu.memory_space<semaphore_mem>>
    %280 = tpu.memref_squeeze %279 : memref<1x!tpu.dma_semaphore, #tpu.memory_space<semaphore_mem>> -> memref<!tpu.dma_semaphore, #tpu.memory_space<semaphore_mem>>
    tpu.wait_dma2 semaphore(%280 : memref<!tpu.dma_semaphore, #tpu.memory_space<semaphore_mem>>) src(%277 : memref<2x1x256xf32, #tpu.memory_space<any>>) dst(%278 : memref<2x1x256xf32, #tpu.memory_space<vmem>>)
    %c14_i32_276 = arith.constant 14 : i32
    %c0_i32_277 = arith.constant 0 : i32
    %c0_i32_278 = arith.constant 0 : i32
    %281 = tpu.memref_slice %arg2[%c0_i32_277, %101, %c0_i32_278] : memref<2x64x256xf32, #tpu.memory_space<any>> -> memref<2x1x256xf32, #tpu.memory_space<any>>
    %c0_i32_279 = arith.constant 0 : i32
    %c14_i32_280 = arith.constant 14 : i32
    %c0_i32_281 = arith.constant 0 : i32
    %282 = tpu.memref_slice %arg5[%c0_i32_279, %c14_i32_280, %c0_i32_281] : memref<2x32x256xf32, #tpu.memory_space<vmem>> -> memref<2x1x256xf32, #tpu.memory_space<vmem>>
    %283 = tpu.memref_slice %arg6[%c14_i32_276] : memref<32x!tpu.dma_semaphore, #tpu.memory_space<semaphore_mem>> -> memref<1x!tpu.dma_semaphore, #tpu.memory_space<semaphore_mem>>
    %284 = tpu.memref_squeeze %283 : memref<1x!tpu.dma_semaphore, #tpu.memory_space<semaphore_mem>> -> memref<!tpu.dma_semaphore, #tpu.memory_space<semaphore_mem>>
    tpu.wait_dma2 semaphore(%284 : memref<!tpu.dma_semaphore, #tpu.memory_space<semaphore_mem>>) src(%281 : memref<2x1x256xf32, #tpu.memory_space<any>>) dst(%282 : memref<2x1x256xf32, #tpu.memory_space<vmem>>)
    %c15_i32_282 = arith.constant 15 : i32
    %c0_i32_283 = arith.constant 0 : i32
    %c0_i32_284 = arith.constant 0 : i32
    %285 = tpu.memref_slice %arg2[%c0_i32_283, %108, %c0_i32_284] : memref<2x64x256xf32, #tpu.memory_space<any>> -> memref<2x1x256xf32, #tpu.memory_space<any>>
    %c0_i32_285 = arith.constant 0 : i32
    %c15_i32_286 = arith.constant 15 : i32
    %c0_i32_287 = arith.constant 0 : i32
    %286 = tpu.memref_slice %arg5[%c0_i32_285, %c15_i32_286, %c0_i32_287] : memref<2x32x256xf32, #tpu.memory_space<vmem>> -> memref<2x1x256xf32, #tpu.memory_space<vmem>>
    %287 = tpu.memref_slice %arg6[%c15_i32_282] : memref<32x!tpu.dma_semaphore, #tpu.memory_space<semaphore_mem>> -> memref<1x!tpu.dma_semaphore, #tpu.memory_space<semaphore_mem>>
    %288 = tpu.memref_squeeze %287 : memref<1x!tpu.dma_semaphore, #tpu.memory_space<semaphore_mem>> -> memref<!tpu.dma_semaphore, #tpu.memory_space<semaphore_mem>>
    tpu.wait_dma2 semaphore(%288 : memref<!tpu.dma_semaphore, #tpu.memory_space<semaphore_mem>>) src(%285 : memref<2x1x256xf32, #tpu.memory_space<any>>) dst(%286 : memref<2x1x256xf32, #tpu.memory_space<vmem>>)
    %c16_i32_288 = arith.constant 16 : i32
    %c0_i32_289 = arith.constant 0 : i32
    %c0_i32_290 = arith.constant 0 : i32
    %289 = tpu.memref_slice %arg2[%c0_i32_289, %115, %c0_i32_290] : memref<2x64x256xf32, #tpu.memory_space<any>> -> memref<2x1x256xf32, #tpu.memory_space<any>>
    %c0_i32_291 = arith.constant 0 : i32
    %c16_i32_292 = arith.constant 16 : i32
    %c0_i32_293 = arith.constant 0 : i32
    %290 = tpu.memref_slice %arg5[%c0_i32_291, %c16_i32_292, %c0_i32_293] : memref<2x32x256xf32, #tpu.memory_space<vmem>> -> memref<2x1x256xf32, #tpu.memory_space<vmem>>
    %291 = tpu.memref_slice %arg6[%c16_i32_288] : memref<32x!tpu.dma_semaphore, #tpu.memory_space<semaphore_mem>> -> memref<1x!tpu.dma_semaphore, #tpu.memory_space<semaphore_mem>>
    %292 = tpu.memref_squeeze %291 : memref<1x!tpu.dma_semaphore, #tpu.memory_space<semaphore_mem>> -> memref<!tpu.dma_semaphore, #tpu.memory_space<semaphore_mem>>
    tpu.wait_dma2 semaphore(%292 : memref<!tpu.dma_semaphore, #tpu.memory_space<semaphore_mem>>) src(%289 : memref<2x1x256xf32, #tpu.memory_space<any>>) dst(%290 : memref<2x1x256xf32, #tpu.memory_space<vmem>>)
    %c17_i32_294 = arith.constant 17 : i32
    %c0_i32_295 = arith.constant 0 : i32
    %c0_i32_296 = arith.constant 0 : i32
    %293 = tpu.memref_slice %arg2[%c0_i32_295, %122, %c0_i32_296] : memref<2x64x256xf32, #tpu.memory_space<any>> -> memref<2x1x256xf32, #tpu.memory_space<any>>
    %c0_i32_297 = arith.constant 0 : i32
    %c17_i32_298 = arith.constant 17 : i32
    %c0_i32_299 = arith.constant 0 : i32
    %294 = tpu.memref_slice %arg5[%c0_i32_297, %c17_i32_298, %c0_i32_299] : memref<2x32x256xf32, #tpu.memory_space<vmem>> -> memref<2x1x256xf32, #tpu.memory_space<vmem>>
    %295 = tpu.memref_slice %arg6[%c17_i32_294] : memref<32x!tpu.dma_semaphore, #tpu.memory_space<semaphore_mem>> -> memref<1x!tpu.dma_semaphore, #tpu.memory_space<semaphore_mem>>
    %296 = tpu.memref_squeeze %295 : memref<1x!tpu.dma_semaphore, #tpu.memory_space<semaphore_mem>> -> memref<!tpu.dma_semaphore, #tpu.memory_space<semaphore_mem>>
    tpu.wait_dma2 semaphore(%296 : memref<!tpu.dma_semaphore, #tpu.memory_space<semaphore_mem>>) src(%293 : memref<2x1x256xf32, #tpu.memory_space<any>>) dst(%294 : memref<2x1x256xf32, #tpu.memory_space<vmem>>)
    %c18_i32_300 = arith.constant 18 : i32
    %c0_i32_301 = arith.constant 0 : i32
    %c0_i32_302 = arith.constant 0 : i32
    %297 = tpu.memref_slice %arg2[%c0_i32_301, %129, %c0_i32_302] : memref<2x64x256xf32, #tpu.memory_space<any>> -> memref<2x1x256xf32, #tpu.memory_space<any>>
    %c0_i32_303 = arith.constant 0 : i32
    %c18_i32_304 = arith.constant 18 : i32
    %c0_i32_305 = arith.constant 0 : i32
    %298 = tpu.memref_slice %arg5[%c0_i32_303, %c18_i32_304, %c0_i32_305] : memref<2x32x256xf32, #tpu.memory_space<vmem>> -> memref<2x1x256xf32, #tpu.memory_space<vmem>>
    %299 = tpu.memref_slice %arg6[%c18_i32_300] : memref<32x!tpu.dma_semaphore, #tpu.memory_space<semaphore_mem>> -> memref<1x!tpu.dma_semaphore, #tpu.memory_space<semaphore_mem>>
    %300 = tpu.memref_squeeze %299 : memref<1x!tpu.dma_semaphore, #tpu.memory_space<semaphore_mem>> -> memref<!tpu.dma_semaphore, #tpu.memory_space<semaphore_mem>>
    tpu.wait_dma2 semaphore(%300 : memref<!tpu.dma_semaphore, #tpu.memory_space<semaphore_mem>>) src(%297 : memref<2x1x256xf32, #tpu.memory_space<any>>) dst(%298 : memref<2x1x256xf32, #tpu.memory_space<vmem>>)
    %c19_i32_306 = arith.constant 19 : i32
    %c0_i32_307 = arith.constant 0 : i32
    %c0_i32_308 = arith.constant 0 : i32
    %301 = tpu.memref_slice %arg2[%c0_i32_307, %136, %c0_i32_308] : memref<2x64x256xf32, #tpu.memory_space<any>> -> memref<2x1x256xf32, #tpu.memory_space<any>>
    %c0_i32_309 = arith.constant 0 : i32
    %c19_i32_310 = arith.constant 19 : i32
    %c0_i32_311 = arith.constant 0 : i32
    %302 = tpu.memref_slice %arg5[%c0_i32_309, %c19_i32_310, %c0_i32_311] : memref<2x32x256xf32, #tpu.memory_space<vmem>> -> memref<2x1x256xf32, #tpu.memory_space<vmem>>
    %303 = tpu.memref_slice %arg6[%c19_i32_306] : memref<32x!tpu.dma_semaphore, #tpu.memory_space<semaphore_mem>> -> memref<1x!tpu.dma_semaphore, #tpu.memory_space<semaphore_mem>>
    %304 = tpu.memref_squeeze %303 : memref<1x!tpu.dma_semaphore, #tpu.memory_space<semaphore_mem>> -> memref<!tpu.dma_semaphore, #tpu.memory_space<semaphore_mem>>
    tpu.wait_dma2 semaphore(%304 : memref<!tpu.dma_semaphore, #tpu.memory_space<semaphore_mem>>) src(%301 : memref<2x1x256xf32, #tpu.memory_space<any>>) dst(%302 : memref<2x1x256xf32, #tpu.memory_space<vmem>>)
    %c20_i32_312 = arith.constant 20 : i32
    %c0_i32_313 = arith.constant 0 : i32
    %c0_i32_314 = arith.constant 0 : i32
    %305 = tpu.memref_slice %arg2[%c0_i32_313, %143, %c0_i32_314] : memref<2x64x256xf32, #tpu.memory_space<any>> -> memref<2x1x256xf32, #tpu.memory_space<any>>
    %c0_i32_315 = arith.constant 0 : i32
    %c20_i32_316 = arith.constant 20 : i32
    %c0_i32_317 = arith.constant 0 : i32
    %306 = tpu.memref_slice %arg5[%c0_i32_315, %c20_i32_316, %c0_i32_317] : memref<2x32x256xf32, #tpu.memory_space<vmem>> -> memref<2x1x256xf32, #tpu.memory_space<vmem>>
    %307 = tpu.memref_slice %arg6[%c20_i32_312] : memref<32x!tpu.dma_semaphore, #tpu.memory_space<semaphore_mem>> -> memref<1x!tpu.dma_semaphore, #tpu.memory_space<semaphore_mem>>
    %308 = tpu.memref_squeeze %307 : memref<1x!tpu.dma_semaphore, #tpu.memory_space<semaphore_mem>> -> memref<!tpu.dma_semaphore, #tpu.memory_space<semaphore_mem>>
    tpu.wait_dma2 semaphore(%308 : memref<!tpu.dma_semaphore, #tpu.memory_space<semaphore_mem>>) src(%305 : memref<2x1x256xf32, #tpu.memory_space<any>>) dst(%306 : memref<2x1x256xf32, #tpu.memory_space<vmem>>)
    %c21_i32_318 = arith.constant 21 : i32
    %c0_i32_319 = arith.constant 0 : i32
    %c0_i32_320 = arith.constant 0 : i32
    %309 = tpu.memref_slice %arg2[%c0_i32_319, %150, %c0_i32_320] : memref<2x64x256xf32, #tpu.memory_space<any>> -> memref<2x1x256xf32, #tpu.memory_space<any>>
    %c0_i32_321 = arith.constant 0 : i32
    %c21_i32_322 = arith.constant 21 : i32
    %c0_i32_323 = arith.constant 0 : i32
    %310 = tpu.memref_slice %arg5[%c0_i32_321, %c21_i32_322, %c0_i32_323] : memref<2x32x256xf32, #tpu.memory_space<vmem>> -> memref<2x1x256xf32, #tpu.memory_space<vmem>>
    %311 = tpu.memref_slice %arg6[%c21_i32_318] : memref<32x!tpu.dma_semaphore, #tpu.memory_space<semaphore_mem>> -> memref<1x!tpu.dma_semaphore, #tpu.memory_space<semaphore_mem>>
    %312 = tpu.memref_squeeze %311 : memref<1x!tpu.dma_semaphore, #tpu.memory_space<semaphore_mem>> -> memref<!tpu.dma_semaphore, #tpu.memory_space<semaphore_mem>>
    tpu.wait_dma2 semaphore(%312 : memref<!tpu.dma_semaphore, #tpu.memory_space<semaphore_mem>>) src(%309 : memref<2x1x256xf32, #tpu.memory_space<any>>) dst(%310 : memref<2x1x256xf32, #tpu.memory_space<vmem>>)
    %c22_i32_324 = arith.constant 22 : i32
    %c0_i32_325 = arith.constant 0 : i32
    %c0_i32_326 = arith.constant 0 : i32
    %313 = tpu.memref_slice %arg2[%c0_i32_325, %157, %c0_i32_326] : memref<2x64x256xf32, #tpu.memory_space<any>> -> memref<2x1x256xf32, #tpu.memory_space<any>>
    %c0_i32_327 = arith.constant 0 : i32
    %c22_i32_328 = arith.constant 22 : i32
    %c0_i32_329 = arith.constant 0 : i32
    %314 = tpu.memref_slice %arg5[%c0_i32_327, %c22_i32_328, %c0_i32_329] : memref<2x32x256xf32, #tpu.memory_space<vmem>> -> memref<2x1x256xf32, #tpu.memory_space<vmem>>
    %315 = tpu.memref_slice %arg6[%c22_i32_324] : memref<32x!tpu.dma_semaphore, #tpu.memory_space<semaphore_mem>> -> memref<1x!tpu.dma_semaphore, #tpu.memory_space<semaphore_mem>>
    %316 = tpu.memref_squeeze %315 : memref<1x!tpu.dma_semaphore, #tpu.memory_space<semaphore_mem>> -> memref<!tpu.dma_semaphore, #tpu.memory_space<semaphore_mem>>
    tpu.wait_dma2 semaphore(%316 : memref<!tpu.dma_semaphore, #tpu.memory_space<semaphore_mem>>) src(%313 : memref<2x1x256xf32, #tpu.memory_space<any>>) dst(%314 : memref<2x1x256xf32, #tpu.memory_space<vmem>>)
    %c23_i32_330 = arith.constant 23 : i32
    %c0_i32_331 = arith.constant 0 : i32
    %c0_i32_332 = arith.constant 0 : i32
    %317 = tpu.memref_slice %arg2[%c0_i32_331, %164, %c0_i32_332] : memref<2x64x256xf32, #tpu.memory_space<any>> -> memref<2x1x256xf32, #tpu.memory_space<any>>
    %c0_i32_333 = arith.constant 0 : i32
    %c23_i32_334 = arith.constant 23 : i32
    %c0_i32_335 = arith.constant 0 : i32
    %318 = tpu.memref_slice %arg5[%c0_i32_333, %c23_i32_334, %c0_i32_335] : memref<2x32x256xf32, #tpu.memory_space<vmem>> -> memref<2x1x256xf32, #tpu.memory_space<vmem>>
    %319 = tpu.memref_slice %arg6[%c23_i32_330] : memref<32x!tpu.dma_semaphore, #tpu.memory_space<semaphore_mem>> -> memref<1x!tpu.dma_semaphore, #tpu.memory_space<semaphore_mem>>
    %320 = tpu.memref_squeeze %319 : memref<1x!tpu.dma_semaphore, #tpu.memory_space<semaphore_mem>> -> memref<!tpu.dma_semaphore, #tpu.memory_space<semaphore_mem>>
    tpu.wait_dma2 semaphore(%320 : memref<!tpu.dma_semaphore, #tpu.memory_space<semaphore_mem>>) src(%317 : memref<2x1x256xf32, #tpu.memory_space<any>>) dst(%318 : memref<2x1x256xf32, #tpu.memory_space<vmem>>)
    %c24_i32_336 = arith.constant 24 : i32
    %c0_i32_337 = arith.constant 0 : i32
    %c0_i32_338 = arith.constant 0 : i32
    %321 = tpu.memref_slice %arg2[%c0_i32_337, %171, %c0_i32_338] : memref<2x64x256xf32, #tpu.memory_space<any>> -> memref<2x1x256xf32, #tpu.memory_space<any>>
    %c0_i32_339 = arith.constant 0 : i32
    %c24_i32_340 = arith.constant 24 : i32
    %c0_i32_341 = arith.constant 0 : i32
    %322 = tpu.memref_slice %arg5[%c0_i32_339, %c24_i32_340, %c0_i32_341] : memref<2x32x256xf32, #tpu.memory_space<vmem>> -> memref<2x1x256xf32, #tpu.memory_space<vmem>>
    %323 = tpu.memref_slice %arg6[%c24_i32_336] : memref<32x!tpu.dma_semaphore, #tpu.memory_space<semaphore_mem>> -> memref<1x!tpu.dma_semaphore, #tpu.memory_space<semaphore_mem>>
    %324 = tpu.memref_squeeze %323 : memref<1x!tpu.dma_semaphore, #tpu.memory_space<semaphore_mem>> -> memref<!tpu.dma_semaphore, #tpu.memory_space<semaphore_mem>>
    tpu.wait_dma2 semaphore(%324 : memref<!tpu.dma_semaphore, #tpu.memory_space<semaphore_mem>>) src(%321 : memref<2x1x256xf32, #tpu.memory_space<any>>) dst(%322 : memref<2x1x256xf32, #tpu.memory_space<vmem>>)
    %c25_i32_342 = arith.constant 25 : i32
    %c0_i32_343 = arith.constant 0 : i32
    %c0_i32_344 = arith.constant 0 : i32
    %325 = tpu.memref_slice %arg2[%c0_i32_343, %178, %c0_i32_344] : memref<2x64x256xf32, #tpu.memory_space<any>> -> memref<2x1x256xf32, #tpu.memory_space<any>>
    %c0_i32_345 = arith.constant 0 : i32
    %c25_i32_346 = arith.constant 25 : i32
    %c0_i32_347 = arith.constant 0 : i32
    %326 = tpu.memref_slice %arg5[%c0_i32_345, %c25_i32_346, %c0_i32_347] : memref<2x32x256xf32, #tpu.memory_space<vmem>> -> memref<2x1x256xf32, #tpu.memory_space<vmem>>
    %327 = tpu.memref_slice %arg6[%c25_i32_342] : memref<32x!tpu.dma_semaphore, #tpu.memory_space<semaphore_mem>> -> memref<1x!tpu.dma_semaphore, #tpu.memory_space<semaphore_mem>>
    %328 = tpu.memref_squeeze %327 : memref<1x!tpu.dma_semaphore, #tpu.memory_space<semaphore_mem>> -> memref<!tpu.dma_semaphore, #tpu.memory_space<semaphore_mem>>
    tpu.wait_dma2 semaphore(%328 : memref<!tpu.dma_semaphore, #tpu.memory_space<semaphore_mem>>) src(%325 : memref<2x1x256xf32, #tpu.memory_space<any>>) dst(%326 : memref<2x1x256xf32, #tpu.memory_space<vmem>>)
    %c26_i32_348 = arith.constant 26 : i32
    %c0_i32_349 = arith.constant 0 : i32
    %c0_i32_350 = arith.constant 0 : i32
    %329 = tpu.memref_slice %arg2[%c0_i32_349, %185, %c0_i32_350] : memref<2x64x256xf32, #tpu.memory_space<any>> -> memref<2x1x256xf32, #tpu.memory_space<any>>
    %c0_i32_351 = arith.constant 0 : i32
    %c26_i32_352 = arith.constant 26 : i32
    %c0_i32_353 = arith.constant 0 : i32
    %330 = tpu.memref_slice %arg5[%c0_i32_351, %c26_i32_352, %c0_i32_353] : memref<2x32x256xf32, #tpu.memory_space<vmem>> -> memref<2x1x256xf32, #tpu.memory_space<vmem>>
    %331 = tpu.memref_slice %arg6[%c26_i32_348] : memref<32x!tpu.dma_semaphore, #tpu.memory_space<semaphore_mem>> -> memref<1x!tpu.dma_semaphore, #tpu.memory_space<semaphore_mem>>
    %332 = tpu.memref_squeeze %331 : memref<1x!tpu.dma_semaphore, #tpu.memory_space<semaphore_mem>> -> memref<!tpu.dma_semaphore, #tpu.memory_space<semaphore_mem>>
    tpu.wait_dma2 semaphore(%332 : memref<!tpu.dma_semaphore, #tpu.memory_space<semaphore_mem>>) src(%329 : memref<2x1x256xf32, #tpu.memory_space<any>>) dst(%330 : memref<2x1x256xf32, #tpu.memory_space<vmem>>)
    %c27_i32_354 = arith.constant 27 : i32
    %c0_i32_355 = arith.constant 0 : i32
    %c0_i32_356 = arith.constant 0 : i32
    %333 = tpu.memref_slice %arg2[%c0_i32_355, %192, %c0_i32_356] : memref<2x64x256xf32, #tpu.memory_space<any>> -> memref<2x1x256xf32, #tpu.memory_space<any>>
    %c0_i32_357 = arith.constant 0 : i32
    %c27_i32_358 = arith.constant 27 : i32
    %c0_i32_359 = arith.constant 0 : i32
    %334 = tpu.memref_slice %arg5[%c0_i32_357, %c27_i32_358, %c0_i32_359] : memref<2x32x256xf32, #tpu.memory_space<vmem>> -> memref<2x1x256xf32, #tpu.memory_space<vmem>>
    %335 = tpu.memref_slice %arg6[%c27_i32_354] : memref<32x!tpu.dma_semaphore, #tpu.memory_space<semaphore_mem>> -> memref<1x!tpu.dma_semaphore, #tpu.memory_space<semaphore_mem>>
    %336 = tpu.memref_squeeze %335 : memref<1x!tpu.dma_semaphore, #tpu.memory_space<semaphore_mem>> -> memref<!tpu.dma_semaphore, #tpu.memory_space<semaphore_mem>>
    tpu.wait_dma2 semaphore(%336 : memref<!tpu.dma_semaphore, #tpu.memory_space<semaphore_mem>>) src(%333 : memref<2x1x256xf32, #tpu.memory_space<any>>) dst(%334 : memref<2x1x256xf32, #tpu.memory_space<vmem>>)
    %c28_i32_360 = arith.constant 28 : i32
    %c0_i32_361 = arith.constant 0 : i32
    %c0_i32_362 = arith.constant 0 : i32
    %337 = tpu.memref_slice %arg2[%c0_i32_361, %199, %c0_i32_362] : memref<2x64x256xf32, #tpu.memory_space<any>> -> memref<2x1x256xf32, #tpu.memory_space<any>>
    %c0_i32_363 = arith.constant 0 : i32
    %c28_i32_364 = arith.constant 28 : i32
    %c0_i32_365 = arith.constant 0 : i32
    %338 = tpu.memref_slice %arg5[%c0_i32_363, %c28_i32_364, %c0_i32_365] : memref<2x32x256xf32, #tpu.memory_space<vmem>> -> memref<2x1x256xf32, #tpu.memory_space<vmem>>
    %339 = tpu.memref_slice %arg6[%c28_i32_360] : memref<32x!tpu.dma_semaphore, #tpu.memory_space<semaphore_mem>> -> memref<1x!tpu.dma_semaphore, #tpu.memory_space<semaphore_mem>>
    %340 = tpu.memref_squeeze %339 : memref<1x!tpu.dma_semaphore, #tpu.memory_space<semaphore_mem>> -> memref<!tpu.dma_semaphore, #tpu.memory_space<semaphore_mem>>
    tpu.wait_dma2 semaphore(%340 : memref<!tpu.dma_semaphore, #tpu.memory_space<semaphore_mem>>) src(%337 : memref<2x1x256xf32, #tpu.memory_space<any>>) dst(%338 : memref<2x1x256xf32, #tpu.memory_space<vmem>>)
    %c29_i32_366 = arith.constant 29 : i32
    %c0_i32_367 = arith.constant 0 : i32
    %c0_i32_368 = arith.constant 0 : i32
    %341 = tpu.memref_slice %arg2[%c0_i32_367, %206, %c0_i32_368] : memref<2x64x256xf32, #tpu.memory_space<any>> -> memref<2x1x256xf32, #tpu.memory_space<any>>
    %c0_i32_369 = arith.constant 0 : i32
    %c29_i32_370 = arith.constant 29 : i32
    %c0_i32_371 = arith.constant 0 : i32
    %342 = tpu.memref_slice %arg5[%c0_i32_369, %c29_i32_370, %c0_i32_371] : memref<2x32x256xf32, #tpu.memory_space<vmem>> -> memref<2x1x256xf32, #tpu.memory_space<vmem>>
    %343 = tpu.memref_slice %arg6[%c29_i32_366] : memref<32x!tpu.dma_semaphore, #tpu.memory_space<semaphore_mem>> -> memref<1x!tpu.dma_semaphore, #tpu.memory_space<semaphore_mem>>
    %344 = tpu.memref_squeeze %343 : memref<1x!tpu.dma_semaphore, #tpu.memory_space<semaphore_mem>> -> memref<!tpu.dma_semaphore, #tpu.memory_space<semaphore_mem>>
    tpu.wait_dma2 semaphore(%344 : memref<!tpu.dma_semaphore, #tpu.memory_space<semaphore_mem>>) src(%341 : memref<2x1x256xf32, #tpu.memory_space<any>>) dst(%342 : memref<2x1x256xf32, #tpu.memory_space<vmem>>)
    %c30_i32_372 = arith.constant 30 : i32
    %c0_i32_373 = arith.constant 0 : i32
    %c0_i32_374 = arith.constant 0 : i32
    %345 = tpu.memref_slice %arg2[%c0_i32_373, %213, %c0_i32_374] : memref<2x64x256xf32, #tpu.memory_space<any>> -> memref<2x1x256xf32, #tpu.memory_space<any>>
    %c0_i32_375 = arith.constant 0 : i32
    %c30_i32_376 = arith.constant 30 : i32
    %c0_i32_377 = arith.constant 0 : i32
    %346 = tpu.memref_slice %arg5[%c0_i32_375, %c30_i32_376, %c0_i32_377] : memref<2x32x256xf32, #tpu.memory_space<vmem>> -> memref<2x1x256xf32, #tpu.memory_space<vmem>>
    %347 = tpu.memref_slice %arg6[%c30_i32_372] : memref<32x!tpu.dma_semaphore, #tpu.memory_space<semaphore_mem>> -> memref<1x!tpu.dma_semaphore, #tpu.memory_space<semaphore_mem>>
    %348 = tpu.memref_squeeze %347 : memref<1x!tpu.dma_semaphore, #tpu.memory_space<semaphore_mem>> -> memref<!tpu.dma_semaphore, #tpu.memory_space<semaphore_mem>>
    tpu.wait_dma2 semaphore(%348 : memref<!tpu.dma_semaphore, #tpu.memory_space<semaphore_mem>>) src(%345 : memref<2x1x256xf32, #tpu.memory_space<any>>) dst(%346 : memref<2x1x256xf32, #tpu.memory_space<vmem>>)
    %c31_i32_378 = arith.constant 31 : i32
    %c0_i32_379 = arith.constant 0 : i32
    %c0_i32_380 = arith.constant 0 : i32
    %349 = tpu.memref_slice %arg2[%c0_i32_379, %220, %c0_i32_380] : memref<2x64x256xf32, #tpu.memory_space<any>> -> memref<2x1x256xf32, #tpu.memory_space<any>>
    %c0_i32_381 = arith.constant 0 : i32
    %c31_i32_382 = arith.constant 31 : i32
    %c0_i32_383 = arith.constant 0 : i32
    %350 = tpu.memref_slice %arg5[%c0_i32_381, %c31_i32_382, %c0_i32_383] : memref<2x32x256xf32, #tpu.memory_space<vmem>> -> memref<2x1x256xf32, #tpu.memory_space<vmem>>
    %351 = tpu.memref_slice %arg6[%c31_i32_378] : memref<32x!tpu.dma_semaphore, #tpu.memory_space<semaphore_mem>> -> memref<1x!tpu.dma_semaphore, #tpu.memory_space<semaphore_mem>>
    %352 = tpu.memref_squeeze %351 : memref<1x!tpu.dma_semaphore, #tpu.memory_space<semaphore_mem>> -> memref<!tpu.dma_semaphore, #tpu.memory_space<semaphore_mem>>
    tpu.wait_dma2 semaphore(%352 : memref<!tpu.dma_semaphore, #tpu.memory_space<semaphore_mem>>) src(%349 : memref<2x1x256xf32, #tpu.memory_space<any>>) dst(%350 : memref<2x1x256xf32, #tpu.memory_space<vmem>>)
    %c0 = arith.constant 0 : index
    %c0_384 = arith.constant 0 : index
    %c0_385 = arith.constant 0 : index
    %353 = vector.load %arg5[%c0, %c0_384, %c0_385] : memref<2x32x256xf32, #tpu.memory_space<vmem>>, vector<2x32x256xf32>
    %c0_386 = arith.constant 0 : index
    %c0_387 = arith.constant 0 : index
    %354 = vector.load %arg3[%c0_386, %c0_387] : memref<32x256xf32, #tpu.memory_space<vmem>>, vector<32x256xf32>
    %355 = vector.shape_cast %354 : vector<32x256xf32> to vector<1x32x256xf32>
    %356 = vector.broadcast %355 : vector<1x32x256xf32> to vector<2x32x256xf32>
    %357 = arith.mulf %353, %356 : vector<2x32x256xf32>
    %c0_388 = arith.constant 0 : index
    %c0_389 = arith.constant 0 : index
    %c0_390 = arith.constant 0 : index
    %358 = vector.load %arg4[%c0_388, %c0_389, %c0_390] : memref<2x32x256xf32, #tpu.memory_space<vmem>>, vector<2x32x256xf32>
    tpu.vector_store %arg4[%c0_388, %c0_389, %c0_390], %357 {strides = array<i32>} : memref<2x32x256xf32, #tpu.memory_space<vmem>>, vector<2x32x256xf32>,
    return
  }
  func.func @transform_1(%arg0: i32, %arg1: memref<64xi32, #tpu.memory_space<smem>>) -> (i32, i32) {
    %c0_i32 = arith.constant 0 : i32
    %c0_i32_0 = arith.constant 0 : i32
    return %arg0, %c0_i32 : i32, i32
  }
  func.func @transform_2(%arg0: i32, %arg1: memref<64xi32, #tpu.memory_space<smem>>) -> (i32, i32, i32) {
    %c0_i32 = arith.constant 0 : i32
    %c0_i32_0 = arith.constant 0 : i32
    %c0_i32_1 = arith.constant 0 : i32
    return %c0_i32, %arg0, %c0_i32_0 : i32, i32, i32
  }
}

</mosaic_0001>

<bundles_post_ra>
// kernel: tpu_custom_call.1
= control target key start
LH: loop header
LB: loop body
LE: loop exit
PB: predicated region body
PF: predicated region fallthrough
CT: control target
= control target key end

     0   :  { %s2718_s15 = smov [#allocation5]   ;;  %s3441_s0 = inlined_call_operand.hbm [shape: s32[64], index: 0, kind: input, shape index: {}]   ;;  %s3442_s1 = inlined_call_operand.hbm [shape: f32[2,64,256], index: 1, kind: input, shape index: {}]   ;;  %s3443_s2 = inlined_call_operand.hbm [shape: f32[64,256], index: 2, kind: input, shape index: {}]   ;;  %s3444_s3 = inlined_call_operand.vmem [shape: f32[2,52,256], index: 3, kind: output, shape index: {}]  }
   0x1   :  { %3451 = sst [smem:[#allocation107_spill]] %s3443_s2  ;;  %s9_s14 = sshll.u32 %s3441_s0, 4  ;;  %s10_s14 = int_to_ptr.hbm [resolvable:$true] %s9_s14 }
   0x2   :  { %12 = dma.hbm_to_smem %s10_s14, 16, %s2718_s15, [#allocation4] }
   0x3   :  { %2600 = dma.done.wait [#allocation4], 16 }
   0x4   :  { %2601 = vsyncadd [#allocation4], 4294967280 }
   0x5   :  { %15 = sfence }
   0x6   :  { %16 = vsyncpa [#allocation7], 0 }
   0x7   :  { %18 = vsyncpa [#allocation7 + $0x1], 0  ;;  %s2845_s16 = smov 0   ;;  %s2847_s17 = smov 0  }
   0x8   :  { %s2849_s18 = smov 0   ;;  %s2851_s19 = smov 0  }
   0x9 LB: > { %s2864_s0 = sadd.s32 4294967295, %s2684_s19   ;;  %s2867_s20 = sadd.s32 1, %s2684_s19   ;;  %s2684_s19 = sphi %s2851_s19, %s3471_s19   ;;  %s2680_s18 = sphi %s2849_s18, %s3470_s18   ;;  %s2676_s17 = sphi %s2847_s17, %s3469_s17   ;;  %s2672_s16 = sphi %s2845_s16, %s3468_s16  }
   0xa   : > { %s28_s21 = ssub.s32 %s2684_s19, %s2867_s20  ;;  %s31_s22 = sadd.s32 1, %s2680_s18 }
   0xb   : > { %p29_p0 = scmp.eq.s32.totalorder %s28_s21, 0  ;;  %p38_p1 = scmp.ne.s32.totalorder %s2680_s18, %s2676_s17 }
   0xc   : > { %p39_p2 = scmp.eq.s32.totalorder %s2684_s19, 0  ;;  %p44_p3 = scmp.ne.s32.totalorder %s2676_s17, %s2672_s16 }
   0xd   : > { %s2877_s23 = scalar_select %p29_p0, %s2680_s18, %s31_s22  }
   0xe   : > { %p2879_p4 = por %p39_p2, %p38_p1  ;;  %p45_p5 = scmp.eq.s32.totalorder %s2864_s0, 0 }
   0xf   : > { %p68_p6 = scmp.eq.s32.totalorder %s2864_s0, 1  ;;  %p2309_p8 = scmp.lt.s32.totalorder %s2684_s19, 2 }
  0x10   : > { %p2885_p7 = por %p45_p5, %p44_p3  ;;  %s94_s27 = sand.u32 1, %s2680_s18  }
  0x11   : > { %p2890_p9 = por %p68_p6, %p38_p1  ;;  %s2141_s28 = sshll.u32 %s94_s27, 6 }
  0x12   : > { %s2297_s29 = sshll.u32 %s2684_s19, 6  ;;  %s3455_s2 = sld [smem:[#allocation107_spill]] }
  0x13   : > { %s98_s6 = scalar_lea.vmem [#allocation6], %s2141_s28  ;;  %p2901_p10 = pnand %p2309_p8, %p2879_p4 }
  0x14   : > { %s107_s7 = sshll.u32 %s98_s6, 4  ;;  %p2145_p11 = scmp.ge.s32.totalorder %s2684_s19, 1  ;;  %s108_s7 = int_to_ptr.vmem [resolvable:$true] %s107_s7 }
  0x15   : > { %s95_s10 = scalar_lea.sflag [#allocation7], %s94_s27  ;;  %p2526_p13 = pneg %p2901_p10 }
  0x18   : > { %s104_s5 = scalar_lea.hbm %s3455_s2, %s2297_s29  ;;  %s2529_s15 = scalar_lea.hbm %s3455_s2, 128 }
  0x19   : > { %s105_s8 = sshll.u32 %s104_s5, 4  ;;  %s106_s8 = int_to_ptr.hbm [resolvable:$true] %s105_s8 }
  0x1a   : > { %s2522_s11 = sshra.s32 %s106_s8, 4  ;;  %s2523_s11 = int_to_ptr.hbm [resolvable:$true] %s2522_s11 }
  0x1b   : > { %s2524_s12 = scalar_lea.hbm %s2523_s11, 64  ;;  %p2530_p2 = scmp.lt.s32.totalorder %s2523_s11, %s3455_s2 }
  0x1c   : > { %p2525_p12 = scmp.ne.s32.totalorder %s2523_s11, %s2524_s12  ;;  %p2531_p3 = scmp.lt.s32.totalorder %s2529_s15, %s2524_s12 }
  0x1e   : > { %p2527_p0 = pnand %p2526_p13, %p2525_p12  ;;  %p2532_p4 = por %p2531_p3, %p2530_p2 }
  0x20   : > { %p2528_p1 = pneg %p2527_p0 }
  0x22   : > { %p2533_p5 = pnand %p2532_p4, %p2528_p1 }
  0x24   : > { %2536 = shalt.err (!%p2533_p5)
}
  0x25   : > { %s2719_s22 = smov 256   ;;  %s2720_s24 = smov 16  }
  0x26   : > { %2308 = dma.hbm_to_vmem [thread:$0]  (!%p2901_p10), %s106_s8, 1024, %s108_s7, %s95_s10, %s2719_s22, %s2719_s22, %s2720_s24  }
  0x27   : > { %p115_p6 = scmp.lt.s32.totalorder %s2684_s19, 3 }
  0x29   : > { %p116_p8 = pnand %p2145_p11, %p115_p6 }
  0x2b   : > { %119 = sbr.rel (%p116_p8) target bundleno = 570 (0x23a), region = 24 }
  0x30   : > { %s2920_s27 = sand.u32 1, %s2676_s17  }
  0x31   : > { %s2146_s28 = sshll.u32 %s2920_s27, 6  ;;  %s122_s29 = scalar_lea.sflag [#allocation7], %s2920_s27 }
  0x32   : > { %s2924_s30 = scalar_lea.vmem [#allocation6], %s2146_s28 }
  0x33   : > { %2603 = dma.done.wait (%p2885_p7), %s122_s29, 1024  }
  0x34   : > { %2605 = vsyncadd (%p2885_p7), %s122_s29, 4294966272  ;;  %s2931_s19 = sshll.u32 %s2864_s0, 5  ;;  %s162_s5 = sld [smem:[#allocation0]]  }
  0x35   : > { %s152_s4 = sld [smem:[#allocation5 + %s2931_s19]]  ;;  %s2721_s6 = smov 2048  }
  0x36   : > { %179 = sst [smem:[#allocation10]] %s2721_s6  ;;  %s3449_s7 = smov 1024  }
  0x37   : > { %181 = sst [smem:[#allocation10 + $0x1]] %s3449_s7  ;;  %s3445_s8 = smov 2  }
  0x38   : > { %183 = sst [smem:[#allocation10 + $0x2]] %s3445_s8  ;;  %s3447_s10 = smov 128  }
  0x39   : > { %185 = sst [smem:[#allocation10 + $0x3]] %s3447_s10  ;;  %s2725_s28 = smov 1  }
  0x3a   : > { %s2150_s13 = sshll.u32 %s162_s5, 26  ;;  %187 = sst [smem:[#allocation10 + $0x4]] %s3447_s10 }
  0x3b   : > { %s153_s25 = sshrl.u32 %s152_s4, 3  ;;  %s154_s11 = sand.u32 7, %s152_s4  }
  0x3c   : > { %s2149_s12 = sshll.u32 %s153_s25, 4  ;;  %s2939_s15 = sadd.s32 134217728, %s2150_s13 }
  0x3d   : > { %s156_s14 = sadd.s32 %s2149_s12, %s154_s11  ;;  %189 = sst [smem:[#allocation10 + $0x5]] %s2725_s28 }
  0x3e   : > { %s157_s22 = scalar_lea.hbm %s3442_s1, %s156_s14  ;;  %s2726_s29 = smov [#allocation2]  }
  0x3f   : > { %s170_s24 = sshll.u32 %s157_s22, 4  ;;  %s172_s4 = sshll.u32 %s2726_s29, 4  ;;  %s171_s24 = int_to_ptr.hbm [resolvable:$true] %s170_s24  ;;  %s173_s4 = int_to_ptr.vmem [resolvable:$true] %s172_s4 }
  0x40   : > { %s2727_s25 = smov [#allocation3]   ;;  %s2728_s5 = smov [#allocation9]  }
  0x41   : > { %191 = dma.general %s171_s24, 64, %s173_s4, %s2727_s25, %s2728_s5, [#allocation10], %s2939_s15, 0  }
  0x42   : > { %s192_s11 = sadd.s32 1, %s2931_s19  ;;  %221 = sst [smem:[#allocation12]] %s2721_s6 }
  0x43   : > { %s193_s12 = sld [smem:[#allocation5 + %s192_s11]]  ;;  %s2729_s13 = smov [#allocation2 + $0x1]  }
  0x44   : > { %223 = sst [smem:[#allocation12 + $0x1]] %s3449_s7  ;;  %s214_s14 = sshll.u32 %s2729_s13, 4  ;;  %s215_s14 = int_to_ptr.vmem [resolvable:$true] %s214_s14 }
  0x45   : > { %225 = sst [smem:[#allocation12 + $0x2]] %s3445_s8  ;;  %s234_s11 = sadd.s32 2, %s2931_s19 }
  0x46   : > { %227 = sst [smem:[#allocation12 + $0x3]] %s3447_s10  ;;  %s2730_s9 = smov [#allocation3 + $0x1]  }
  0x47   : > { %229 = sst [smem:[#allocation12 + $0x4]] %s3447_s10  ;;  %s2731_s8 = smov [#allocation11]  }
  0x48   : > { %231 = sst [smem:[#allocation12 + $0x5]] %s2725_s28  ;;  %s3459_s2 = smov 1024  }
  0x49   : > { %s194_s16 = sshrl.u32 %s193_s12, 3  ;;  %s195_s21 = sand.u32 7, %s193_s12  }
  0x4a   : > { %s2152_s22 = sshll.u32 %s194_s16, 4  ;;  %s2732_s12 = smov [#allocation2 + $0x2]  }
  0x4b   : > { %s197_s24 = sadd.s32 %s2152_s22, %s195_s21  ;;  %s256_s13 = sshll.u32 %s2732_s12, 4  ;;  %s257_s13 = int_to_ptr.vmem [resolvable:$true] %s256_s13 }
  0x4c   : > { %s198_s25 = scalar_lea.hbm %s3442_s1, %s197_s24  ;;  %s3457_s16 = smov 2  }
  0x4d   : > { %s212_s5 = sshll.u32 %s198_s25, 4  ;;  %s3458_s21 = smov 128   ;;  %s213_s5 = int_to_ptr.hbm [resolvable:$true] %s212_s5 }
  0x4e   : > { %233 = dma.general %s213_s5, 64, %s215_s14, %s2730_s9, %s2731_s8, [#allocation12], %s2939_s15, 0  }
  0x4f   : > { %s235_s10 = sld [smem:[#allocation5 + %s234_s11]]  ;;  %s276_s5 = sadd.s32 3, %s2931_s19 }
  0x50   : > { %263 = sst [smem:[#allocation14]] %s2721_s6  ;;  %s2733_s11 = smov [#allocation3 + $0x2]  }
  0x51   : > { %265 = sst [smem:[#allocation14 + $0x1]] %s3449_s7  ;;  %s2734_s12 = smov [#allocation13]  }
  0x52   : > { %267 = sst [smem:[#allocation14 + $0x2]] %s3457_s16  ;;  %s2820_s14 = smov [#allocation3 + $0x1f]  }
  0x53   : > { %269 = sst [smem:[#allocation14 + $0x3]] %s3458_s21 }
  0x54   : > { %271 = sst [smem:[#allocation14 + $0x4]] %s3458_s21 }
  0x55   : > { %s236_s22 = sshrl.u32 %s235_s10, 3  ;;  %s237_s24 = sand.u32 7, %s235_s10  }
  0x56   : > { %s2155_s29 = sshll.u32 %s236_s22, 4  ;;  %273 = sst [smem:[#allocation14 + $0x5]] %s2725_s28 }
  0x57   : > { %s239_s8 = sadd.s32 %s2155_s29, %s237_s24  ;;  %s2735_s10 = smov [#allocation2 + $0x3]  }
  0x58   : > { %s240_s4 = scalar_lea.hbm %s3442_s1, %s239_s8  ;;  %s298_s22 = sshll.u32 %s2735_s10, 4  ;;  %s299_s22 = int_to_ptr.vmem [resolvable:$true] %s298_s22 }
  0x59   : > { %s254_s25 = sshll.u32 %s240_s4, 4  ;;  %s255_s25 = int_to_ptr.hbm [resolvable:$true] %s254_s25 }
  0x5a   : > { %275 = dma.general %s255_s25, 64, %s257_s13, %s2733_s11, %s2734_s12, [#allocation14], %s2939_s15, 0  }
  0x5b   : > { %s277_s7 = sld [smem:[#allocation5 + %s276_s5]]  ;;  %s318_s5 = sadd.s32 4, %s2931_s19 }
  0x5c   : > { %305 = sst [smem:[#allocation16]] %s2721_s6  ;;  %s2736_s11 = smov [#allocation3 + $0x3]  }
  0x5d   : > { %307 = sst [smem:[#allocation16 + $0x1]] %s3459_s2  ;;  %s2737_s12 = smov [#allocation15]  }
  0x5e   : > { %309 = sst [smem:[#allocation16 + $0x2]] %s3457_s16 }
  0x5f   : > { %311 = sst [smem:[#allocation16 + $0x3]] %s3458_s21 }
  0x60   : > { %313 = sst [smem:[#allocation16 + $0x4]] %s3458_s21 }
  0x61   : > { %s278_s24 = sshrl.u32 %s277_s7, 3  ;;  %s279_s29 = sand.u32 7, %s277_s7  }
  0x62   : > { %s2158_s8 = sshll.u32 %s278_s24, 4  ;;  %315 = sst [smem:[#allocation16 + $0x5]] %s2725_s28 }
  0x63   : > { %s281_s13 = sadd.s32 %s2158_s8, %s279_s29  ;;  %s2738_s7 = smov [#allocation2 + $0x4]  }
  0x64   : > { %s282_s4 = scalar_lea.hbm %s3442_s1, %s281_s13  ;;  %s340_s24 = sshll.u32 %s2738_s7, 4  ;;  %s341_s24 = int_to_ptr.vmem [resolvable:$true] %s340_s24 }
  0x65   : > { %s296_s25 = sshll.u32 %s282_s4, 4  ;;  %s297_s25 = int_to_ptr.hbm [resolvable:$true] %s296_s25 }
  0x66   : > { %317 = dma.general %s297_s25, 64, %s299_s22, %s2736_s11, %s2737_s12, [#allocation16], %s2939_s15, 0  }
  0x67   : > { %s319_s10 = sld [smem:[#allocation5 + %s318_s5]]  ;;  %s360_s5 = sadd.s32 5, %s2931_s19 }
  0x68   : > { %347 = sst [smem:[#allocation18]] %s2721_s6  ;;  %s2739_s11 = smov [#allocation3 + $0x4]  }
  0x69   : > { %349 = sst [smem:[#allocation18 + $0x1]] %s3459_s2  ;;  %s2740_s12 = smov [#allocation17]  }
  0x6a   : > { %351 = sst [smem:[#allocation18 + $0x2]] %s3457_s16 }
  0x6b   : > { %353 = sst [smem:[#allocation18 + $0x3]] %s3458_s21 }
  0x6c   : > { %355 = sst [smem:[#allocation18 + $0x4]] %s3458_s21 }
  0x6d   : > { %s320_s29 = sshrl.u32 %s319_s10, 3  ;;  %s321_s8 = sand.u32 7, %s319_s10  }
  0x6e   : > { %s2161_s13 = sshll.u32 %s320_s29, 4  ;;  %357 = sst [smem:[#allocation18 + $0x5]] %s2725_s28 }
  0x6f   : > { %s323_s22 = sadd.s32 %s2161_s13, %s321_s8  ;;  %s2741_s10 = smov [#allocation2 + $0x5]  }
  0x70   : > { %s324_s4 = scalar_lea.hbm %s3442_s1, %s323_s22  ;;  %s382_s29 = sshll.u32 %s2741_s10, 4  ;;  %s383_s29 = int_to_ptr.vmem [resolvable:$true] %s382_s29 }
  0x71   : > { %s338_s25 = sshll.u32 %s324_s4, 4  ;;  %s339_s25 = int_to_ptr.hbm [resolvable:$true] %s338_s25 }
  0x72   : > { %359 = dma.general %s339_s25, 64, %s341_s24, %s2739_s11, %s2740_s12, [#allocation18], %s2939_s15, 0  }
  0x73   : > { %s361_s7 = sld [smem:[#allocation5 + %s360_s5]]  ;;  %s402_s5 = sadd.s32 6, %s2931_s19 }
  0x74   : > { %389 = sst [smem:[#allocation20]] %s2721_s6  ;;  %s2742_s11 = smov [#allocation3 + $0x5]  }
  0x75   : > { %391 = sst [smem:[#allocation20 + $0x1]] %s3459_s2  ;;  %s2743_s12 = smov [#allocation19]  }
  0x76   : > { %393 = sst [smem:[#allocation20 + $0x2]] %s3457_s16 }
  0x77   : > { %395 = sst [smem:[#allocation20 + $0x3]] %s3458_s21 }
  0x78   : > { %397 = sst [smem:[#allocation20 + $0x4]] %s3458_s21 }
  0x79   : > { %s362_s8 = sshrl.u32 %s361_s7, 3  ;;  %s363_s13 = sand.u32 7, %s361_s7  }
  0x7a   : > { %s2164_s22 = sshll.u32 %s362_s8, 4  ;;  %399 = sst [smem:[#allocation20 + $0x5]] %s2725_s28 }
  0x7b   : > { %s365_s24 = sadd.s32 %s2164_s22, %s363_s13  ;;  %s2744_s7 = smov [#allocation2 + $0x6]  }
  0x7c   : > { %s366_s4 = scalar_lea.hbm %s3442_s1, %s365_s24  ;;  %s424_s8 = sshll.u32 %s2744_s7, 4  ;;  %s425_s8 = int_to_ptr.vmem [resolvable:$true] %s424_s8 }
  0x7d   : > { %s380_s25 = sshll.u32 %s366_s4, 4  ;;  %s381_s25 = int_to_ptr.hbm [resolvable:$true] %s380_s25 }
  0x7e   : > { %401 = dma.general %s381_s25, 64, %s383_s29, %s2742_s11, %s2743_s12, [#allocation20], %s2939_s15, 0  }
  0x7f   : > { %s403_s10 = sld [smem:[#allocation5 + %s402_s5]]  ;;  %s444_s5 = sadd.s32 7, %s2931_s19 }
  0x80   : > { %431 = sst [smem:[#allocation22]] %s2721_s6  ;;  %s2745_s11 = smov [#allocation3 + $0x6]  }
  0x81   : > { %433 = sst [smem:[#allocation22 + $0x1]] %s3459_s2  ;;  %s2746_s12 = smov [#allocation21]  }
  0x82   : > { %435 = sst [smem:[#allocation22 + $0x2]] %s3457_s16 }
  0x83   : > { %437 = sst [smem:[#allocation22 + $0x3]] %s3458_s21 }
  0x84   : > { %439 = sst [smem:[#allocation22 + $0x4]] %s3458_s21 }
  0x85   : > { %s404_s13 = sshrl.u32 %s403_s10, 3  ;;  %s405_s22 = sand.u32 7, %s403_s10  }
  0x86   : > { %s2167_s24 = sshll.u32 %s404_s13, 4  ;;  %441 = sst [smem:[#allocation22 + $0x5]] %s2725_s28 }
  0x87   : > { %s407_s29 = sadd.s32 %s2167_s24, %s405_s22  ;;  %s2747_s10 = smov [#allocation2 + $0x7]  }
  0x88   : > { %s408_s4 = scalar_lea.hbm %s3442_s1, %s407_s29  ;;  %s466_s13 = sshll.u32 %s2747_s10, 4  ;;  %s467_s13 = int_to_ptr.vmem [resolvable:$true] %s466_s13 }
  0x89   : > { %s422_s25 = sshll.u32 %s408_s4, 4  ;;  %s423_s25 = int_to_ptr.hbm [resolvable:$true] %s422_s25 }
  0x8a   : > { %443 = dma.general %s423_s25, 64, %s425_s8, %s2745_s11, %s2746_s12, [#allocation22], %s2939_s15, 0  }
  0x8b   : > { %s445_s7 = sld [smem:[#allocation5 + %s444_s5]]  ;;  %s486_s5 = sadd.s32 8, %s2931_s19 }
  0x8c   : > { %473 = sst [smem:[#allocation24]] %s2721_s6  ;;  %s2748_s11 = smov [#allocation3 + $0x7]  }
  0x8d   : > { %475 = sst [smem:[#allocation24 + $0x1]] %s3459_s2  ;;  %s2749_s12 = smov [#allocation23]  }
  0x8e   : > { %477 = sst [smem:[#allocation24 + $0x2]] %s3457_s16 }
  0x8f   : > { %479 = sst [smem:[#allocation24 + $0x3]] %s3458_s21 }
  0x90   : > { %481 = sst [smem:[#allocation24 + $0x4]] %s3458_s21 }
  0x91   : > { %s446_s22 = sshrl.u32 %s445_s7, 3  ;;  %s447_s24 = sand.u32 7, %s445_s7  }
  0x92   : > { %s2170_s29 = sshll.u32 %s446_s22, 4  ;;  %483 = sst [smem:[#allocation24 + $0x5]] %s2725_s28 }
  0x93   : > { %s449_s8 = sadd.s32 %s2170_s29, %s447_s24  ;;  %s2750_s7 = smov [#allocation2 + $0x10]  }
  0x94   : > { %s450_s4 = scalar_lea.hbm %s3442_s1, %s449_s8  ;;  %s508_s22 = sshll.u32 %s2750_s7, 4  ;;  %s509_s22 = int_to_ptr.vmem [resolvable:$true] %s508_s22 }
  0x95   : > { %s464_s25 = sshll.u32 %s450_s4, 4  ;;  %s465_s25 = int_to_ptr.hbm [resolvable:$true] %s464_s25 }
  0x96   : > { %485 = dma.general %s465_s25, 64, %s467_s13, %s2748_s11, %s2749_s12, [#allocation24], %s2939_s15, 0  }
  0x97   : > { %s487_s10 = sld [smem:[#allocation5 + %s486_s5]]  ;;  %s528_s5 = sadd.s32 9, %s2931_s19 }
  0x98   : > { %515 = sst [smem:[#allocation26]] %s2721_s6  ;;  %s2751_s11 = smov [#allocation3 + $0x8]  }
  0x99   : > { %517 = sst [smem:[#allocation26 + $0x1]] %s3459_s2  ;;  %s2752_s12 = smov [#allocation25]  }
  0x9a   : > { %519 = sst [smem:[#allocation26 + $0x2]] %s3457_s16 }
  0x9b   : > { %521 = sst [smem:[#allocation26 + $0x3]] %s3458_s21 }
  0x9c   : > { %523 = sst [smem:[#allocation26 + $0x4]] %s3458_s21 }
  0x9d   : > { %s488_s24 = sshrl.u32 %s487_s10, 3  ;;  %s489_s29 = sand.u32 7, %s487_s10  }
  0x9e   : > { %s2173_s8 = sshll.u32 %s488_s24, 4  ;;  %525 = sst [smem:[#allocation26 + $0x5]] %s2725_s28 }
  0x9f   : > { %s491_s13 = sadd.s32 %s2173_s8, %s489_s29  ;;  %s2753_s10 = smov [#allocation2 + $0x11]  }
  0xa0   : > { %s492_s4 = scalar_lea.hbm %s3442_s1, %s491_s13  ;;  %s550_s24 = sshll.u32 %s2753_s10, 4  ;;  %s551_s24 = int_to_ptr.vmem [resolvable:$true] %s550_s24 }
  0xa1   : > { %s506_s25 = sshll.u32 %s492_s4, 4  ;;  %s507_s25 = int_to_ptr.hbm [resolvable:$true] %s506_s25 }
  0xa2   : > { %527 = dma.general %s507_s25, 64, %s509_s22, %s2751_s11, %s2752_s12, [#allocation26], %s2939_s15, 0  }
  0xa3   : > { %s529_s7 = sld [smem:[#allocation5 + %s528_s5]]  ;;  %s570_s5 = sadd.s32 10, %s2931_s19 }
  0xa4   : > { %557 = sst [smem:[#allocation28]] %s2721_s6  ;;  %s2754_s11 = smov [#allocation3 + $0x9]  }
  0xa5   : > { %559 = sst [smem:[#allocation28 + $0x1]] %s3459_s2  ;;  %s2755_s12 = smov [#allocation27]  }
  0xa6   : > { %561 = sst [smem:[#allocation28 + $0x2]] %s3457_s16 }
  0xa7   : > { %563 = sst [smem:[#allocation28 + $0x3]] %s3458_s21 }
  0xa8   : > { %565 = sst [smem:[#allocation28 + $0x4]] %s3458_s21 }
  0xa9   : > { %s530_s29 = sshrl.u32 %s529_s7, 3  ;;  %s531_s8 = sand.u32 7, %s529_s7  }
  0xaa   : > { %s2176_s13 = sshll.u32 %s530_s29, 4  ;;  %567 = sst [smem:[#allocation28 + $0x5]] %s2725_s28 }
  0xab   : > { %s533_s22 = sadd.s32 %s2176_s13, %s531_s8  ;;  %s2756_s7 = smov [#allocation2 + $0x12]  }
  0xac   : > { %s534_s4 = scalar_lea.hbm %s3442_s1, %s533_s22  ;;  %s592_s29 = sshll.u32 %s2756_s7, 4  ;;  %s593_s29 = int_to_ptr.vmem [resolvable:$true] %s592_s29 }
  0xad   : > { %s548_s25 = sshll.u32 %s534_s4, 4  ;;  %s549_s25 = int_to_ptr.hbm [resolvable:$true] %s548_s25 }
  0xae   : > { %569 = dma.general %s549_s25, 64, %s551_s24, %s2754_s11, %s2755_s12, [#allocation28], %s2939_s15, 0  }
  0xaf   : > { %s571_s10 = sld [smem:[#allocation5 + %s570_s5]]  ;;  %s612_s5 = sadd.s32 11, %s2931_s19 }
  0xb0   : > { %599 = sst [smem:[#allocation30]] %s2721_s6  ;;  %s2757_s11 = smov [#allocation3 + $0xa]  }
  0xb1   : > { %601 = sst [smem:[#allocation30 + $0x1]] %s3459_s2  ;;  %s2758_s12 = smov [#allocation29]  }
  0xb2   : > { %603 = sst [smem:[#allocation30 + $0x2]] %s3457_s16 }
  0xb3   : > { %605 = sst [smem:[#allocation30 + $0x3]] %s3458_s21 }
  0xb4   : > { %607 = sst [smem:[#allocation30 + $0x4]] %s3458_s21 }
  0xb5   : > { %s572_s8 = sshrl.u32 %s571_s10, 3  ;;  %s573_s13 = sand.u32 7, %s571_s10  }
  0xb6   : > { %s2179_s22 = sshll.u32 %s572_s8, 4  ;;  %609 = sst [smem:[#allocation30 + $0x5]] %s2725_s28 }
  0xb7   : > { %s575_s24 = sadd.s32 %s2179_s22, %s573_s13  ;;  %s2759_s10 = smov [#allocation2 + $0x13]  }
  0xb8   : > { %s576_s4 = scalar_lea.hbm %s3442_s1, %s575_s24  ;;  %s634_s8 = sshll.u32 %s2759_s10, 4  ;;  %s635_s8 = int_to_ptr.vmem [resolvable:$true] %s634_s8 }
  0xb9   : > { %s590_s25 = sshll.u32 %s576_s4, 4  ;;  %s591_s25 = int_to_ptr.hbm [resolvable:$true] %s590_s25 }
  0xba   : > { %611 = dma.general %s591_s25, 64, %s593_s29, %s2757_s11, %s2758_s12, [#allocation30], %s2939_s15, 0  }
  0xbb   : > { %s613_s7 = sld [smem:[#allocation5 + %s612_s5]]  ;;  %s654_s5 = sadd.s32 12, %s2931_s19 }
  0xbc   : > { %641 = sst [smem:[#allocation32]] %s2721_s6  ;;  %s2760_s11 = smov [#allocation3 + $0xb]  }
  0xbd   : > { %643 = sst [smem:[#allocation32 + $0x1]] %s3459_s2  ;;  %s2761_s12 = smov [#allocation31]  }
  0xbe   : > { %645 = sst [smem:[#allocation32 + $0x2]] %s3457_s16 }
  0xbf   : > { %647 = sst [smem:[#allocation32 + $0x3]] %s3458_s21 }
  0xc0   : > { %649 = sst [smem:[#allocation32 + $0x4]] %s3458_s21 }
  0xc1   : > { %s614_s13 = sshrl.u32 %s613_s7, 3  ;;  %s615_s22 = sand.u32 7, %s613_s7  }
  0xc2   : > { %s2182_s24 = sshll.u32 %s614_s13, 4  ;;  %651 = sst [smem:[#allocation32 + $0x5]] %s2725_s28 }
  0xc3   : > { %s617_s29 = sadd.s32 %s2182_s24, %s615_s22  ;;  %s2762_s7 = smov [#allocation2 + $0x14]  }
  0xc4   : > { %s618_s4 = scalar_lea.hbm %s3442_s1, %s617_s29  ;;  %s676_s13 = sshll.u32 %s2762_s7, 4  ;;  %s677_s13 = int_to_ptr.vmem [resolvable:$true] %s676_s13 }
  0xc5   : > { %s632_s25 = sshll.u32 %s618_s4, 4  ;;  %s633_s25 = int_to_ptr.hbm [resolvable:$true] %s632_s25 }
  0xc6   : > { %653 = dma.general %s633_s25, 64, %s635_s8, %s2760_s11, %s2761_s12, [#allocation32], %s2939_s15, 0  }
  0xc7   : > { %s655_s10 = sld [smem:[#allocation5 + %s654_s5]]  ;;  %s696_s5 = sadd.s32 13, %s2931_s19 }
  0xc8   : > { %683 = sst [smem:[#allocation34]] %s2721_s6  ;;  %s2763_s11 = smov [#allocation3 + $0xc]  }
  0xc9   : > { %685 = sst [smem:[#allocation34 + $0x1]] %s3459_s2  ;;  %s2764_s12 = smov [#allocation33]  }
  0xca   : > { %687 = sst [smem:[#allocation34 + $0x2]] %s3457_s16 }
  0xcb   : > { %689 = sst [smem:[#allocation34 + $0x3]] %s3458_s21 }
  0xcc   : > { %691 = sst [smem:[#allocation34 + $0x4]] %s3458_s21 }
  0xcd   : > { %s656_s22 = sshrl.u32 %s655_s10, 3  ;;  %s657_s24 = sand.u32 7, %s655_s10  }
  0xce   : > { %s2185_s29 = sshll.u32 %s656_s22, 4  ;;  %693 = sst [smem:[#allocation34 + $0x5]] %s2725_s28 }
  0xcf   : > { %s659_s8 = sadd.s32 %s2185_s29, %s657_s24  ;;  %s2765_s10 = smov [#allocation2 + $0x15]  }
  0xd0   : > { %s660_s4 = scalar_lea.hbm %s3442_s1, %s659_s8  ;;  %s718_s22 = sshll.u32 %s2765_s10, 4  ;;  %s719_s22 = int_to_ptr.vmem [resolvable:$true] %s718_s22 }
  0xd1   : > { %s674_s25 = sshll.u32 %s660_s4, 4  ;;  %s675_s25 = int_to_ptr.hbm [resolvable:$true] %s674_s25 }
  0xd2   : > { %695 = dma.general %s675_s25, 64, %s677_s13, %s2763_s11, %s2764_s12, [#allocation34], %s2939_s15, 0  }
  0xd3   : > { %s697_s7 = sld [smem:[#allocation5 + %s696_s5]]  ;;  %s738_s5 = sadd.s32 14, %s2931_s19 }
  0xd4   : > { %725 = sst [smem:[#allocation36]] %s2721_s6  ;;  %s2766_s11 = smov [#allocation3 + $0xd]  }
  0xd5   : > { %727 = sst [smem:[#allocation36 + $0x1]] %s3459_s2  ;;  %s2767_s12 = smov [#allocation35]  }
  0xd6   : > { %729 = sst [smem:[#allocation36 + $0x2]] %s3457_s16 }
  0xd7   : > { %731 = sst [smem:[#allocation36 + $0x3]] %s3458_s21 }
  0xd8   : > { %733 = sst [smem:[#allocation36 + $0x4]] %s3458_s21 }
  0xd9   : > { %s698_s24 = sshrl.u32 %s697_s7, 3  ;;  %s699_s29 = sand.u32 7, %s697_s7  }
  0xda   : > { %s2188_s8 = sshll.u32 %s698_s24, 4  ;;  %735 = sst [smem:[#allocation36 + $0x5]] %s2725_s28 }
  0xdb   : > { %s701_s13 = sadd.s32 %s2188_s8, %s699_s29  ;;  %s2768_s7 = smov [#allocation2 + $0x16]  }
  0xdc   : > { %s702_s4 = scalar_lea.hbm %s3442_s1, %s701_s13  ;;  %s760_s24 = sshll.u32 %s2768_s7, 4  ;;  %s761_s24 = int_to_ptr.vmem [resolvable:$true] %s760_s24 }
  0xdd   : > { %s716_s25 = sshll.u32 %s702_s4, 4  ;;  %s717_s25 = int_to_ptr.hbm [resolvable:$true] %s716_s25 }
  0xde   : > { %737 = dma.general %s717_s25, 64, %s719_s22, %s2766_s11, %s2767_s12, [#allocation36], %s2939_s15, 0  }
  0xdf   : > { %s739_s10 = sld [smem:[#allocation5 + %s738_s5]]  ;;  %s780_s5 = sadd.s32 15, %s2931_s19 }
  0xe0   : > { %767 = sst [smem:[#allocation38]] %s2721_s6  ;;  %s2769_s11 = smov [#allocation3 + $0xe]  }
  0xe1   : > { %769 = sst [smem:[#allocation38 + $0x1]] %s3459_s2  ;;  %s2770_s12 = smov [#allocation37]  }
  0xe2   : > { %771 = sst [smem:[#allocation38 + $0x2]] %s3457_s16 }
  0xe3   : > { %773 = sst [smem:[#allocation38 + $0x3]] %s3458_s21 }
  0xe4   : > { %775 = sst [smem:[#allocation38 + $0x4]] %s3458_s21 }
  0xe5   : > { %s740_s29 = sshrl.u32 %s739_s10, 3  ;;  %s741_s8 = sand.u32 7, %s739_s10  }
  0xe6   : > { %s2191_s13 = sshll.u32 %s740_s29, 4  ;;  %777 = sst [smem:[#allocation38 + $0x5]] %s2725_s28 }
  0xe7   : > { %s743_s22 = sadd.s32 %s2191_s13, %s741_s8  ;;  %s2771_s10 = smov [#allocation2 + $0x17]  }
  0xe8   : > { %s744_s4 = scalar_lea.hbm %s3442_s1, %s743_s22  ;;  %s802_s29 = sshll.u32 %s2771_s10, 4  ;;  %s803_s29 = int_to_ptr.vmem [resolvable:$true] %s802_s29 }
  0xe9   : > { %s758_s25 = sshll.u32 %s744_s4, 4  ;;  %s759_s25 = int_to_ptr.hbm [resolvable:$true] %s758_s25 }
  0xea   : > { %779 = dma.general %s759_s25, 64, %s761_s24, %s2769_s11, %s2770_s12, [#allocation38], %s2939_s15, 0  }
  0xeb   : > { %s781_s7 = sld [smem:[#allocation5 + %s780_s5]]  ;;  %s822_s5 = sadd.s32 16, %s2931_s19 }
  0xec   : > { %809 = sst [smem:[#allocation40]] %s2721_s6  ;;  %s2772_s11 = smov [#allocation3 + $0xf]  }
  0xed   : > { %811 = sst [smem:[#allocation40 + $0x1]] %s3459_s2  ;;  %s2773_s12 = smov [#allocation39]  }
  0xee   : > { %813 = sst [smem:[#allocation40 + $0x2]] %s3457_s16 }
  0xef   : > { %815 = sst [smem:[#allocation40 + $0x3]] %s3458_s21 }
  0xf0   : > { %817 = sst [smem:[#allocation40 + $0x4]] %s3458_s21 }
  0xf1   : > { %s782_s8 = sshrl.u32 %s781_s7, 3  ;;  %s783_s13 = sand.u32 7, %s781_s7  }
  0xf2   : > { %s2194_s22 = sshll.u32 %s782_s8, 4  ;;  %819 = sst [smem:[#allocation40 + $0x5]] %s2725_s28 }
  0xf3   : > { %s785_s24 = sadd.s32 %s2194_s22, %s783_s13  ;;  %s2774_s7 = smov [#allocation2 + $0x20]  }
  0xf4   : > { %s786_s4 = scalar_lea.hbm %s3442_s1, %s785_s24  ;;  %s844_s8 = sshll.u32 %s2774_s7, 4  ;;  %s845_s8 = int_to_ptr.vmem [resolvable:$true] %s844_s8 }
  0xf5   : > { %s800_s25 = sshll.u32 %s786_s4, 4  ;;  %s801_s25 = int_to_ptr.hbm [resolvable:$true] %s800_s25 }
  0xf6   : > { %821 = dma.general %s801_s25, 64, %s803_s29, %s2772_s11, %s2773_s12, [#allocation40], %s2939_s15, 0  }
  0xf7   : > { %s823_s10 = sld [smem:[#allocation5 + %s822_s5]]  ;;  %s864_s5 = sadd.s32 17, %s2931_s19 }
  0xf8   : > { %851 = sst [smem:[#allocation42]] %s2721_s6  ;;  %s2775_s11 = smov [#allocation3 + $0x10]  }
  0xf9   : > { %853 = sst [smem:[#allocation42 + $0x1]] %s3459_s2  ;;  %s2776_s12 = smov [#allocation41]  }
  0xfa   : > { %855 = sst [smem:[#allocation42 + $0x2]] %s3457_s16 }
  0xfb   : > { %857 = sst [smem:[#allocation42 + $0x3]] %s3458_s21 }
  0xfc   : > { %859 = sst [smem:[#allocation42 + $0x4]] %s3458_s21 }
  0xfd   : > { %s824_s13 = sshrl.u32 %s823_s10, 3  ;;  %s825_s22 = sand.u32 7, %s823_s10  }
  0xfe   : > { %s2197_s24 = sshll.u32 %s824_s13, 4  ;;  %861 = sst [smem:[#allocation42 + $0x5]] %s2725_s28 }
  0xff   : > { %s827_s29 = sadd.s32 %s2197_s24, %s825_s22  ;;  %s2777_s10 = smov [#allocation2 + $0x21]  }
 0x100   : > { %s828_s4 = scalar_lea.hbm %s3442_s1, %s827_s29  ;;  %s886_s13 = sshll.u32 %s2777_s10, 4  ;;  %s887_s13 = int_to_ptr.vmem [resolvable:$true] %s886_s13 }
 0x101   : > { %s842_s25 = sshll.u32 %s828_s4, 4  ;;  %s843_s25 = int_to_ptr.hbm [resolvable:$true] %s842_s25 }
 0x102   : > { %863 = dma.general %s843_s25, 64, %s845_s8, %s2775_s11, %s2776_s12, [#allocation42], %s2939_s15, 0  }
 0x103   : > { %s865_s7 = sld [smem:[#allocation5 + %s864_s5]]  ;;  %s906_s5 = sadd.s32 18, %s2931_s19 }
 0x104   : > { %893 = sst [smem:[#allocation44]] %s2721_s6  ;;  %s2778_s11 = smov [#allocation3 + $0x11]  }
 0x105   : > { %895 = sst [smem:[#allocation44 + $0x1]] %s3459_s2  ;;  %s2779_s12 = smov [#allocation43]  }
 0x106   : > { %897 = sst [smem:[#allocation44 + $0x2]] %s3457_s16 }
 0x107   : > { %899 = sst [smem:[#allocation44 + $0x3]] %s3458_s21 }
 0x108   : > { %901 = sst [smem:[#allocation44 + $0x4]] %s3458_s21 }
 0x109   : > { %s866_s22 = sshrl.u32 %s865_s7, 3  ;;  %s867_s24 = sand.u32 7, %s865_s7  }
 0x10a   : > { %s2200_s29 = sshll.u32 %s866_s22, 4  ;;  %903 = sst [smem:[#allocation44 + $0x5]] %s2725_s28 }
 0x10b   : > { %s869_s8 = sadd.s32 %s2200_s29, %s867_s24  ;;  %s2780_s7 = smov [#allocation2 + $0x22]  }
 0x10c   : > { %s870_s4 = scalar_lea.hbm %s3442_s1, %s869_s8  ;;  %s928_s22 = sshll.u32 %s2780_s7, 4  ;;  %s929_s22 = int_to_ptr.vmem [resolvable:$true] %s928_s22 }
 0x10d   : > { %s884_s25 = sshll.u32 %s870_s4, 4  ;;  %s885_s25 = int_to_ptr.hbm [resolvable:$true] %s884_s25 }
 0x10e   : > { %905 = dma.general %s885_s25, 64, %s887_s13, %s2778_s11, %s2779_s12, [#allocation44], %s2939_s15, 0  }
 0x10f   : > { %s907_s10 = sld [smem:[#allocation5 + %s906_s5]]  ;;  %s948_s5 = sadd.s32 19, %s2931_s19 }
 0x110   : > { %935 = sst [smem:[#allocation46]] %s2721_s6  ;;  %s2781_s11 = smov [#allocation3 + $0x12]  }
 0x111   : > { %937 = sst [smem:[#allocation46 + $0x1]] %s3459_s2  ;;  %s2782_s12 = smov [#allocation45]  }
 0x112   : > { %939 = sst [smem:[#allocation46 + $0x2]] %s3457_s16 }
 0x113   : > { %941 = sst [smem:[#allocation46 + $0x3]] %s3458_s21 }
 0x114   : > { %943 = sst [smem:[#allocation46 + $0x4]] %s3458_s21 }
 0x115   : > { %s908_s24 = sshrl.u32 %s907_s10, 3  ;;  %s909_s29 = sand.u32 7, %s907_s10  }
 0x116   : > { %s2203_s8 = sshll.u32 %s908_s24, 4  ;;  %945 = sst [smem:[#allocation46 + $0x5]] %s2725_s28 }
 0x117   : > { %s911_s13 = sadd.s32 %s2203_s8, %s909_s29  ;;  %s2783_s10 = smov [#allocation2 + $0x23]  }
 0x118   : > { %s912_s4 = scalar_lea.hbm %s3442_s1, %s911_s13  ;;  %s970_s24 = sshll.u32 %s2783_s10, 4  ;;  %s971_s24 = int_to_ptr.vmem [resolvable:$true] %s970_s24 }
 0x119   : > { %s926_s25 = sshll.u32 %s912_s4, 4  ;;  %s927_s25 = int_to_ptr.hbm [resolvable:$true] %s926_s25 }
 0x11a   : > { %947 = dma.general %s927_s25, 64, %s929_s22, %s2781_s11, %s2782_s12, [#allocation46], %s2939_s15, 0  }
 0x11b   : > { %s949_s7 = sld [smem:[#allocation5 + %s948_s5]]  ;;  %s990_s5 = sadd.s32 20, %s2931_s19 }
 0x11c   : > { %977 = sst [smem:[#allocation48]] %s2721_s6  ;;  %s2784_s11 = smov [#allocation3 + $0x13]  }
 0x11d   : > { %979 = sst [smem:[#allocation48 + $0x1]] %s3459_s2  ;;  %s2785_s12 = smov [#allocation47]  }
 0x11e   : > { %981 = sst [smem:[#allocation48 + $0x2]] %s3457_s16 }
 0x11f   : > { %983 = sst [smem:[#allocation48 + $0x3]] %s3458_s21 }
 0x120   : > { %985 = sst [smem:[#allocation48 + $0x4]] %s3458_s21 }
 0x121   : > { %s950_s29 = sshrl.u32 %s949_s7, 3  ;;  %s951_s8 = sand.u32 7, %s949_s7  }
 0x122   : > { %s2206_s13 = sshll.u32 %s950_s29, 4  ;;  %987 = sst [smem:[#allocation48 + $0x5]] %s2725_s28 }
 0x123   : > { %s953_s22 = sadd.s32 %s2206_s13, %s951_s8  ;;  %s2786_s7 = smov [#allocation2 + $0x24]  }
 0x124   : > { %s954_s4 = scalar_lea.hbm %s3442_s1, %s953_s22  ;;  %s1012_s29 = sshll.u32 %s2786_s7, 4  ;;  %s1013_s29 = int_to_ptr.vmem [resolvable:$true] %s1012_s29 }
 0x125   : > { %s968_s25 = sshll.u32 %s954_s4, 4  ;;  %s969_s25 = int_to_ptr.hbm [resolvable:$true] %s968_s25 }
 0x126   : > { %989 = dma.general %s969_s25, 64, %s971_s24, %s2784_s11, %s2785_s12, [#allocation48], %s2939_s15, 0  }
 0x127   : > { %s991_s10 = sld [smem:[#allocation5 + %s990_s5]]  ;;  %s1032_s5 = sadd.s32 21, %s2931_s19 }
 0x128   : > { %1019 = sst [smem:[#allocation50]] %s2721_s6  ;;  %s2787_s11 = smov [#allocation3 + $0x14]  }
 0x129   : > { %1021 = sst [smem:[#allocation50 + $0x1]] %s3459_s2  ;;  %s2788_s12 = smov [#allocation49]  }
 0x12a   : > { %1023 = sst [smem:[#allocation50 + $0x2]] %s3457_s16 }
 0x12b   : > { %1025 = sst [smem:[#allocation50 + $0x3]] %s3458_s21 }
 0x12c   : > { %1027 = sst [smem:[#allocation50 + $0x4]] %s3458_s21 }
 0x12d   : > { %s992_s8 = sshrl.u32 %s991_s10, 3  ;;  %s993_s13 = sand.u32 7, %s991_s10  }
 0x12e   : > { %s2209_s22 = sshll.u32 %s992_s8, 4  ;;  %1029 = sst [smem:[#allocation50 + $0x5]] %s2725_s28 }
 0x12f   : > { %s995_s24 = sadd.s32 %s2209_s22, %s993_s13  ;;  %s2789_s10 = smov [#allocation2 + $0x25]  }
 0x130   : > { %s996_s4 = scalar_lea.hbm %s3442_s1, %s995_s24  ;;  %s1054_s8 = sshll.u32 %s2789_s10, 4  ;;  %s1055_s8 = int_to_ptr.vmem [resolvable:$true] %s1054_s8 }
 0x131   : > { %s1010_s25 = sshll.u32 %s996_s4, 4  ;;  %s1011_s25 = int_to_ptr.hbm [resolvable:$true] %s1010_s25 }
 0x132   : > { %1031 = dma.general %s1011_s25, 64, %s1013_s29, %s2787_s11, %s2788_s12, [#allocation50], %s2939_s15, 0  }
 0x133   : > { %s1033_s7 = sld [smem:[#allocation5 + %s1032_s5]]  ;;  %s1074_s5 = sadd.s32 22, %s2931_s19 }
 0x134   : > { %1061 = sst [smem:[#allocation52]] %s2721_s6  ;;  %s2790_s11 = smov [#allocation3 + $0x15]  }
 0x135   : > { %1063 = sst [smem:[#allocation52 + $0x1]] %s3459_s2  ;;  %s2791_s12 = smov [#allocation51]  }
 0x136   : > { %1065 = sst [smem:[#allocation52 + $0x2]] %s3457_s16 }
 0x137   : > { %1067 = sst [smem:[#allocation52 + $0x3]] %s3458_s21 }
 0x138   : > { %1069 = sst [smem:[#allocation52 + $0x4]] %s3458_s21 }
 0x139   : > { %s1034_s13 = sshrl.u32 %s1033_s7, 3  ;;  %s1035_s22 = sand.u32 7, %s1033_s7  }
 0x13a   : > { %s2212_s24 = sshll.u32 %s1034_s13, 4  ;;  %1071 = sst [smem:[#allocation52 + $0x5]] %s2725_s28 }
 0x13b   : > { %s1037_s29 = sadd.s32 %s2212_s24, %s1035_s22  ;;  %s2792_s7 = smov [#allocation2 + $0x26]  }
 0x13c   : > { %s1038_s4 = scalar_lea.hbm %s3442_s1, %s1037_s29  ;;  %s1096_s13 = sshll.u32 %s2792_s7, 4  ;;  %s1097_s13 = int_to_ptr.vmem [resolvable:$true] %s1096_s13 }
 0x13d   : > { %s1052_s25 = sshll.u32 %s1038_s4, 4  ;;  %s1053_s25 = int_to_ptr.hbm [resolvable:$true] %s1052_s25 }
 0x13e   : > { %1073 = dma.general %s1053_s25, 64, %s1055_s8, %s2790_s11, %s2791_s12, [#allocation52], %s2939_s15, 0  }
 0x13f   : > { %s1075_s10 = sld [smem:[#allocation5 + %s1074_s5]]  ;;  %s1116_s5 = sadd.s32 23, %s2931_s19 }
 0x140   : > { %1103 = sst [smem:[#allocation54]] %s2721_s6  ;;  %s2793_s11 = smov [#allocation3 + $0x16]  }
 0x141   : > { %1105 = sst [smem:[#allocation54 + $0x1]] %s3459_s2  ;;  %s2794_s12 = smov [#allocation53]  }
 0x142   : > { %1107 = sst [smem:[#allocation54 + $0x2]] %s3457_s16 }
 0x143   : > { %1109 = sst [smem:[#allocation54 + $0x3]] %s3458_s21 }
 0x144   : > { %1111 = sst [smem:[#allocation54 + $0x4]] %s3458_s21 }
 0x145   : > { %s1076_s22 = sshrl.u32 %s1075_s10, 3  ;;  %s1077_s24 = sand.u32 7, %s1075_s10  }
 0x146   : > { %s2215_s29 = sshll.u32 %s1076_s22, 4  ;;  %1113 = sst [smem:[#allocation54 + $0x5]] %s2725_s28 }
 0x147   : > { %s1079_s8 = sadd.s32 %s2215_s29, %s1077_s24  ;;  %s2795_s10 = smov [#allocation2 + $0x27]  }
 0x148   : > { %s1080_s4 = scalar_lea.hbm %s3442_s1, %s1079_s8  ;;  %s1138_s22 = sshll.u32 %s2795_s10, 4  ;;  %s1139_s22 = int_to_ptr.vmem [resolvable:$true] %s1138_s22 }
 0x149   : > { %s1094_s25 = sshll.u32 %s1080_s4, 4  ;;  %s1095_s25 = int_to_ptr.hbm [resolvable:$true] %s1094_s25 }
 0x14a   : > { %1115 = dma.general %s1095_s25, 64, %s1097_s13, %s2793_s11, %s2794_s12, [#allocation54], %s2939_s15, 0  }
 0x14b   : > { %s1117_s7 = sld [smem:[#allocation5 + %s1116_s5]]  ;;  %s1158_s5 = sadd.s32 24, %s2931_s19 }
 0x14c   : > { %1145 = sst [smem:[#allocation56]] %s2721_s6  ;;  %s2796_s11 = smov [#allocation3 + $0x17]  }
 0x14d   : > { %1147 = sst [smem:[#allocation56 + $0x1]] %s3459_s2  ;;  %s2797_s12 = smov [#allocation55]  }
 0x14e   : > { %1149 = sst [smem:[#allocation56 + $0x2]] %s3457_s16 }
 0x14f   : > { %1151 = sst [smem:[#allocation56 + $0x3]] %s3458_s21 }
 0x150   : > { %1153 = sst [smem:[#allocation56 + $0x4]] %s3458_s21 }
 0x151   : > { %s1118_s24 = sshrl.u32 %s1117_s7, 3  ;;  %s1119_s29 = sand.u32 7, %s1117_s7  }
 0x152   : > { %s2218_s8 = sshll.u32 %s1118_s24, 4  ;;  %1155 = sst [smem:[#allocation56 + $0x5]] %s2725_s28 }
 0x153   : > { %s1121_s13 = sadd.s32 %s2218_s8, %s1119_s29  ;;  %s2798_s7 = smov [#allocation2 + $0x30]  }
 0x154   : > { %s1122_s4 = scalar_lea.hbm %s3442_s1, %s1121_s13  ;;  %s1180_s24 = sshll.u32 %s2798_s7, 4  ;;  %s1181_s24 = int_to_ptr.vmem [resolvable:$true] %s1180_s24 }
 0x155   : > { %s1136_s25 = sshll.u32 %s1122_s4, 4  ;;  %s1137_s25 = int_to_ptr.hbm [resolvable:$true] %s1136_s25 }
 0x156   : > { %1157 = dma.general %s1137_s25, 64, %s1139_s22, %s2796_s11, %s2797_s12, [#allocation56], %s2939_s15, 0  }
 0x157   : > { %s1159_s10 = sld [smem:[#allocation5 + %s1158_s5]]  ;;  %s1200_s5 = sadd.s32 25, %s2931_s19 }
 0x158   : > { %1187 = sst [smem:[#allocation58]] %s2721_s6  ;;  %s2799_s11 = smov [#allocation3 + $0x18]  }
 0x159   : > { %1189 = sst [smem:[#allocation58 + $0x1]] %s3459_s2  ;;  %s2800_s12 = smov [#allocation57]  }
 0x15a   : > { %1191 = sst [smem:[#allocation58 + $0x2]] %s3457_s16 }
 0x15b   : > { %1193 = sst [smem:[#allocation58 + $0x3]] %s3458_s21 }
 0x15c   : > { %1195 = sst [smem:[#allocation58 + $0x4]] %s3458_s21 }
 0x15d   : > { %s1160_s29 = sshrl.u32 %s1159_s10, 3  ;;  %s1161_s8 = sand.u32 7, %s1159_s10  }
 0x15e   : > { %s2221_s13 = sshll.u32 %s1160_s29, 4  ;;  %1197 = sst [smem:[#allocation58 + $0x5]] %s2725_s28 }
 0x15f   : > { %s1163_s22 = sadd.s32 %s2221_s13, %s1161_s8  ;;  %s2801_s10 = smov [#allocation2 + $0x31]  }
 0x160   : > { %s1164_s4 = scalar_lea.hbm %s3442_s1, %s1163_s22  ;;  %s1222_s29 = sshll.u32 %s2801_s10, 4  ;;  %s1223_s29 = int_to_ptr.vmem [resolvable:$true] %s1222_s29 }
 0x161   : > { %s1178_s25 = sshll.u32 %s1164_s4, 4  ;;  %s1179_s25 = int_to_ptr.hbm [resolvable:$true] %s1178_s25 }
 0x162   : > { %1199 = dma.general %s1179_s25, 64, %s1181_s24, %s2799_s11, %s2800_s12, [#allocation58], %s2939_s15, 0  }
 0x163   : > { %s1201_s7 = sld [smem:[#allocation5 + %s1200_s5]]  ;;  %s1242_s5 = sadd.s32 26, %s2931_s19 }
 0x164   : > { %1229 = sst [smem:[#allocation60]] %s2721_s6  ;;  %s2802_s11 = smov [#allocation3 + $0x19]  }
 0x165   : > { %1231 = sst [smem:[#allocation60 + $0x1]] %s3459_s2  ;;  %s2803_s12 = smov [#allocation59]  }
 0x166   : > { %1233 = sst [smem:[#allocation60 + $0x2]] %s3457_s16 }
 0x167   : > { %1235 = sst [smem:[#allocation60 + $0x3]] %s3458_s21 }
 0x168   : > { %1237 = sst [smem:[#allocation60 + $0x4]] %s3458_s21 }
 0x169   : > { %s1202_s8 = sshrl.u32 %s1201_s7, 3  ;;  %s1203_s13 = sand.u32 7, %s1201_s7  }
 0x16a   : > { %s2224_s22 = sshll.u32 %s1202_s8, 4  ;;  %1239 = sst [smem:[#allocation60 + $0x5]] %s2725_s28 }
 0x16b   : > { %s1205_s24 = sadd.s32 %s2224_s22, %s1203_s13  ;;  %s2804_s7 = smov [#allocation2 + $0x32]  }
 0x16c   : > { %s1206_s4 = scalar_lea.hbm %s3442_s1, %s1205_s24  ;;  %s1264_s8 = sshll.u32 %s2804_s7, 4  ;;  %s1265_s8 = int_to_ptr.vmem [resolvable:$true] %s1264_s8 }
 0x16d   : > { %s1220_s25 = sshll.u32 %s1206_s4, 4  ;;  %s1221_s25 = int_to_ptr.hbm [resolvable:$true] %s1220_s25 }
 0x16e   : > { %1241 = dma.general %s1221_s25, 64, %s1223_s29, %s2802_s11, %s2803_s12, [#allocation60], %s2939_s15, 0  }
 0x16f   : > { %s1243_s10 = sld [smem:[#allocation5 + %s1242_s5]]  ;;  %s1284_s5 = sadd.s32 27, %s2931_s19 }
 0x170   : > { %1271 = sst [smem:[#allocation62]] %s2721_s6  ;;  %s2805_s11 = smov [#allocation3 + $0x1a]  }
 0x171   : > { %1273 = sst [smem:[#allocation62 + $0x1]] %s3459_s2  ;;  %s2806_s12 = smov [#allocation61]  }
 0x172   : > { %1275 = sst [smem:[#allocation62 + $0x2]] %s3457_s16 }
 0x173   : > { %1277 = sst [smem:[#allocation62 + $0x3]] %s3458_s21 }
 0x174   : > { %1279 = sst [smem:[#allocation62 + $0x4]] %s3458_s21 }
 0x175   : > { %s1244_s13 = sshrl.u32 %s1243_s10, 3  ;;  %s1245_s22 = sand.u32 7, %s1243_s10  }
 0x176   : > { %s2227_s24 = sshll.u32 %s1244_s13, 4  ;;  %1281 = sst [smem:[#allocation62 + $0x5]] %s2725_s28 }
 0x177   : > { %s1247_s29 = sadd.s32 %s2227_s24, %s1245_s22  ;;  %s2807_s10 = smov [#allocation2 + $0x33]  }
 0x178   : > { %s1248_s4 = scalar_lea.hbm %s3442_s1, %s1247_s29  ;;  %s1306_s13 = sshll.u32 %s2807_s10, 4  ;;  %s1307_s13 = int_to_ptr.vmem [resolvable:$true] %s1306_s13 }
 0x179   : > { %s1262_s25 = sshll.u32 %s1248_s4, 4  ;;  %s1263_s25 = int_to_ptr.hbm [resolvable:$true] %s1262_s25 }
 0x17a   : > { %1283 = dma.general %s1263_s25, 64, %s1265_s8, %s2805_s11, %s2806_s12, [#allocation62], %s2939_s15, 0  }
 0x17b   : > { %s1285_s7 = sld [smem:[#allocation5 + %s1284_s5]]  ;;  %s1326_s5 = sadd.s32 28, %s2931_s19 }
 0x17c   : > { %1313 = sst [smem:[#allocation64]] %s2721_s6  ;;  %s2808_s11 = smov [#allocation3 + $0x1b]  }
 0x17d   : > { %1315 = sst [smem:[#allocation64 + $0x1]] %s3459_s2  ;;  %s2809_s12 = smov [#allocation63]  }
 0x17e   : > { %1317 = sst [smem:[#allocation64 + $0x2]] %s3457_s16 }
 0x17f   : > { %1319 = sst [smem:[#allocation64 + $0x3]] %s3458_s21 }
 0x180   : > { %1321 = sst [smem:[#allocation64 + $0x4]] %s3458_s21 }
 0x181   : > { %s1286_s22 = sshrl.u32 %s1285_s7, 3  ;;  %s1287_s24 = sand.u32 7, %s1285_s7  }
 0x182   : > { %s2230_s29 = sshll.u32 %s1286_s22, 4  ;;  %1323 = sst [smem:[#allocation64 + $0x5]] %s2725_s28 }
 0x183   : > { %s1289_s8 = sadd.s32 %s2230_s29, %s1287_s24  ;;  %s2810_s7 = smov [#allocation2 + $0x34]  }
 0x184   : > { %s1290_s4 = scalar_lea.hbm %s3442_s1, %s1289_s8  ;;  %s1348_s22 = sshll.u32 %s2810_s7, 4  ;;  %s1349_s22 = int_to_ptr.vmem [resolvable:$true] %s1348_s22 }
 0x185   : > { %s1304_s25 = sshll.u32 %s1290_s4, 4  ;;  %s1305_s25 = int_to_ptr.hbm [resolvable:$true] %s1304_s25 }
 0x186   : > { %1325 = dma.general %s1305_s25, 64, %s1307_s13, %s2808_s11, %s2809_s12, [#allocation64], %s2939_s15, 0  }
 0x187   : > { %s1327_s10 = sld [smem:[#allocation5 + %s1326_s5]]  ;;  %s1368_s5 = sadd.s32 29, %s2931_s19 }
 0x188   : > { %1355 = sst [smem:[#allocation66]] %s2721_s6  ;;  %s2811_s11 = smov [#allocation3 + $0x1c]  }
 0x189   : > { %1357 = sst [smem:[#allocation66 + $0x1]] %s3459_s2  ;;  %s2812_s12 = smov [#allocation65]  }
 0x18a   : > { %1359 = sst [smem:[#allocation66 + $0x2]] %s3457_s16 }
 0x18b   : > { %1361 = sst [smem:[#allocation66 + $0x3]] %s3458_s21 }
 0x18c   : > { %1363 = sst [smem:[#allocation66 + $0x4]] %s3458_s21 }
 0x18d   : > { %s1328_s24 = sshrl.u32 %s1327_s10, 3  ;;  %s1329_s29 = sand.u32 7, %s1327_s10  }
 0x18e   : > { %s2233_s8 = sshll.u32 %s1328_s24, 4  ;;  %1365 = sst [smem:[#allocation66 + $0x5]] %s2725_s28 }
 0x18f   : > { %s1331_s13 = sadd.s32 %s2233_s8, %s1329_s29  ;;  %s2813_s10 = smov [#allocation2 + $0x35]  }
 0x190   : > { %s1332_s4 = scalar_lea.hbm %s3442_s1, %s1331_s13  ;;  %s1390_s24 = sshll.u32 %s2813_s10, 4  ;;  %s1391_s24 = int_to_ptr.vmem [resolvable:$true] %s1390_s24 }
 0x191   : > { %s1346_s25 = sshll.u32 %s1332_s4, 4  ;;  %s1347_s25 = int_to_ptr.hbm [resolvable:$true] %s1346_s25 }
 0x192   : > { %1367 = dma.general %s1347_s25, 64, %s1349_s22, %s2811_s11, %s2812_s12, [#allocation66], %s2939_s15, 0  }
 0x193   : > { %s1369_s7 = sld [smem:[#allocation5 + %s1368_s5]]  ;;  %s1410_s5 = sadd.s32 30, %s2931_s19 }
 0x194   : > { %1397 = sst [smem:[#allocation68]] %s2721_s6  ;;  %s2814_s11 = smov [#allocation3 + $0x1d]  }
 0x195   : > { %1399 = sst [smem:[#allocation68 + $0x1]] %s3459_s2  ;;  %s2815_s12 = smov [#allocation67]  }
 0x196   : > { %1401 = sst [smem:[#allocation68 + $0x2]] %s3457_s16 }
 0x197   : > { %1403 = sst [smem:[#allocation68 + $0x3]] %s3458_s21 }
 0x198   : > { %1405 = sst [smem:[#allocation68 + $0x4]] %s3458_s21 }
 0x199   : > { %s1370_s29 = sshrl.u32 %s1369_s7, 3  ;;  %s1371_s8 = sand.u32 7, %s1369_s7  }
 0x19a   : > { %s2236_s13 = sshll.u32 %s1370_s29, 4  ;;  %1407 = sst [smem:[#allocation68 + $0x5]] %s2725_s28 }
 0x19b   : > { %s1373_s22 = sadd.s32 %s2236_s13, %s1371_s8  ;;  %s2816_s7 = smov [#allocation2 + $0x36]  }
 0x19c   : > { %s1374_s4 = scalar_lea.hbm %s3442_s1, %s1373_s22  ;;  %s1432_s29 = sshll.u32 %s2816_s7, 4  ;;  %s1433_s29 = int_to_ptr.vmem [resolvable:$true] %s1432_s29 }
 0x19d   : > { %s1388_s25 = sshll.u32 %s1374_s4, 4  ;;  %s1389_s25 = int_to_ptr.hbm [resolvable:$true] %s1388_s25 }
 0x19e   : > { %1409 = dma.general %s1389_s25, 64, %s1391_s24, %s2814_s11, %s2815_s12, [#allocation68], %s2939_s15, 0  }
 0x19f   : > { %s1411_s10 = sld [smem:[#allocation5 + %s1410_s5]]  ;;  %s1452_s5 = sadd.s32 31, %s2931_s19 }
 0x1a0   : > { %1439 = sst [smem:[#allocation70]] %s2721_s6  ;;  %s2817_s11 = smov [#allocation3 + $0x1e]  }
 0x1a1   : > { %1441 = sst [smem:[#allocation70 + $0x1]] %s3459_s2  ;;  %s2818_s12 = smov [#allocation69]  }
 0x1a2   : > { %1443 = sst [smem:[#allocation70 + $0x2]] %s3457_s16 }
 0x1a3   : > { %1445 = sst [smem:[#allocation70 + $0x3]] %s3458_s21 }
 0x1a4   : > { %1447 = sst [smem:[#allocation70 + $0x4]] %s3458_s21 }
 0x1a5   : > { %s1412_s8 = sshrl.u32 %s1411_s10, 3  ;;  %s1413_s13 = sand.u32 7, %s1411_s10  }
 0x1a6   : > { %s2239_s22 = sshll.u32 %s1412_s8, 4  ;;  %1449 = sst [smem:[#allocation70 + $0x5]] %s2725_s28 }
 0x1a7   : > { %s1415_s24 = sadd.s32 %s2239_s22, %s1413_s13  ;;  %s2819_s10 = smov [#allocation2 + $0x37]  }
 0x1a8   : > { %s1416_s4 = scalar_lea.hbm %s3442_s1, %s1415_s24  ;;  %s1474_s8 = sshll.u32 %s2819_s10, 4  ;;  %s1475_s8 = int_to_ptr.vmem [resolvable:$true] %s1474_s8 }
 0x1a9   : > { %s1430_s25 = sshll.u32 %s1416_s4, 4  ;;  %s2821_s4 = smov [#allocation71]   ;;  %s1431_s25 = int_to_ptr.hbm [resolvable:$true] %s1430_s25 }
 0x1aa   : > { %1451 = dma.general %s1431_s25, 64, %s1433_s29, %s2817_s11, %s2818_s12, [#allocation70], %s2939_s15, 0  }
 0x1ab   : > { %s1453_s7 = sld [smem:[#allocation5 + %s1452_s5]] }
 0x1ac   : > { %1481 = sst [smem:[#allocation72]] %s2721_s6 }
 0x1ad   : > { %1483 = sst [smem:[#allocation72 + $0x1]] %s3459_s2 }
 0x1ae   : > { %1485 = sst [smem:[#allocation72 + $0x2]] %s3457_s16  ;;  %s3460_s16 = sshll.u32 %s2920_s27, 7 }
 0x1af   : > { %1487 = sst [smem:[#allocation72 + $0x3]] %s3458_s21  ;;  %s3290_s25 = scalar_lea.vmem [#allocation8], %s3460_s16  }
 0x1b0   : > { %1489 = sst [smem:[#allocation72 + $0x4]] %s3458_s21 }
 0x1b1   : > { %s1454_s19 = sshrl.u32 %s1453_s7, 3  ;;  %s1455_s13 = sand.u32 7, %s1453_s7  }
 0x1b2   : > { %s2242_s22 = sshll.u32 %s1454_s19, 4  ;;  %1491 = sst [smem:[#allocation72 + $0x5]] %s2725_s28 }
 0x1b3   : > { %s1457_s29 = sadd.s32 %s2242_s22, %s1455_s13 }
 0x1b4   : > { %s1458_s2 = scalar_lea.hbm %s3442_s1, %s1457_s29 }
 0x1b5   : > { %s1472_s9 = sshll.u32 %s1458_s2, 4  ;;  %s1473_s9 = int_to_ptr.hbm [resolvable:$true] %s1472_s9 }
 0x1b6   : > { %1493 = dma.general %s1473_s9, 64, %s1475_s8, %s2820_s14, %s2821_s4, [#allocation72], %s2939_s15, 0  }
 0x1b7   : > { %2606 = dma.done.wait [#allocation3], 64 }
 0x1b8   : > { %2607 = vsyncadd [#allocation3], 4294967232 }
 0x1b9   : > { %2608 = dma.done.wait [#allocation3 + $0x1], 64 }
 0x1ba   : > { %2609 = vsyncadd [#allocation3 + $0x1], 4294967232 }
 0x1bb   : > { %2610 = dma.done.wait [#allocation3 + $0x2], 64 }
 0x1bc   : > { %2611 = vsyncadd [#allocation3 + $0x2], 4294967232 }
 0x1bd   : > { %2612 = dma.done.wait [#allocation3 + $0x3], 64 }
 0x1be   : > { %2613 = vsyncadd [#allocation3 + $0x3], 4294967232 }
 0x1bf   : > { %2614 = dma.done.wait [#allocation3 + $0x4], 64 }
 0x1c0   : > { %2615 = vsyncadd [#allocation3 + $0x4], 4294967232 }
 0x1c1   : > { %2616 = dma.done.wait [#allocation3 + $0x5], 64 }
 0x1c2   : > { %2617 = vsyncadd [#allocation3 + $0x5], 4294967232 }
 0x1c3   : > { %2618 = dma.done.wait [#allocation3 + $0x6], 64 }
 0x1c4   : > { %2619 = vsyncadd [#allocation3 + $0x6], 4294967232 }
 0x1c5   : > { %2620 = dma.done.wait [#allocation3 + $0x7], 64 }
 0x1c6   : > { %2621 = vsyncadd [#allocation3 + $0x7], 4294967232 }
 0x1c7   : > { %2622 = dma.done.wait [#allocation3 + $0x8], 64 }
 0x1c8   : > { %2623 = vsyncadd [#allocation3 + $0x8], 4294967232 }
 0x1c9   : > { %2624 = dma.done.wait [#allocation3 + $0x9], 64 }
 0x1ca   : > { %2625 = vsyncadd [#allocation3 + $0x9], 4294967232 }
 0x1cb   : > { %2626 = dma.done.wait [#allocation3 + $0xa], 64 }
 0x1cc   : > { %2627 = vsyncadd [#allocation3 + $0xa], 4294967232 }
 0x1cd   : > { %2628 = dma.done.wait [#allocation3 + $0xb], 64 }
 0x1ce   : > { %2629 = vsyncadd [#allocation3 + $0xb], 4294967232 }
 0x1cf   : > { %2630 = dma.done.wait [#allocation3 + $0xc], 64 }
 0x1d0   : > { %2631 = vsyncadd [#allocation3 + $0xc], 4294967232 }
 0x1d1   : > { %2632 = dma.done.wait [#allocation3 + $0xd], 64 }
 0x1d2   : > { %2633 = vsyncadd [#allocation3 + $0xd], 4294967232 }
 0x1d3   : > { %2634 = dma.done.wait [#allocation3 + $0xe], 64 }
 0x1d4   : > { %2635 = vsyncadd [#allocation3 + $0xe], 4294967232 }
 0x1d5   : > { %2636 = dma.done.wait [#allocation3 + $0xf], 64 }
 0x1d6   : > { %2637 = vsyncadd [#allocation3 + $0xf], 4294967232 }
 0x1d7   : > { %2638 = dma.done.wait [#allocation3 + $0x10], 64 }
 0x1d8   : > { %2639 = vsyncadd [#allocation3 + $0x10], 4294967232 }
 0x1d9   : > { %2640 = dma.done.wait [#allocation3 + $0x11], 64 }
 0x1da   : > { %2641 = vsyncadd [#allocation3 + $0x11], 4294967232 }
 0x1db   : > { %2642 = dma.done.wait [#allocation3 + $0x12], 64 }
 0x1dc   : > { %2643 = vsyncadd [#allocation3 + $0x12], 4294967232 }
 0x1dd   : > { %2644 = dma.done.wait [#allocation3 + $0x13], 64 }
 0x1de   : > { %2645 = vsyncadd [#allocation3 + $0x13], 4294967232 }
 0x1df   : > { %2646 = dma.done.wait [#allocation3 + $0x14], 64 }
 0x1e0   : > { %2647 = vsyncadd [#allocation3 + $0x14], 4294967232 }
 0x1e1   : > { %2648 = dma.done.wait [#allocation3 + $0x15], 64 }
 0x1e2   : > { %2649 = vsyncadd [#allocation3 + $0x15], 4294967232 }
 0x1e3   : > { %2650 = dma.done.wait [#allocation3 + $0x16], 64 }
 0x1e4   : > { %2651 = vsyncadd [#allocation3 + $0x16], 4294967232 }
 0x1e5   : > { %2652 = dma.done.wait [#allocation3 + $0x17], 64 }
 0x1e6   : > { %2653 = vsyncadd [#allocation3 + $0x17], 4294967232 }
 0x1e7   : > { %2654 = dma.done.wait [#allocation3 + $0x18], 64 }
 0x1e8   : > { %2655 = vsyncadd [#allocation3 + $0x18], 4294967232 }
 0x1e9   : > { %2656 = dma.done.wait [#allocation3 + $0x19], 64 }
 0x1ea   : > { %2657 = vsyncadd [#allocation3 + $0x19], 4294967232 }
 0x1eb   : > { %2658 = dma.done.wait [#allocation3 + $0x1a], 64 }
 0x1ec   : > { %2659 = vsyncadd [#allocation3 + $0x1a], 4294967232 }
 0x1ed   : > { %2660 = dma.done.wait [#allocation3 + $0x1b], 64 }
 0x1ee   : > { %2661 = vsyncadd [#allocation3 + $0x1b], 4294967232 }
 0x1ef   : > { %2662 = dma.done.wait [#allocation3 + $0x1c], 64 }
 0x1f0   : > { %2663 = vsyncadd [#allocation3 + $0x1c], 4294967232 }
 0x1f1   : > { %2664 = dma.done.wait [#allocation3 + $0x1d], 64 }
 0x1f2   : > { %2665 = vsyncadd [#allocation3 + $0x1d], 4294967232 }
 0x1f3   : > { %2666 = dma.done.wait [#allocation3 + $0x1e], 64 }
 0x1f4   : > { %2667 = vsyncadd [#allocation3 + $0x1e], 4294967232 }
 0x1f5   : > { %2668 = dma.done.wait [#allocation3 + $0x1f], 64 }
 0x1f6   : > { %2669 = vsyncadd [#allocation3 + $0x1f], 4294967232  ;;  %v1560_v0 = vld [vmem:[#allocation2] sm:$0xff]  ;;  %v1561_v2 = vld [vmem:[#allocation2 + $0x8] sm:$0xff]  ;;  %s2246_s27 = sshll.u32 (%p2890_p9), %s2864_s0, 2 }
 0x1f7   : > { %v1576_v1 = vld [vmem:[%s2924_s30] sm:$0xff]  ;;  %v1577_v4 = vld [vmem:[%s2924_s30 + $0x8] sm:$0xff]  ;;  %v1562_v5 = vld [vmem:[#allocation2 + $0x10] sm:$0xff]  ;;  %s1624_s15 = ssub.s32 (%p2890_p9), 7, %s2246_s27 }
 0x1f8   : > { %v1584_v3 = vmul.f32 %v1576_v1, %v1560_v0  ;;  %v1578_v6 = vld [vmem:[%s2924_s30 + $0x10] sm:$0xff]  ;;  %v1585_v7 = vmul.f32 %v1577_v4, %v1561_v2  ;;  %v1563_v9 = vld [vmem:[#allocation2 + $0x18] sm:$0xff]  ;;  %v1564_v11 = vld [vmem:[#allocation2 + $0x20] sm:$0xff]  ;;  %p1625_p7 = scmp.lt.s32.totalorder (%p2890_p9), %s1624_s15, 4 }
 0x1f9   : > { %v1586_v8 = vmul.f32 %v1578_v6, %v1562_v5  ;;  %v1579_v10 = vld [vmem:[%s2924_s30 + $0x18] sm:$0xff]  ;;  %v1580_v13 = vld [vmem:[%s2924_s30 + $0x20] sm:$0xff]  ;;  %v1565_v14 = vld [vmem:[#allocation2 + $0x28] sm:$0xff] }
 0x1fa   : > { %1600 = vst [vmem:[%s3290_s25] sm:$0xff] %v1584_v3  ;;  %v1587_v12 = vmul.f32 %v1579_v10, %v1563_v9  ;;  %v1581_v15 = vld [vmem:[%s2924_s30 + $0x28] sm:$0xff]  ;;  %v1588_v16 = vmul.f32 %v1580_v13, %v1564_v11  ;;  %v1566_v18 = vld [vmem:[#allocation2 + $0x30] sm:$0xff]  ;;  %v1567_v20 = vld [vmem:[#allocation2 + $0x38] sm:$0xff] }
 0x1fb   : > { %1601 = vst [vmem:[%s3290_s25 + $0x8] sm:$0xff] %v1585_v7  ;;  %v1589_v17 = vmul.f32 %v1581_v15, %v1565_v14  ;;  %v1582_v19 = vld [vmem:[%s2924_s30 + $0x30] sm:$0xff]  ;;  %v1583_v22 = vld [vmem:[%s2924_s30 + $0x38] sm:$0xff]  ;;  %v1568_v23 = vld [vmem:[#allocation2 + $0x40] sm:$0xff]  ;;  %s2300_s30 = sshll.u32 (%p2890_p9), %s2864_s0, 6 }
 0x1fc   : > { %1602 = vst [vmem:[%s3290_s25 + $0x10] sm:$0xff] %v1586_v8  ;;  %v1590_v21 = vmul.f32 %v1582_v19, %v1566_v18  ;;  %v1569_v24 = vld [vmem:[#allocation2 + $0x48] sm:$0xff]  ;;  %v1591_v25 = vmul.f32 %v1583_v22, %v1567_v20  ;;  %v1570_v26 = vld [vmem:[#allocation2 + $0x50] sm:$0xff]  ;;  %v1592_v27 = vmul.f32 %v1576_v1, %v1568_v23  ;;  %v1571_v28 = vld [vmem:[#allocation2 + $0x58] sm:$0xff]  ;;  %s3323_s5 = scalar_lea.vmem (%p2890_p9), %s3444_s3, %s2300_s30  }
 0x1fd   : > { %1603 = vst [vmem:[%s3290_s25 + $0x18] sm:$0xff] %v1587_v12  ;;  %v1593_v29 = vmul.f32 %v1577_v4, %v1569_v24  ;;  %v1572_v30 = vld [vmem:[#allocation2 + $0x60] sm:$0xff]  ;;  %v1594_v31 = vmul.f32 %v1578_v6, %v1570_v26  ;;  %v1573_v32 = vld [vmem:[#allocation2 + $0x68] sm:$0xff]  ;;  %v1595_v33 = vmul.f32 %v1579_v10, %v1571_v28  ;;  %v1574_v34 = vld [vmem:[#allocation2 + $0x70] sm:$0xff] }
 0x1fe   : > { %1604 = vst [vmem:[%s3290_s25 + $0x20] sm:$0xff] %v1588_v16  ;;  %v1596_v35 = vmul.f32 %v1580_v13, %v1572_v30  ;;  %v1575_v36 = vld [vmem:[#allocation2 + $0x78] sm:$0xff]  ;;  %v1597_v37 = vmul.f32 %v1581_v15, %v1573_v32  ;;  %v1598_v38 = vmul.f32 %v1582_v19, %v1574_v34 }
 0x1ff   : > { %1605 = vst [vmem:[%s3290_s25 + $0x28] sm:$0xff] %v1589_v17  ;;  %v1599_v39 = vmul.f32 %v1583_v22, %v1575_v36 }
 0x200   : > { %1606 = vst [vmem:[%s3290_s25 + $0x30] sm:$0xff] %v1590_v21 }
 0x201   : > { %1607 = vst [vmem:[%s3290_s25 + $0x38] sm:$0xff] %v1591_v25 }
 0x202   : > { %1608 = vst [vmem:[%s3290_s25 + $0x40] sm:$0xff] %v1592_v27 }
 0x203   : > { %1609 = vst [vmem:[%s3290_s25 + $0x48] sm:$0xff] %v1593_v29 }
 0x204   : > { %1610 = vst [vmem:[%s3290_s25 + $0x50] sm:$0xff] %v1594_v31 }
 0x205   : > { %1611 = vst [vmem:[%s3290_s25 + $0x58] sm:$0xff] %v1595_v33  ;;  %1622 = sbr.rel (!%p2890_p9) target bundleno = 570 (0x23a), region = 32 }
 0x206   : > { %1612 = vst [vmem:[%s3290_s25 + $0x60] sm:$0xff] %v1596_v35 }
 0x207   : > { %1613 = vst [vmem:[%s3290_s25 + $0x68] sm:$0xff] %v1597_v37 }
 0x208   : > { %1614 = vst [vmem:[%s3290_s25 + $0x70] sm:$0xff] %v1598_v38 }
 0x209   : > { %1615 = vst [vmem:[%s3290_s25 + $0x78] sm:$0xff] %v1599_v39 }
 0x20a   : > { %s3473_s15 = smov (!%p1625_p7, %s1624_s15), 4 }
 0x20b   : > { %s2298_s11 = sshll.u32 %s3473_s15, 5 }
 0x20c   : > { %p2252_p10 = scmp.eq.s32.totalorder %s2298_s11, 0 }
 0x20d   : > { %s3329_s26 = sshrl.u32 (!%p2252_p10), %s3473_s15, 2 }
 0x20e   : > { %1635 = sbr.rel (%p2252_p10) target bundleno = 570 (0x23a), region = 36  ;;  %p2253_p9 = scmp.le.s32.totalorder (!%p2252_p10), %s3329_s26, 0 }
 0x213   : > { %2091 = sbr.rel (%p2253_p9) target bundleno = 553 (0x229), region = 375  ;;  %s3461_s0 = smov (!%p2253_p9), %s3323_s5 }
 0x214   : > { %s3462_s12 = smov (!%p2253_p9), %s3290_s25  ;;  %s3338_s7 = smov (!%p2253_p9), 0  }
 0x215   : > { %s3340_s10 = smov (!%p2253_p9), 0  }
 0x218 LB: >> { %v1648_v40 = vld [vmem:[%s2692_s12] sm:$0xff]  ;;  %v1650_v41 = vld [vmem:[%s2692_s12 + $0x10] sm:$0xff]  ;;  %s1680_s8 = sadd.s32 1, %s2696_s7  ;;  %v1656_v44 = vld [vmem:[%s2692_s12 + $0x8] sm:$0xff]  ;;  %s1642_s10 = sadd.s32 1, %s2700_s10   ;;  %s2700_s10 = sphi %s3340_s10, %s1642_s10   ;;  %s2696_s7 = sphi %s3338_s7, %s3465_s7   ;;  %s2692_s12 = sphi %s3462_s12, %s3464_s12   ;;  %s2688_s0 = sphi %s3461_s0, %s3463_s0  }
 0x219   : >> { %v1652_v42 = vld [vmem:[%s2692_s12 + $0x20] sm:$0xff]  ;;  %1649 = vst [vmem:[%s2688_s0] sm:$0xff] %v1648_v40  ;;  %v1654_v43 = vld [vmem:[%s2692_s12 + $0x30] sm:$0xff]  ;;  %p1681_p11 = scmp.ge.s32.totalorder %s1680_s8, %s3329_s26  ;;  %v1658_v45 = vld [vmem:[%s2692_s12 + $0x18] sm:$0xff]  ;;  %p1641_p12 = scmp.ge.s32.totalorder %s1642_s10, %s3329_s26 }
 0x21a   : >> { %1651 = vst [vmem:[%s2688_s0 + $0x10] sm:$0xff] %v1650_v41  ;;  %v1660_v46 = vld [vmem:[%s2692_s12 + $0x28] sm:$0xff]  ;;  %v1662_v47 = vld [vmem:[%s2692_s12 + $0x38] sm:$0xff]  ;;  %v1664_v48 = vld [vmem:[%s2692_s12 + $0x40] sm:$0xff] }
 0x21b   : >> { %1653 = vst [vmem:[%s2688_s0 + $0x20] sm:$0xff] %v1652_v42  ;;  %s3475_s8 = smov (%p1681_p11, %s1680_s8), 0  ;;  %v1666_v49 = vld [vmem:[%s2692_s12 + $0x50] sm:$0xff]  ;;  %v1668_v50 = vld [vmem:[%s2692_s12 + $0x60] sm:$0xff]  ;;  %v1672_v52 = vld [vmem:[%s2692_s12 + $0x48] sm:$0xff] }
 0x21c   : >> { %1655 = vst [vmem:[%s2688_s0 + $0x30] sm:$0xff] %v1654_v43  ;;  %s2254_s19 = sshll.u32 %s3475_s8, 6  ;;  %v1670_v51 = vld [vmem:[%s2692_s12 + $0x70] sm:$0xff]  ;;  %v1674_v53 = vld [vmem:[%s2692_s12 + $0x58] sm:$0xff]  ;;  %v1676_v54 = vld [vmem:[%s2692_s12 + $0x68] sm:$0xff]  ;;  %s3465_s7 = smov %s3475_s8 }
 0x21d   : >> { %1657 = vst [vmem:[%s2688_s0 + $0x8] sm:$0xff] %v1656_v44  ;;  %s1685_s13 = scalar_lea.vmem %s3290_s25, %s2254_s19 [#allocation8]   ;;  %s1686_s22 = scalar_lea.vmem %s3323_s5, %s2254_s19   ;;  %v1678_v55 = vld [vmem:[%s2692_s12 + $0x78] sm:$0xff] }
 0x21e   : >> { %1659 = vst [vmem:[%s2688_s0 + $0x18] sm:$0xff] %v1658_v45  ;;  %s3464_s12 = smov %s1685_s13 }
 0x21f   : >> { %1661 = vst [vmem:[%s2688_s0 + $0x28] sm:$0xff] %v1660_v46 }
 0x220   : >> { %1663 = vst [vmem:[%s2688_s0 + $0x38] sm:$0xff] %v1662_v47 }
 0x221   : >> { %1665 = vst [vmem:[%s2688_s0 + $0x70] sm:$0xff] %v1664_v48 }
 0x222   : >> { %1667 = vst [vmem:[%s2688_s0 + $0x80] sm:$0xff] %v1666_v49 }
 0x223   : >> { %1669 = vst [vmem:[%s2688_s0 + $0x90] sm:$0xff] %v1668_v50 }
 0x224   : >> { %1671 = vst [vmem:[%s2688_s0 + $0xa0] sm:$0xff] %v1670_v51  ;;  %1644 = sbr.rel (!%p1641_p12) target bundleno = 536 (0x218), region = 381 }
 0x225   : >> { %1673 = vst [vmem:[%s2688_s0 + $0x78] sm:$0xff] %v1672_v52 }
 0x226   : >> { %1675 = vst [vmem:[%s2688_s0 + $0x88] sm:$0xff] %v1674_v53 }
 0x227   : >> { %1677 = vst [vmem:[%s2688_s0 + $0x98] sm:$0xff] %v1676_v54 }
 0x228   : >> { %1679 = vst [vmem:[%s2688_s0 + $0xa8] sm:$0xff] %v1678_v55  ;;  %s3463_s0 = smov %s1686_s22 }
 0x229 PF: > { %s3402_s29 = sand.u32 3, %s3473_s15   ;;  %s2301_s6 = sshll.u32 %s3329_s26, 6 }
 0x22a   : > { %s3406_s24 = scalar_lea.vmem %s3290_s25, %s2301_s6 [#allocation8]   ;;  %s3409_s2 = scalar_lea.vmem %s3323_s5, %s2301_s6  }
 0x22b   : > { %p2259_p13 = scmp.le.s32.totalorder %s3402_s29, 0 }
 0x22c   : > { %s3466_s9 = smov (!%p2259_p13), %s3409_s2  ;;  %s3467_s14 = smov (!%p2259_p13), %s3406_s24 }
 0x22d   : > { %2105 = sbr.rel (%p2259_p13) target bundleno = 570 (0x23a), region = 386  ;;  %s2710_s4 = smov (!%p2259_p13), 0  }
 0x22e   : > { %s2714_s16 = smov (!%p2259_p13), 0  }
 0x232 LB: >> { %v1703_v56 = vld [vmem:[%s2708_s14] sm:$0xff]  ;;  %v1705_v57 = vld [vmem:[%s2708_s14 + $0x8] sm:$0xff]  ;;  %s1711_s25 = sadd.s32 1, %s2712_s4  ;;  %s1697_s16 = sadd.s32 1, %s2716_s16   ;;  %s2716_s16 = sphi %s2714_s16, %s1697_s16   ;;  %s2712_s4 = sphi %s2710_s4, %s2711_s4   ;;  %s2708_s14 = sphi %s3467_s14, %s1716_s14   ;;  %s2704_s9 = sphi %s3466_s9, %s1717_s9  }
 0x233   : >> { %v1707_v58 = vld [vmem:[%s2708_s14 + $0x40] sm:$0xff]  ;;  %1704 = vst [vmem:[%s2704_s9] sm:$0xff] %v1703_v56  ;;  %v1709_v59 = vld [vmem:[%s2708_s14 + $0x48] sm:$0xff]  ;;  %p1712_p0 = scmp.ge.s32.totalorder %s1711_s25, %s3402_s29  ;;  %p1696_p1 = scmp.ge.s32.totalorder %s1697_s16, %s3402_s29 }
 0x234   : >> { %1706 = vst [vmem:[%s2704_s9 + $0x8] sm:$0xff] %v1705_v57 }
 0x235   : >> { %1708 = vst [vmem:[%s2704_s9 + $0x70] sm:$0xff] %v1707_v58  ;;  %s3477_s25 = smov (%p1712_p0, %s1711_s25), 0  ;;  %1699 = sbr.rel (!%p1696_p1) target bundleno = 562 (0x232), region = 392 }
 0x236   : >> { %1710 = vst [vmem:[%s2704_s9 + $0x78] sm:$0xff] %v1709_v59  ;;  %s2260_s27 = sshll.u32 %s3477_s25, 4  ;;  %s2711_s4 = smov %s3477_s25  }
 0x237   : >> { %s1716_s14 = scalar_lea.vmem %s3406_s24, %s2260_s27 [#allocation8]   ;;  %s1717_s9 = scalar_lea.vmem %s3409_s2, %s2260_s27  }
 0x23a PF: > { %p21_p2 = scmp.ge.s32.totalorder %s2867_s20, 4   ;;  %s3468_s16 = smov %s2676_s17 }
 0x23b   : > { %s3469_s17 = smov %s2680_s18  ;;  %s3470_s18 = smov %s2877_s23 }
 0x23c   : > { %s3471_s19 = smov %s2867_s20  ;;  %23 = sbr.rel (!%p21_p2) target bundleno = 9 (0x9), region = 403 }
 0x241   :  { %1733 = vsyncpa [#allocation7], 1 }
 0x242   :  { %1735 = vsyncpa [#allocation7 + $0x1], 1 }
 0x243   :  { %1736 = vsyncmov [#allocation3] }
 0x246   :  { %s1737_s30 = vpop.sfrf %1736 }
 0x247   :  { %p2264_p3 = scmp.ne.s32.totalorder %s1737_s30, 0 }
 0x249   :  { %1741 = shalt.err (%p2264_p3)  }
 0x24a   :  { %1743 = vsyncmov [#allocation3 + $0x1] }
 0x24d   :  { %s1744_s15 = vpop.sfrf %1743 }
 0x24e   :  { %p2265_p4 = scmp.ne.s32.totalorder %s1744_s15, 0 }
 0x250   :  { %1748 = shalt.err (%p2265_p4)  }
 0x251   :  { %1750 = vsyncmov [#allocation3 + $0x2] }
 0x254   :  { %s1751_s28 = vpop.sfrf %1750 }
 0x255   :  { %p2266_p5 = scmp.ne.s32.totalorder %s1751_s28, 0 }
 0x257   :  { %1755 = shalt.err (%p2266_p5)  }
 0x258   :  { %1757 = vsyncmov [#allocation3 + $0x3] }
 0x25b   :  { %s1758_s21 = vpop.sfrf %1757 }
 0x25c   :  { %p2267_p6 = scmp.ne.s32.totalorder %s1758_s21, 0 }
 0x25e   :  { %1762 = shalt.err (%p2267_p6)  }
 0x25f   :  { %1764 = vsyncmov [#allocation3 + $0x4] }
 0x262   :  { %s1765_s20 = vpop.sfrf %1764 }
 0x263   :  { %p2268_p8 = scmp.ne.s32.totalorder %s1765_s20, 0 }
 0x265   :  { %1769 = shalt.err (%p2268_p8)  }
 0x266   :  { %1771 = vsyncmov [#allocation3 + $0x5] }
 0x269   :  { %s1772_s1 = vpop.sfrf %1771 }
 0x26a   :  { %p2269_p7 = scmp.ne.s32.totalorder %s1772_s1, 0 }
 0x26c   :  { %1776 = shalt.err (%p2269_p7)  }
 0x26d   :  { %1778 = vsyncmov [#allocation3 + $0x6] }
 0x270   :  { %s1779_s3 = vpop.sfrf %1778 }
 0x271   :  { %p2270_p10 = scmp.ne.s32.totalorder %s1779_s3, 0 }
 0x273   :  { %1783 = shalt.err (%p2270_p10)  }
 0x274   :  { %1785 = vsyncmov [#allocation3 + $0x7] }
 0x277   :  { %s1786_s17 = vpop.sfrf %1785 }
 0x278   :  { %p2271_p9 = scmp.ne.s32.totalorder %s1786_s17, 0 }
 0x27a   :  { %1790 = shalt.err (%p2271_p9)  }
 0x27b   :  { %1792 = vsyncmov [#allocation3 + $0x8] }
 0x27e   :  { %s1793_s18 = vpop.sfrf %1792 }
 0x27f   :  { %p2272_p11 = scmp.ne.s32.totalorder %s1793_s18, 0 }
 0x281   :  { %1797 = shalt.err (%p2272_p11)  }
 0x282   :  { %1799 = vsyncmov [#allocation3 + $0x9] }
 0x285   :  { %s1800_s23 = vpop.sfrf %1799 }
 0x286   :  { %p2273_p12 = scmp.ne.s32.totalorder %s1800_s23, 0 }
 0x288   :  { %1804 = shalt.err (%p2273_p12)  }
 0x289   :  { %1806 = vsyncmov [#allocation3 + $0xa] }
 0x28c   :  { %s1807_s5 = vpop.sfrf %1806 }
 0x28d   :  { %p2274_p13 = scmp.ne.s32.totalorder %s1807_s5, 0 }
 0x28f   :  { %1811 = shalt.err (%p2274_p13)  }
 0x290   :  { %1813 = vsyncmov [#allocation3 + $0xb] }
 0x293   :  { %s1814_s11 = vpop.sfrf %1813 }
 0x294   :  { %p2275_p0 = scmp.ne.s32.totalorder %s1814_s11, 0 }
 0x296   :  { %1818 = shalt.err (%p2275_p0)  }
 0x297   :  { %1820 = vsyncmov [#allocation3 + $0xc] }
 0x29a   :  { %s1821_s26 = vpop.sfrf %1820 }
 0x29b   :  { %p2276_p1 = scmp.ne.s32.totalorder %s1821_s26, 0 }
 0x29d   :  { %1825 = shalt.err (%p2276_p1)  }
 0x29e   :  { %1827 = vsyncmov [#allocation3 + $0xd] }
 0x2a1   :  { %s1828_s0 = vpop.sfrf %1827 }
 0x2a2   :  { %p2277_p2 = scmp.ne.s32.totalorder %s1828_s0, 0 }
 0x2a4   :  { %1832 = shalt.err (%p2277_p2)  }
 0x2a5   :  { %1834 = vsyncmov [#allocation3 + $0xe] }
 0x2a8   :  { %s1835_s12 = vpop.sfrf %1834 }
 0x2a9   :  { %p2278_p3 = scmp.ne.s32.totalorder %s1835_s12, 0 }
 0x2ab   :  { %1839 = shalt.err (%p2278_p3)  }
 0x2ac   :  { %1841 = vsyncmov [#allocation3 + $0xf] }
 0x2af   :  { %s1842_s7 = vpop.sfrf %1841 }
 0x2b0   :  { %p2279_p4 = scmp.ne.s32.totalorder %s1842_s7, 0 }
 0x2b2   :  { %1846 = shalt.err (%p2279_p4)  }
 0x2b3   :  { %1848 = vsyncmov [#allocation3 + $0x10] }
 0x2b6   :  { %s1849_s10 = vpop.sfrf %1848 }
 0x2b7   :  { %p2280_p5 = scmp.ne.s32.totalorder %s1849_s10, 0 }
 0x2b9   :  { %1853 = shalt.err (%p2280_p5)  }
 0x2ba   :  { %1855 = vsyncmov [#allocation3 + $0x11] }
 0x2bd   :  { %s1856_s8 = vpop.sfrf %1855 }
 0x2be   :  { %p2281_p6 = scmp.ne.s32.totalorder %s1856_s8, 0 }
 0x2c0   :  { %1860 = shalt.err (%p2281_p6)  }
 0x2c1   :  { %1862 = vsyncmov [#allocation3 + $0x12] }
 0x2c4   :  { %s1863_s19 = vpop.sfrf %1862 }
 0x2c5   :  { %p2282_p8 = scmp.ne.s32.totalorder %s1863_s19, 0 }
 0x2c7   :  { %1867 = shalt.err (%p2282_p8)  }
 0x2c8   :  { %1869 = vsyncmov [#allocation3 + $0x13] }
 0x2cb   :  { %s1870_s13 = vpop.sfrf %1869 }
 0x2cc   :  { %p2283_p7 = scmp.ne.s32.totalorder %s1870_s13, 0 }
 0x2ce   :  { %1874 = shalt.err (%p2283_p7)  }
 0x2cf   :  { %1876 = vsyncmov [#allocation3 + $0x14] }
 0x2d2   :  { %s1877_s22 = vpop.sfrf %1876 }
 0x2d3   :  { %p2284_p10 = scmp.ne.s32.totalorder %s1877_s22, 0 }
 0x2d5   :  { %1881 = shalt.err (%p2284_p10)  }
 0x2d6   :  { %1883 = vsyncmov [#allocation3 + $0x15] }
 0x2d9   :  { %s1884_s29 = vpop.sfrf %1883 }
 0x2da   :  { %p2285_p9 = scmp.ne.s32.totalorder %s1884_s29, 0 }
 0x2dc   :  { %1888 = shalt.err (%p2285_p9)  }
 0x2dd   :  { %1890 = vsyncmov [#allocation3 + $0x16] }
 0x2e0   :  { %s1891_s6 = vpop.sfrf %1890 }
 0x2e1   :  { %p2286_p11 = scmp.ne.s32.totalorder %s1891_s6, 0 }
 0x2e3   :  { %1895 = shalt.err (%p2286_p11)  }
 0x2e4   :  { %1897 = vsyncmov [#allocation3 + $0x17] }
 0x2e7   :  { %s1898_s24 = vpop.sfrf %1897 }
 0x2e8   :  { %p2287_p12 = scmp.ne.s32.totalorder %s1898_s24, 0 }
 0x2ea   :  { %1902 = shalt.err (%p2287_p12)  }
 0x2eb   :  { %1904 = vsyncmov [#allocation3 + $0x18] }
 0x2ee   :  { %s1905_s2 = vpop.sfrf %1904 }
 0x2ef   :  { %p2288_p13 = scmp.ne.s32.totalorder %s1905_s2, 0 }
 0x2f1   :  { %1909 = shalt.err (%p2288_p13)  }
 0x2f2   :  { %1911 = vsyncmov [#allocation3 + $0x19] }
 0x2f5   :  { %s1912_s9 = vpop.sfrf %1911 }
 0x2f6   :  { %p2289_p0 = scmp.ne.s32.totalorder %s1912_s9, 0 }
 0x2f8   :  { %1916 = shalt.err (%p2289_p0)  }
 0x2f9   :  { %1918 = vsyncmov [#allocation3 + $0x1a] }
 0x2fc   :  { %s1919_s14 = vpop.sfrf %1918 }
 0x2fd   :  { %p2290_p1 = scmp.ne.s32.totalorder %s1919_s14, 0 }
 0x2ff   :  { %1923 = shalt.err (%p2290_p1)  }
 0x300   :  { %1925 = vsyncmov [#allocation3 + $0x1b] }
 0x303   :  { %s1926_s4 = vpop.sfrf %1925 }
 0x304   :  { %p2291_p2 = scmp.ne.s32.totalorder %s1926_s4, 0 }
 0x306   :  { %1930 = shalt.err (%p2291_p2)  }
 0x307   :  { %1932 = vsyncmov [#allocation3 + $0x1c] }
 0x30a   :  { %s1933_s16 = vpop.sfrf %1932 }
 0x30b   :  { %p2292_p3 = scmp.ne.s32.totalorder %s1933_s16, 0 }
 0x30d   :  { %1937 = shalt.err (%p2292_p3)  }
 0x30e   :  { %1939 = vsyncmov [#allocation3 + $0x1d] }
 0x311   :  { %s1940_s25 = vpop.sfrf %1939 }
 0x312   :  { %p2293_p4 = scmp.ne.s32.totalorder %s1940_s25, 0 }
 0x314   :  { %1944 = shalt.err (%p2293_p4)  }
 0x315   :  { %1946 = vsyncmov [#allocation3 + $0x1e] }
 0x318   :  { %s1947_s27 = vpop.sfrf %1946 }
 0x319   :  { %p2294_p5 = scmp.ne.s32.totalorder %s1947_s27, 0 }
 0x31b   :  { %1951 = shalt.err (%p2294_p5)  }
 0x31c   :  { %1953 = vsyncmov [#allocation3 + $0x1f] }
 0x31f   :  { %s1954_s30 = vpop.sfrf %1953 }
 0x320   :  { %p2295_p6 = scmp.ne.s32.totalorder %s1954_s30, 0 }
 0x322   :  { %1958 = shalt.err (%p2295_p6)  }

</bundles_post_ra>
